<compile_context>
chip_gen: v5e
topology: v5e:2x2
jax: 0.10.0
libtpu: 0.0.40
codegen_flags: <defaults>
</compile_context>

<pallas_src>
import functools
import math

import jax
import jax.numpy as jnp
from jax.experimental import pallas as pl
from jax.experimental.pallas import tpu as pltpu

CP = 128       # lane width / channel padding
KH = 5         # conv-transpose kernel height (all three layers)
COUT = 16      # out_channels of every layer
BN_EPS = 1e-3


# ------------------------------ Pallas kernel -------------------------------

def _decode_kernel(x_ref, i0_ref, i1_ref, i2_ref,
                   w1_ref, s1_ref, b1_ref,
                   w2_ref, s2_ref, b2_ref,
                   w3_ref, s3_ref, b3_ref,
                   out_ref, *, h_ups):
    """Fused (unpool -> convT -> BN -> ReLU) x 3 for one block of batch elems."""
    bb = x_ref.shape[0]                            # batch elements in this block

    def unpool(feat, idx, h_up):
        # MaxUnpool2d((2,1), stride 2) on width-1 maps: output row p can only be
        # fed from input row p // 2, so the scatter is a masked 2x row interleave
        # (VPU masks + sublane interleave; no MXU work).
        # TODO(synk): arbitrary MaxUnpool2d indices (overlapping windows, W > 1)
        # are not modelled; idx[h] is assumed to be in {2h, 2h+1}.
        h_in = feat.shape[1]
        row = jax.lax.broadcasted_iota(jnp.int32, feat.shape, 1)
        even = jnp.where(idx == 2 * row, feat, 0.0)        # -> output row 2h
        odd = jnp.where(idx == 2 * row + 1, feat, 0.0)     # -> output row 2h+1
        inter = jnp.stack([even, odd], axis=2).reshape(bb, 2 * h_in, CP)
        if h_up == 2 * h_in:
            return inter
        if h_up > 2 * h_in:                                # odd pre-pool height
            pad = jnp.zeros((bb, h_up - 2 * h_in, CP), jnp.float32)
            return jnp.concatenate([inter, pad], axis=1)
        return inter[:, :h_up, :]

    def pad_h(up):
        zpad = jnp.zeros((bb, KH - 1, CP), jnp.float32)
        return jnp.concatenate([zpad, up, zpad], axis=1)

    def bn_relu(y2d, s_ref, b_ref, h_out):
        y = jnp.maximum(y2d * s_ref[...] + b_ref[...], 0.0)   # f32 epilogue
        return y.reshape(bb, h_out, CP)

    def conv1(up, w_ref, s_ref, b_ref):
        # Layer 1 (Cin=112, dense in 128 lanes): 5 accumulating bf16 GEMMs
        # (M,128)x(128,128) with f32 accumulation; no taps-concat slab.
        h_out = up.shape[1] + KH - 1
        up_pad = pad_h(up)
        acc = jnp.zeros((bb * h_out, CP), jnp.float32)
        for dh in range(KH):
            tap = up_pad[:, dh:dh + h_out, :].reshape(bb * h_out, CP)
            acc = acc + jnp.dot(tap.astype(jnp.bfloat16),
                                w_ref[dh * CP:(dh + 1) * CP, :],
                                preferred_element_type=jnp.float32)
        return bn_relu(acc, s_ref, b_ref, h_out)

    def conv_packed(up, w_ref, s_ref, b_ref):
        # Layers 2/3 (Cin=16): pack the 5 taps x 16 channels into ONE 128-lane
        # K block with lane rolls (XLU) -> single (M,128)x(128,128) bf16 GEMM.
        # Valid because only lanes [0,16) of `up` are nonzero (BN pad is 0).
        h_out = up.shape[1] + KH - 1
        up_pad = pad_h(up)
        packed = up_pad[:, 0:h_out, :]
        for dh in range(1, KH):
            packed = packed + pltpu.roll(up_pad[:, dh:dh + h_out, :],
                                         dh * COUT, 2)
        taps = packed.reshape(bb * h_out, CP).astype(jnp.bfloat16)
        y = jnp.dot(taps, w_ref[...], preferred_element_type=jnp.float32)
        return bn_relu(y, s_ref, b_ref, h_out)

    feat = x_ref[...]                                              # (bb, H0, CP)
    feat = conv1(unpool(feat, i0_ref[...], h_ups[0]), w1_ref, s1_ref, b1_ref)
    feat = conv_packed(unpool(feat, i1_ref[...], h_ups[1]), w2_ref, s2_ref, b2_ref)
    feat = conv_packed(unpool(feat, i2_ref[...], h_ups[2]), w3_ref, s3_ref, b3_ref)

    hpad = out_ref.shape[1] - feat.shape[1]        # pad H to a multiple of 8
    if hpad:
        feat = jnp.concatenate(
            [feat, jnp.zeros((bb, hpad, CP), jnp.float32)], axis=1)
    out_ref[...] = feat


# --------------------------- parameter packing -------------------------------

def _pack_w1(w):
    """Layer-1 ConvTranspose2d weight (112,16,5,1) -> kh-flipped, lane-padded
    bf16 GEMM matrix (KH*CP, CP): Wm[dh*CP + c, o] = w[c, o, KH-1-dh, 0]."""
    cin, cout, kh, _ = w.shape
    wt = jnp.transpose(w[:, :, ::-1, 0], (2, 0, 1))                 # (kh,cin,cout)
    wm = jnp.zeros((kh, CP, CP), jnp.float32).at[:, :cin, :cout].set(wt)
    return wm.reshape(kh * CP, CP).astype(jnp.bfloat16)


def _pack_w_kpacked(w):
    """Layer-2/3 weight (16,16,5,kw) -> K-packed bf16 (CP, CP):
    Wm[dh*16 + c, x*16 + o] = w[c, o, KH-1-dh, x]  (80 valid rows, kw*16 cols)."""
    cin, cout, kh, kw = w.shape
    assert kh * cin <= CP and kw * cout <= CP
    wt = jnp.transpose(w[:, :, ::-1, :], (2, 0, 3, 1)).reshape(kh * cin, kw * cout)
    return (jnp.zeros((CP, CP), jnp.float32)
            .at[:kh * cin, :kw * cout].set(wt).astype(jnp.bfloat16))


def _fold_bn(gamma, beta, mean, var, kw):
    """Eval-mode BatchNorm folded to a per-lane affine for the x*16+o layout
    (padded lanes get 0 so they stay exactly 0 after the ReLU)."""
    scale = gamma / jnp.sqrt(var + BN_EPS)
    bias = beta - mean * scale
    cout = gamma.shape[0]
    s = jnp.zeros((CP,), jnp.float32).at[:kw * cout].set(jnp.tile(scale, kw))
    b = jnp.zeros((CP,), jnp.float32).at[:kw * cout].set(jnp.tile(bias, kw))
    return s.reshape(1, CP), b.reshape(1, CP)


def init_decode_params(key, size):
    """Random parameters with the PyTorch module's shapes.
    Returns (kernel-packed operands, raw params for the pure-JAX reference)."""
    cfg = [(112, COUT, KH, 1), (COUT, COUT, KH, 1), (COUT, COUT, KH, size)]
    packers = [_pack_w1, _pack_w_kpacked, _pack_w_kpacked]
    keys = jax.random.split(key, 5 * len(cfg))
    packed, raw, ki = [], [], 0
    for (cin, cout, kh, kw), pack in zip(cfg, packers):
        bound = math.sqrt(6.0 / (cout * kh * kw))                   # kaiming-ish
        w = jax.random.uniform(keys[ki], (cin, cout, kh, kw), jnp.float32,
                               -bound, bound); ki += 1
        gamma = 1.0 + 0.1 * jax.random.normal(keys[ki], (cout,)); ki += 1
        beta = 0.1 * jax.random.normal(keys[ki], (cout,)); ki += 1
        rmean = 0.1 * jax.random.normal(keys[ki], (cout,)); ki += 1
        rvar = 1.0 + 0.1 * jnp.abs(jax.random.normal(keys[ki], (cout,))); ki += 1
        s, b = _fold_bn(gamma, beta, rmean, rvar, kw)
        packed.extend([pack(w), s, b])
        raw.append((w, gamma, beta, rmean, rvar))
    return tuple(packed), raw


# ------------------------------ forward pass ---------------------------------

def decode_forward(x, indices, sizes, packed, kw3, b_blk=8):
    """x: (N, 112, H0, 1) NCHW; indices/sizes in encoder order (Decode reverses
    them); kw3 = module's `size`. Returns (N, 16, H_final, kw3) f32."""
    indices = list(indices)[::-1]
    sizes = [tuple(int(v) for v in s) for s in sizes][::-1]
    indices[0] = jnp.concatenate((indices[0],) * 7, axis=1)   # 16 -> 112 channels
    # sizes[0] channels := 112 and sizes[-1] channels := 16 are implicit below.

    n, cin, h0, w0 = x.shape
    h_ups = tuple(s[2] for s in sizes)                        # unpool out heights
    h3 = h_ups[2] + KH - 1
    h3_pad = -(-h3 // 8) * 8                                  # unmasked stores
    assert cin == 112 and w0 == 1 and all(s[3] == 1 for s in sizes)
    assert indices[0].shape[2] == h0
    assert indices[1].shape[2] == h_ups[0] + KH - 1
    assert indices[2].shape[2] == h_ups[1] + KH - 1
    assert kw3 * COUT <= CP    # TODO(synk): size > 8 needs a wider output slab

    def to_hcp(a, dtype):                                     # (N,C,H,1)->(N,H,CP)
        a = jnp.transpose(a[..., 0], (0, 2, 1))
        return jnp.pad(a, ((0, 0), (0, 0), (0, CP - a.shape[-1]))).astype(dtype)

    xin = to_hcp(x, jnp.float32)
    idx = [to_hcp(i, jnp.int32) for i in indices]

    # Batch-block the grid: each step carries b_blk elements so the GEMM M is
    # b_blk * h_out; pad N up to a multiple of b_blk (padded rows are sliced off).
    b_blk = max(1, min(b_blk, n))
    n_pad = -(-n // b_blk) * b_blk
    if n_pad != n:
        pad_b = lambda a: jnp.pad(a, ((0, n_pad - n), (0, 0), (0, 0)))
        xin = pad_b(xin)
        idx = [pad_b(i) for i in idx]

    def bspec(h):
        return pl.BlockSpec((b_blk, h, CP), lambda i: (i, 0, 0))

    def cspec(a):
        return pl.BlockSpec(a.shape, lambda i: (0,) * a.ndim)

    out = pl.pallas_call(
        functools.partial(_decode_kernel, h_ups=h_ups),
        out_shape=jax.ShapeDtypeStruct((n_pad, h3_pad, CP), jnp.float32),
        grid_spec=pltpu.PrefetchScalarGridSpec(
            num_scalar_prefetch=0,
            grid=(n_pad // b_blk,),
            in_specs=[bspec(xin.shape[1])]
                     + [bspec(i.shape[1]) for i in idx]
                     + [cspec(a) for a in packed],
            out_specs=bspec(h3_pad),
        ),
        compiler_params=pltpu.CompilerParams(
            dimension_semantics=("parallel",)),    # batch blocks shard across TCs
    )(xin, *idx, *packed)

    # lane-packed (N, H_pad, CP) with valid lane x*16+o  ->  NCHW (N, 16, H, kw3)
    out = out[:n, :h3, :kw3 * COUT].reshape(n, h3, kw3, COUT)
    return jnp.transpose(out, (0, 3, 1, 2))


# ------------------------- pure-JAX reference (f32) ---------------------------

def _decode_reference(x, indices, sizes, raw):
    indices = list(indices)[::-1]
    sizes = [tuple(int(v) for v in s) for s in sizes][::-1]
    indices[0] = jnp.concatenate((indices[0],) * 7, axis=1)
    out = x
    for (w, gamma, beta, mean, var), idx, sz in zip(raw, indices, sizes):
        n, c, h, _ = out.shape
        up = jnp.zeros((n, c, sz[2]), out.dtype)
        up = up.at[jnp.arange(n)[:, None, None],
                   jnp.arange(c)[None, :, None],
                   idx[..., 0]].set(out[..., 0])               # MaxUnpool2d scatter
        kh, kw = w.shape[2], w.shape[3]
        h_out = sz[2] + kh - 1
        upp = jnp.pad(up, ((0, 0), (0, 0), (kh - 1, kh - 1)))
        taps = jnp.stack([upp[:, :, kh - 1 - k: kh - 1 - k + h_out]
                          for k in range(kh)], axis=2)         # taps[...,k,i]=up[i-k]
        y = jnp.einsum('ncki,cokx->noix', taps, w)             # ConvTranspose2d
        scale = (gamma / jnp.sqrt(var + BN_EPS))[None, :, None, None]
        bias = (beta - mean * gamma / jnp.sqrt(var + BN_EPS))[None, :, None, None]
        out = jnp.maximum(y * scale + bias, 0.0)               # BN (eval) + ReLU
    return out


# --------------------------------- main ---------------------------------------

if __name__ == "__main__":
    N = 2
    SIZE = 4         # Decode(config, size): conv3 kernel is (5, SIZE)
    H_X = 4          # bottleneck height (width 1)

    key = jax.random.PRNGKey(0)
    kp, kx, ka, kb, kc = jax.random.split(key, 5)

    packed, raw = init_decode_params(kp, SIZE)
    x = jax.random.normal(kx, (N, 112, H_X, 1), jnp.float32)

    def pool_indices(k, h_in, h_out):
        # indices a MaxPool2d((2,1), stride=2) would produce on a width-1 map:
        # pooled row h picked row 2h or 2h+1 of the (h_out, 1) pre-pool map.
        r = jax.random.randint(k, (N, COUT, h_in, 1), 0, 2, dtype=jnp.int32)
        base = 2 * jnp.arange(h_in, dtype=jnp.int32).reshape(1, 1, h_in, 1)
        return jnp.minimum(base + r, h_out - 1)

    # encoder-order lists (Decode.forward reverses them)
    sizes = [(N, COUT, 56, 1), (N, COUT, 24, 1), (N, COUT, 8, 1)]
    indices = [pool_indices(kc, 28, 56),   # consumed by decode layer 3
               pool_indices(kb, 12, 24),   # consumed by decode layer 2
               pool_indices(ka, 4, 8)]     # consumed by decode layer 1 (tiled x7)

    fwd = jax.jit(lambda xx, ii, pp: decode_forward(xx, ii, sizes, pp, SIZE))
    out = fwd(x, indices, packed)
    jax.block_until_ready(out)

    assert out.shape == (N, COUT, 56 + KH - 1, SIZE), out.shape
    assert out.dtype == jnp.float32
    assert bool(jnp.all(jnp.isfinite(out)))

    # correctness vs pure-JAX f32 reference (kernel GEMMs run in bf16)
    ref = _decode_reference(x, indices, sizes, raw)
    err = jnp.sqrt(jnp.mean((out - ref) ** 2)) / (jnp.sqrt(jnp.mean(ref ** 2)) + 1e-6)
    assert float(err) < 5e-2, float(err)

    print("KERNEL_OK")
</pallas_src>

<mosaic_0001>
module attributes {stable_mosaic.version = 11 : i64} {
  func.func @_decode_kernel(%arg0: i32, %arg1: memref<2x4x128xf32, #tpu.memory_space<vmem>>, %arg2: memref<2x4x128xi32, #tpu.memory_space<vmem>>, %arg3: memref<2x12x128xi32, #tpu.memory_space<vmem>>, %arg4: memref<2x28x128xi32, #tpu.memory_space<vmem>>, %arg5: memref<640x128xbf16, #tpu.memory_space<vmem>>, %arg6: memref<1x128xf32, #tpu.memory_space<vmem>>, %arg7: memref<1x128xf32, #tpu.memory_space<vmem>>, %arg8: memref<128x128xbf16, #tpu.memory_space<vmem>>, %arg9: memref<1x128xf32, #tpu.memory_space<vmem>>, %arg10: memref<1x128xf32, #tpu.memory_space<vmem>>, %arg11: memref<128x128xbf16, #tpu.memory_space<vmem>>, %arg12: memref<1x128xf32, #tpu.memory_space<vmem>>, %arg13: memref<1x128xf32, #tpu.memory_space<vmem>>, %arg14: memref<2x64x128xf32, #tpu.memory_space<vmem>>) attributes {dimension_semantics = [#tpu.dimension_semantics<parallel>], iteration_bounds = array<i64: 1>, scalar_prefetch = 0 : i64, scratch_operands = 0 : i64, tpu.core_type = #tpu.core_type<tc>, window_params = [{transform_indices = @transform_0, window_bounds = array<i64: 2, 4, 128>}, {transform_indices = @transform_1, window_bounds = array<i64: 2, 4, 128>}, {transform_indices = @transform_2, window_bounds = array<i64: 2, 12, 128>}, {transform_indices = @transform_3, window_bounds = array<i64: 2, 28, 128>}, {pipeline_mode = #tpu.pipeline_mode<synchronous>, transform_indices = @transform_4, window_bounds = array<i64: 640, 128>}, {pipeline_mode = #tpu.pipeline_mode<synchronous>, transform_indices = @transform_5, window_bounds = array<i64: 1, 128>}, {pipeline_mode = #tpu.pipeline_mode<synchronous>, transform_indices = @transform_6, window_bounds = array<i64: 1, 128>}, {pipeline_mode = #tpu.pipeline_mode<synchronous>, transform_indices = @transform_7, window_bounds = array<i64: 128, 128>}, {pipeline_mode = #tpu.pipeline_mode<synchronous>, transform_indices = @transform_8, window_bounds = array<i64: 1, 128>}, {pipeline_mode = #tpu.pipeline_mode<synchronous>, transform_indices = @transform_9, window_bounds = array<i64: 1, 128>}, {pipeline_mode = #tpu.pipeline_mode<synchronous>, transform_indices = @transform_10, window_bounds = array<i64: 128, 128>}, {pipeline_mode = #tpu.pipeline_mode<synchronous>, transform_indices = @transform_11, window_bounds = array<i64: 1, 128>}, {pipeline_mode = #tpu.pipeline_mode<synchronous>, transform_indices = @transform_12, window_bounds = array<i64: 1, 128>}, {transform_indices = @transform_13, window_bounds = array<i64: 2, 64, 128>}]} {
    %c0 = arith.constant 0 : index
    %c0_0 = arith.constant 0 : index
    %c0_1 = arith.constant 0 : index
    %0 = vector.load %arg1[%c0, %c0_0, %c0_1] : memref<2x4x128xf32, #tpu.memory_space<vmem>>, vector<2x4x128xf32>
    %c0_2 = arith.constant 0 : index
    %c0_3 = arith.constant 0 : index
    %c0_4 = arith.constant 0 : index
    %1 = vector.load %arg2[%c0_2, %c0_3, %c0_4] : memref<2x4x128xi32, #tpu.memory_space<vmem>>, vector<2x4x128xi32>
    %2 = tpu.iota {dimensions = array<i32: 1>} : vector<2x4x128xi32>
    %c2_i32 = arith.constant 2 : i32
    %3 = vector.broadcast %c2_i32 : i32 to vector<2x4x128xi32>
    %4 = arith.muli %3, %2 : vector<2x4x128xi32>
    %5 = arith.cmpi eq, %1, %4 : vector<2x4x128xi32>
    %cst = arith.constant 0.000000e+00 : f32
    %6 = vector.broadcast %cst : f32 to vector<2x4x128xf32>
    %7 = arith.select %5, %0, %6 : vector<2x4x128xi1>, vector<2x4x128xf32>
    %c2_i32_5 = arith.constant 2 : i32
    %8 = vector.broadcast %c2_i32_5 : i32 to vector<2x4x128xi32>
    %9 = arith.muli %8, %2 : vector<2x4x128xi32>
    %c1_i32 = arith.constant 1 : i32
    %10 = vector.broadcast %c1_i32 : i32 to vector<2x4x128xi32>
    %11 = arith.addi %9, %10 : vector<2x4x128xi32>
    %12 = arith.cmpi eq, %1, %11 : vector<2x4x128xi32>
    %cst_6 = arith.constant 0.000000e+00 : f32
    %13 = vector.broadcast %cst_6 : f32 to vector<2x4x128xf32>
    %14 = arith.select %12, %0, %13 : vector<2x4x128xi1>, vector<2x4x128xf32>
    %15 = vector.shape_cast %7 : vector<2x4x128xf32> to vector<2x4x1x128xf32>
    %16 = vector.shape_cast %14 : vector<2x4x128xf32> to vector<2x4x1x128xf32>
    %17 = tpu.concatenate %15, %16 in 2 : vector<2x4x1x128xf32>, vector<2x4x1x128xf32> -> vector<2x4x2x128xf32>
    %18 = vector.shape_cast %17 : vector<2x4x2x128xf32> to vector<2x8x128xf32>
    %cst_7 = arith.constant 0.000000e+00 : f32
    %19 = vector.broadcast %cst_7 : f32 to vector<2x4x128xf32>
    %20 = tpu.concatenate %19, %18, %19 in 1 : vector<2x4x128xf32>, vector<2x8x128xf32>, vector<2x4x128xf32> -> vector<2x16x128xf32>
    %cst_8 = arith.constant 0.000000e+00 : f32
    %21 = vector.broadcast %cst_8 : f32 to vector<24x128xf32>
    %22 = vector.extract_strided_slice %20 {offsets = [0, 0, 0], sizes = [2, 12, 128], strides = [1, 1, 1]} : vector<2x16x128xf32> to vector<2x12x128xf32>
    %23 = vector.shape_cast %22 : vector<2x12x128xf32> to vector<24x128xf32>
    %24 = arith.truncf %23 : vector<24x128xf32> to vector<24x128xbf16>
    %c0_9 = arith.constant 0 : index
    %c0_10 = arith.constant 0 : index
    %25 = vector.load %arg5[%c0_9, %c0_10] : memref<640x128xbf16, #tpu.memory_space<vmem>>, vector<128x128xbf16>
    %cst_11 = arith.constant dense<0.000000e+00> : vector<24x128xf32>
    %26 = tpu.matmul %24, %25, %cst_11 {dimension_numbers = #tpu.dot_dimension_numbers<[1], [0], [0], [1], [0, 0, 1, 1], [], []>} : vector<24x128xbf16>, vector<128x128xbf16>, vector<24x128xf32> -> vector<24x128xf32>
    %27 = arith.addf %21, %26 : vector<24x128xf32>
    %28 = vector.extract_strided_slice %20 {offsets = [0, 1, 0], sizes = [2, 12, 128], strides = [1, 1, 1]} : vector<2x16x128xf32> to vector<2x12x128xf32>
    %29 = vector.shape_cast %28 : vector<2x12x128xf32> to vector<24x128xf32>
    %30 = arith.truncf %29 : vector<24x128xf32> to vector<24x128xbf16>
    %c128 = arith.constant 128 : index
    %c0_12 = arith.constant 0 : index
    %31 = vector.load %arg5[%c128, %c0_12] : memref<640x128xbf16, #tpu.memory_space<vmem>>, vector<128x128xbf16>
    %cst_13 = arith.constant dense<0.000000e+00> : vector<24x128xf32>
    %32 = tpu.matmul %30, %31, %cst_13 {dimension_numbers = #tpu.dot_dimension_numbers<[1], [0], [0], [1], [0, 0, 1, 1], [], []>} : vector<24x128xbf16>, vector<128x128xbf16>, vector<24x128xf32> -> vector<24x128xf32>
    %33 = arith.addf %27, %32 : vector<24x128xf32>
    %34 = vector.extract_strided_slice %20 {offsets = [0, 2, 0], sizes = [2, 12, 128], strides = [1, 1, 1]} : vector<2x16x128xf32> to vector<2x12x128xf32>
    %35 = vector.shape_cast %34 : vector<2x12x128xf32> to vector<24x128xf32>
    %36 = arith.truncf %35 : vector<24x128xf32> to vector<24x128xbf16>
    %c256 = arith.constant 256 : index
    %c0_14 = arith.constant 0 : index
    %37 = vector.load %arg5[%c256, %c0_14] : memref<640x128xbf16, #tpu.memory_space<vmem>>, vector<128x128xbf16>
    %cst_15 = arith.constant dense<0.000000e+00> : vector<24x128xf32>
    %38 = tpu.matmul %36, %37, %cst_15 {dimension_numbers = #tpu.dot_dimension_numbers<[1], [0], [0], [1], [0, 0, 1, 1], [], []>} : vector<24x128xbf16>, vector<128x128xbf16>, vector<24x128xf32> -> vector<24x128xf32>
    %39 = arith.addf %33, %38 : vector<24x128xf32>
    %40 = vector.extract_strided_slice %20 {offsets = [0, 3, 0], sizes = [2, 12, 128], strides = [1, 1, 1]} : vector<2x16x128xf32> to vector<2x12x128xf32>
    %41 = vector.shape_cast %40 : vector<2x12x128xf32> to vector<24x128xf32>
    %42 = arith.truncf %41 : vector<24x128xf32> to vector<24x128xbf16>
    %c384 = arith.constant 384 : index
    %c0_16 = arith.constant 0 : index
    %43 = vector.load %arg5[%c384, %c0_16] : memref<640x128xbf16, #tpu.memory_space<vmem>>, vector<128x128xbf16>
    %cst_17 = arith.constant dense<0.000000e+00> : vector<24x128xf32>
    %44 = tpu.matmul %42, %43, %cst_17 {dimension_numbers = #tpu.dot_dimension_numbers<[1], [0], [0], [1], [0, 0, 1, 1], [], []>} : vector<24x128xbf16>, vector<128x128xbf16>, vector<24x128xf32> -> vector<24x128xf32>
    %45 = arith.addf %39, %44 : vector<24x128xf32>
    %46 = vector.extract_strided_slice %20 {offsets = [0, 4, 0], sizes = [2, 12, 128], strides = [1, 1, 1]} : vector<2x16x128xf32> to vector<2x12x128xf32>
    %47 = vector.shape_cast %46 : vector<2x12x128xf32> to vector<24x128xf32>
    %48 = arith.truncf %47 : vector<24x128xf32> to vector<24x128xbf16>
    %c512 = arith.constant 512 : index
    %c0_18 = arith.constant 0 : index
    %49 = vector.load %arg5[%c512, %c0_18] : memref<640x128xbf16, #tpu.memory_space<vmem>>, vector<128x128xbf16>
    %cst_19 = arith.constant dense<0.000000e+00> : vector<24x128xf32>
    %50 = tpu.matmul %48, %49, %cst_19 {dimension_numbers = #tpu.dot_dimension_numbers<[1], [0], [0], [1], [0, 0, 1, 1], [], []>} : vector<24x128xbf16>, vector<128x128xbf16>, vector<24x128xf32> -> vector<24x128xf32>
    %51 = arith.addf %45, %50 : vector<24x128xf32>
    %c0_20 = arith.constant 0 : index
    %c0_21 = arith.constant 0 : index
    %52 = vector.load %arg6[%c0_20, %c0_21] : memref<1x128xf32, #tpu.memory_space<vmem>>, vector<1x128xf32>
    %53 = vector.broadcast %52 : vector<1x128xf32> to vector<24x128xf32>
    %54 = arith.mulf %51, %53 : vector<24x128xf32>
    %c0_22 = arith.constant 0 : index
    %c0_23 = arith.constant 0 : index
    %55 = vector.load %arg7[%c0_22, %c0_23] : memref<1x128xf32, #tpu.memory_space<vmem>>, vector<1x128xf32>
    %56 = vector.broadcast %55 : vector<1x128xf32> to vector<24x128xf32>
    %57 = arith.addf %54, %56 : vector<24x128xf32>
    %cst_24 = arith.constant 0.000000e+00 : f32
    %58 = vector.broadcast %cst_24 : f32 to vector<24x128xf32>
    %59 = arith.maximumf %57, %58 : vector<24x128xf32>
    %60 = vector.shape_cast %59 : vector<24x128xf32> to vector<2x12x128xf32>
    %c0_25 = arith.constant 0 : index
    %c0_26 = arith.constant 0 : index
    %c0_27 = arith.constant 0 : index
    %61 = vector.load %arg3[%c0_25, %c0_26, %c0_27] : memref<2x12x128xi32, #tpu.memory_space<vmem>>, vector<2x12x128xi32>
    %62 = tpu.iota {dimensions = array<i32: 1>} : vector<2x12x128xi32>
    %c2_i32_28 = arith.constant 2 : i32
    %63 = vector.broadcast %c2_i32_28 : i32 to vector<2x12x128xi32>
    %64 = arith.muli %63, %62 : vector<2x12x128xi32>
    %65 = arith.cmpi eq, %61, %64 : vector<2x12x128xi32>
    %cst_29 = arith.constant 0.000000e+00 : f32
    %66 = vector.broadcast %cst_29 : f32 to vector<2x12x128xf32>
    %67 = arith.select %65, %60, %66 : vector<2x12x128xi1>, vector<2x12x128xf32>
    %c2_i32_30 = arith.constant 2 : i32
    %68 = vector.broadcast %c2_i32_30 : i32 to vector<2x12x128xi32>
    %69 = arith.muli %68, %62 : vector<2x12x128xi32>
    %c1_i32_31 = arith.constant 1 : i32
    %70 = vector.broadcast %c1_i32_31 : i32 to vector<2x12x128xi32>
    %71 = arith.addi %69, %70 : vector<2x12x128xi32>
    %72 = arith.cmpi eq, %61, %71 : vector<2x12x128xi32>
    %cst_32 = arith.constant 0.000000e+00 : f32
    %73 = vector.broadcast %cst_32 : f32 to vector<2x12x128xf32>
    %74 = arith.select %72, %60, %73 : vector<2x12x128xi1>, vector<2x12x128xf32>
    %75 = vector.shape_cast %67 : vector<2x12x128xf32> to vector<2x12x1x128xf32>
    %76 = vector.shape_cast %74 : vector<2x12x128xf32> to vector<2x12x1x128xf32>
    %77 = tpu.concatenate %75, %76 in 2 : vector<2x12x1x128xf32>, vector<2x12x1x128xf32> -> vector<2x12x2x128xf32>
    %78 = vector.shape_cast %77 : vector<2x12x2x128xf32> to vector<2x24x128xf32>
    %cst_33 = arith.constant 0.000000e+00 : f32
    %79 = vector.broadcast %cst_33 : f32 to vector<2x4x128xf32>
    %80 = tpu.concatenate %79, %78, %79 in 1 : vector<2x4x128xf32>, vector<2x24x128xf32>, vector<2x4x128xf32> -> vector<2x32x128xf32>
    %81 = vector.extract_strided_slice %80 {offsets = [0, 0, 0], sizes = [2, 28, 128], strides = [1, 1, 1]} : vector<2x32x128xf32> to vector<2x28x128xf32>
    %82 = vector.extract_strided_slice %80 {offsets = [0, 1, 0], sizes = [2, 28, 128], strides = [1, 1, 1]} : vector<2x32x128xf32> to vector<2x28x128xf32>
    %c16_i32 = arith.constant 16 : i32
    %83 = tpu.dynamic_rotate %82 by %c16_i32 dim 2 : vector<2x28x128xf32>, i32 -> vector<2x28x128xf32>
    %84 = arith.addf %81, %83 : vector<2x28x128xf32>
    %85 = vector.extract_strided_slice %80 {offsets = [0, 2, 0], sizes = [2, 28, 128], strides = [1, 1, 1]} : vector<2x32x128xf32> to vector<2x28x128xf32>
    %c32_i32 = arith.constant 32 : i32
    %86 = tpu.dynamic_rotate %85 by %c32_i32 dim 2 : vector<2x28x128xf32>, i32 -> vector<2x28x128xf32>
    %87 = arith.addf %84, %86 : vector<2x28x128xf32>
    %88 = vector.extract_strided_slice %80 {offsets = [0, 3, 0], sizes = [2, 28, 128], strides = [1, 1, 1]} : vector<2x32x128xf32> to vector<2x28x128xf32>
    %c48_i32 = arith.constant 48 : i32
    %89 = tpu.dynamic_rotate %88 by %c48_i32 dim 2 : vector<2x28x128xf32>, i32 -> vector<2x28x128xf32>
    %90 = arith.addf %87, %89 : vector<2x28x128xf32>
    %91 = vector.extract_strided_slice %80 {offsets = [0, 4, 0], sizes = [2, 28, 128], strides = [1, 1, 1]} : vector<2x32x128xf32> to vector<2x28x128xf32>
    %c64_i32 = arith.constant 64 : i32
    %92 = tpu.dynamic_rotate %91 by %c64_i32 dim 2 : vector<2x28x128xf32>, i32 -> vector<2x28x128xf32>
    %93 = arith.addf %90, %92 : vector<2x28x128xf32>
    %94 = vector.shape_cast %93 : vector<2x28x128xf32> to vector<56x128xf32>
    %95 = arith.truncf %94 : vector<56x128xf32> to vector<56x128xbf16>
    %c0_34 = arith.constant 0 : index
    %c0_35 = arith.constant 0 : index
    %96 = vector.load %arg8[%c0_34, %c0_35] : memref<128x128xbf16, #tpu.memory_space<vmem>>, vector<128x128xbf16>
    %cst_36 = arith.constant dense<0.000000e+00> : vector<56x128xf32>
    %97 = tpu.matmul %95, %96, %cst_36 {dimension_numbers = #tpu.dot_dimension_numbers<[1], [0], [0], [1], [0, 0, 1, 1], [], []>} : vector<56x128xbf16>, vector<128x128xbf16>, vector<56x128xf32> -> vector<56x128xf32>
    %c0_37 = arith.constant 0 : index
    %c0_38 = arith.constant 0 : index
    %98 = vector.load %arg9[%c0_37, %c0_38] : memref<1x128xf32, #tpu.memory_space<vmem>>, vector<1x128xf32>
    %99 = vector.broadcast %98 : vector<1x128xf32> to vector<56x128xf32>
    %100 = arith.mulf %97, %99 : vector<56x128xf32>
    %c0_39 = arith.constant 0 : index
    %c0_40 = arith.constant 0 : index
    %101 = vector.load %arg10[%c0_39, %c0_40] : memref<1x128xf32, #tpu.memory_space<vmem>>, vector<1x128xf32>
    %102 = vector.broadcast %101 : vector<1x128xf32> to vector<56x128xf32>
    %103 = arith.addf %100, %102 : vector<56x128xf32>
    %cst_41 = arith.constant 0.000000e+00 : f32
    %104 = vector.broadcast %cst_41 : f32 to vector<56x128xf32>
    %105 = arith.maximumf %103, %104 : vector<56x128xf32>
    %106 = vector.shape_cast %105 : vector<56x128xf32> to vector<2x28x128xf32>
    %c0_42 = arith.constant 0 : index
    %c0_43 = arith.constant 0 : index
    %c0_44 = arith.constant 0 : index
    %107 = vector.load %arg4[%c0_42, %c0_43, %c0_44] : memref<2x28x128xi32, #tpu.memory_space<vmem>>, vector<2x28x128xi32>
    %108 = tpu.iota {dimensions = array<i32: 1>} : vector<2x28x128xi32>
    %c2_i32_45 = arith.constant 2 : i32
    %109 = vector.broadcast %c2_i32_45 : i32 to vector<2x28x128xi32>
    %110 = arith.muli %109, %108 : vector<2x28x128xi32>
    %111 = arith.cmpi eq, %107, %110 : vector<2x28x128xi32>
    %cst_46 = arith.constant 0.000000e+00 : f32
    %112 = vector.broadcast %cst_46 : f32 to vector<2x28x128xf32>
    %113 = arith.select %111, %106, %112 : vector<2x28x128xi1>, vector<2x28x128xf32>
    %c2_i32_47 = arith.constant 2 : i32
    %114 = vector.broadcast %c2_i32_47 : i32 to vector<2x28x128xi32>
    %115 = arith.muli %114, %108 : vector<2x28x128xi32>
    %c1_i32_48 = arith.constant 1 : i32
    %116 = vector.broadcast %c1_i32_48 : i32 to vector<2x28x128xi32>
    %117 = arith.addi %115, %116 : vector<2x28x128xi32>
    %118 = arith.cmpi eq, %107, %117 : vector<2x28x128xi32>
    %cst_49 = arith.constant 0.000000e+00 : f32
    %119 = vector.broadcast %cst_49 : f32 to vector<2x28x128xf32>
    %120 = arith.select %118, %106, %119 : vector<2x28x128xi1>, vector<2x28x128xf32>
    %121 = vector.shape_cast %113 : vector<2x28x128xf32> to vector<2x28x1x128xf32>
    %122 = vector.shape_cast %120 : vector<2x28x128xf32> to vector<2x28x1x128xf32>
    %123 = tpu.concatenate %121, %122 in 2 : vector<2x28x1x128xf32>, vector<2x28x1x128xf32> -> vector<2x28x2x128xf32>
    %124 = vector.shape_cast %123 : vector<2x28x2x128xf32> to vector<2x56x128xf32>
    %cst_50 = arith.constant 0.000000e+00 : f32
    %125 = vector.broadcast %cst_50 : f32 to vector<2x4x128xf32>
    %126 = tpu.concatenate %125, %124, %125 in 1 : vector<2x4x128xf32>, vector<2x56x128xf32>, vector<2x4x128xf32> -> vector<2x64x128xf32>
    %127 = vector.extract_strided_slice %126 {offsets = [0, 0, 0], sizes = [2, 60, 128], strides = [1, 1, 1]} : vector<2x64x128xf32> to vector<2x60x128xf32>
    %128 = vector.extract_strided_slice %126 {offsets = [0, 1, 0], sizes = [2, 60, 128], strides = [1, 1, 1]} : vector<2x64x128xf32> to vector<2x60x128xf32>
    %c16_i32_51 = arith.constant 16 : i32
    %129 = tpu.dynamic_rotate %128 by %c16_i32_51 dim 2 : vector<2x60x128xf32>, i32 -> vector<2x60x128xf32>
    %130 = arith.addf %127, %129 : vector<2x60x128xf32>
    %131 = vector.extract_strided_slice %126 {offsets = [0, 2, 0], sizes = [2, 60, 128], strides = [1, 1, 1]} : vector<2x64x128xf32> to vector<2x60x128xf32>
    %c32_i32_52 = arith.constant 32 : i32
    %132 = tpu.dynamic_rotate %131 by %c32_i32_52 dim 2 : vector<2x60x128xf32>, i32 -> vector<2x60x128xf32>
    %133 = arith.addf %130, %132 : vector<2x60x128xf32>
    %134 = vector.extract_strided_slice %126 {offsets = [0, 3, 0], sizes = [2, 60, 128], strides = [1, 1, 1]} : vector<2x64x128xf32> to vector<2x60x128xf32>
    %c48_i32_53 = arith.constant 48 : i32
    %135 = tpu.dynamic_rotate %134 by %c48_i32_53 dim 2 : vector<2x60x128xf32>, i32 -> vector<2x60x128xf32>
    %136 = arith.addf %133, %135 : vector<2x60x128xf32>
    %137 = vector.extract_strided_slice %126 {offsets = [0, 4, 0], sizes = [2, 60, 128], strides = [1, 1, 1]} : vector<2x64x128xf32> to vector<2x60x128xf32>
    %c64_i32_54 = arith.constant 64 : i32
    %138 = tpu.dynamic_rotate %137 by %c64_i32_54 dim 2 : vector<2x60x128xf32>, i32 -> vector<2x60x128xf32>
    %139 = arith.addf %136, %138 : vector<2x60x128xf32>
    %140 = vector.shape_cast %139 : vector<2x60x128xf32> to vector<120x128xf32>
    %141 = arith.truncf %140 : vector<120x128xf32> to vector<120x128xbf16>
    %c0_55 = arith.constant 0 : index
    %c0_56 = arith.constant 0 : index
    %142 = vector.load %arg11[%c0_55, %c0_56] : memref<128x128xbf16, #tpu.memory_space<vmem>>, vector<128x128xbf16>
    %cst_57 = arith.constant dense<0.000000e+00> : vector<120x128xf32>
    %143 = tpu.matmul %141, %142, %cst_57 {dimension_numbers = #tpu.dot_dimension_numbers<[1], [0], [0], [1], [0, 0, 1, 1], [], []>} : vector<120x128xbf16>, vector<128x128xbf16>, vector<120x128xf32> -> vector<120x128xf32>
    %c0_58 = arith.constant 0 : index
    %c0_59 = arith.constant 0 : index
    %144 = vector.load %arg12[%c0_58, %c0_59] : memref<1x128xf32, #tpu.memory_space<vmem>>, vector<1x128xf32>
    %145 = vector.broadcast %144 : vector<1x128xf32> to vector<120x128xf32>
    %146 = arith.mulf %143, %145 : vector<120x128xf32>
    %c0_60 = arith.constant 0 : index
    %c0_61 = arith.constant 0 : index
    %147 = vector.load %arg13[%c0_60, %c0_61] : memref<1x128xf32, #tpu.memory_space<vmem>>, vector<1x128xf32>
    %148 = vector.broadcast %147 : vector<1x128xf32> to vector<120x128xf32>
    %149 = arith.addf %146, %148 : vector<120x128xf32>
    %cst_62 = arith.constant 0.000000e+00 : f32
    %150 = vector.broadcast %cst_62 : f32 to vector<120x128xf32>
    %151 = arith.maximumf %149, %150 : vector<120x128xf32>
    %152 = vector.shape_cast %151 : vector<120x128xf32> to vector<2x60x128xf32>
    %cst_63 = arith.constant 0.000000e+00 : f32
    %153 = vector.broadcast %cst_63 : f32 to vector<2x4x128xf32>
    %154 = tpu.concatenate %152, %153 in 1 : vector<2x60x128xf32>, vector<2x4x128xf32> -> vector<2x64x128xf32>
    %c0_64 = arith.constant 0 : index
    %c0_65 = arith.constant 0 : index
    %c0_66 = arith.constant 0 : index
    %155 = vector.load %arg14[%c0_64, %c0_65, %c0_66] : memref<2x64x128xf32, #tpu.memory_space<vmem>>, vector<2x64x128xf32>
    tpu.vector_store %arg14[%c0_64, %c0_65, %c0_66], %154 {strides = array<i32>} : memref<2x64x128xf32, #tpu.memory_space<vmem>>, vector<2x64x128xf32>,
    return
  }
  func.func @transform_0(%arg0: i32) -> (i32, i32, i32) {
    %c0_i32 = arith.constant 0 : i32
    %c0_i32_0 = arith.constant 0 : i32
    %c0_i32_1 = arith.constant 0 : i32
    return %arg0, %c0_i32, %c0_i32_0 : i32, i32, i32
  }
  func.func @transform_1(%arg0: i32) -> (i32, i32, i32) {
    %c0_i32 = arith.constant 0 : i32
    %c0_i32_0 = arith.constant 0 : i32
    %c0_i32_1 = arith.constant 0 : i32
    return %arg0, %c0_i32, %c0_i32_0 : i32, i32, i32
  }
  func.func @transform_2(%arg0: i32) -> (i32, i32, i32) {
    %c0_i32 = arith.constant 0 : i32
    %c0_i32_0 = arith.constant 0 : i32
    %c0_i32_1 = arith.constant 0 : i32
    return %arg0, %c0_i32, %c0_i32_0 : i32, i32, i32
  }
  func.func @transform_3(%arg0: i32) -> (i32, i32, i32) {
    %c0_i32 = arith.constant 0 : i32
    %c0_i32_0 = arith.constant 0 : i32
    %c0_i32_1 = arith.constant 0 : i32
    return %arg0, %c0_i32, %c0_i32_0 : i32, i32, i32
  }
  func.func @transform_4(%arg0: i32) -> (i32, i32) {
    %c0_i32 = arith.constant 0 : i32
    %c0_i32_0 = arith.constant 0 : i32
    %c0_i32_1 = arith.constant 0 : i32
    return %c0_i32, %c0_i32_0 : i32, i32
  }
  func.func @transform_5(%arg0: i32) -> (i32, i32) {
    %c0_i32 = arith.constant 0 : i32
    %c0_i32_0 = arith.constant 0 : i32
    %c0_i32_1 = arith.constant 0 : i32
    return %c0_i32, %c0_i32_0 : i32, i32
  }
  func.func @transform_6(%arg0: i32) -> (i32, i32) {
    %c0_i32 = arith.constant 0 : i32
    %c0_i32_0 = arith.constant 0 : i32
    %c0_i32_1 = arith.constant 0 : i32
    return %c0_i32, %c0_i32_0 : i32, i32
  }
  func.func @transform_7(%arg0: i32) -> (i32, i32) {
    %c0_i32 = arith.constant 0 : i32
    %c0_i32_0 = arith.constant 0 : i32
    %c0_i32_1 = arith.constant 0 : i32
    return %c0_i32, %c0_i32_0 : i32, i32
  }
  func.func @transform_8(%arg0: i32) -> (i32, i32) {
    %c0_i32 = arith.constant 0 : i32
    %c0_i32_0 = arith.constant 0 : i32
    %c0_i32_1 = arith.constant 0 : i32
    return %c0_i32, %c0_i32_0 : i32, i32
  }
  func.func @transform_9(%arg0: i32) -> (i32, i32) {
    %c0_i32 = arith.constant 0 : i32
    %c0_i32_0 = arith.constant 0 : i32
    %c0_i32_1 = arith.constant 0 : i32
    return %c0_i32, %c0_i32_0 : i32, i32
  }
  func.func @transform_10(%arg0: i32) -> (i32, i32) {
    %c0_i32 = arith.constant 0 : i32
    %c0_i32_0 = arith.constant 0 : i32
    %c0_i32_1 = arith.constant 0 : i32
    return %c0_i32, %c0_i32_0 : i32, i32
  }
  func.func @transform_11(%arg0: i32) -> (i32, i32) {
    %c0_i32 = arith.constant 0 : i32
    %c0_i32_0 = arith.constant 0 : i32
    %c0_i32_1 = arith.constant 0 : i32
    return %c0_i32, %c0_i32_0 : i32, i32
  }
  func.func @transform_12(%arg0: i32) -> (i32, i32) {
    %c0_i32 = arith.constant 0 : i32
    %c0_i32_0 = arith.constant 0 : i32
    %c0_i32_1 = arith.constant 0 : i32
    return %c0_i32, %c0_i32_0 : i32, i32
  }
  func.func @transform_13(%arg0: i32) -> (i32, i32, i32) {
    %c0_i32 = arith.constant 0 : i32
    %c0_i32_0 = arith.constant 0 : i32
    %c0_i32_1 = arith.constant 0 : i32
    return %arg0, %c0_i32, %c0_i32_0 : i32, i32, i32
  }
}

</mosaic_0001>

<bundles_post_ra>
// kernel: _lambda_.1
= control target key start
LH: loop header
LB: loop body
LE: loop exit
PB: predicated region body
PF: predicated region fallthrough
CT: control target
= control target key end

     0   :  { %18 = vsyncpa [#allocation3], 0  ;;  %s3145_s28 = smov [#allocation2]   ;;  %s3146_s30 = smov 64   ;;  %s4399_s0 = inlined_call_operand.vmem [shape: f32[2,4,128], index: 0, kind: input, shape index: {}]   ;;  %s4400_s1 = inlined_call_operand.vmem [shape: s32[2,4,128], index: 1, kind: input, shape index: {}]   ;;  %s4401_s2 = inlined_call_operand.vmem [shape: s32[2,12,128], index: 2, kind: input, shape index: {}]   ;;  %s4402_s3 = inlined_call_operand.vmem [shape: s32[2,28,128], index: 3, kind: input, shape index: {}]   ;;  %s4403_s4 = inlined_call_operand.hbm [shape: bf16[640,128], index: 4, kind: input, shape index: {}]   ;;  %s4404_s5 = inlined_call_operand.vmem [shape: f32[1,128], index: 5, kind: input, shape index: {}]   ;;  %s4405_s6 = inlined_call_operand.vmem [shape: f32[1,128], index: 6, kind: input, shape index: {}]   ;;  %s4406_s7 = inlined_call_operand.vmem [shape: bf16[128,128], index: 7, kind: input, shape index: {}]   ;;  %s4407_s8 = inlined_call_operand.vmem [shape: f32[1,128], index: 8, kind: input, shape index: {}]   ;;  %s4408_s9 = inlined_call_operand.vmem [shape: f32[1,128], index: 9, kind: input, shape index: {}]   ;;  %s4409_s10 = inlined_call_operand.vmem [shape: bf16[128,128], index: 10, kind: input, shape index: {}]   ;;  %s4410_s11 = inlined_call_operand.vmem [shape: f32[1,128], index: 11, kind: input, shape index: {}]   ;;  %s4411_s12 = inlined_call_operand.vmem [shape: f32[1,128], index: 12, kind: input, shape index: {}]   ;;  %s4412_s13 = inlined_call_operand.vmem [shape: f32[2,64,128], index: 13, kind: output, shape index: {}]  }
   0x1   :  { %s31_s27 = sshll.u32 %s4403_s4, 4  ;;  %s33_s29 = sshll.u32 %s3145_s28, 4  ;;  %s32_s27 = int_to_ptr.hbm [resolvable:$true] %s31_s27  ;;  %s34_s29 = int_to_ptr.vmem [resolvable:$true] %s33_s29 }
   0x2   :  { %s3147_s14 = smov 4  }
   0x3   :  { %39 = dma.hbm_to_vmem [thread:$0]  %s32_s27, 5120, %s34_s29, [#allocation3], %s3146_s30, %s3146_s30, %s3147_s14  }
   0x4   :  { %3143 = dma.done.wait [#allocation3], 5120  }
   0x5   :  { %3144 = vsyncadd [#allocation3], 4294962176  ;;  %v64_v0 = vlaneseq  ;;  %v3058_v2 = vld [vmem:[#allocation2 + $0x78] sm:$0xff]  ;;  %v3057_v4 = vld [vmem:[#allocation2 + $0x70] sm:$0xff]  ;;  %vm114_vm3 = vcmask 1040384   ;;  %vm151_vm5 = vcmask 1043456  }
   0x6   :  { %v3050_v3 = vld [vmem:[#allocation2 + $0x38] sm:$0xff]  ;;  %305 = vmatpush.bf16.msra.mxu0 %v3058_v2  ;;  %v3049_v5 = vld [vmem:[#allocation2 + $0x30] sm:$0xff]  ;;  %v3056_v10 = vld [vmem:[#allocation2 + $0x68] sm:$0xff]  ;;  %vm199_vm6 = vcmask 1042432   ;;  %vm200_vm7 = vcmask 1046532   ;;  %vm389_vm9 = vcmask 1041408  }
   0x7   :  { %v3226_v1 = vshrl.u32 %v64_v0, 7  ;;  %371 = vmatpush.bf16.msra.mxu1 %v3050_v3  ;;  %v3066_v6 = vld [vmem:[#allocation2 + $0xb8] sm:$0xff]  ;;  %v3065_v8 = vld [vmem:[#allocation2 + $0xb0] sm:$0xff]  ;;  %v3048_v11 = vld [vmem:[#allocation2 + $0x28] sm:$0xff]  ;;  %vm390_vm10 = vcmask 1045508   ;;  %vm516_vm12 = vcmask 1044484  }
   0x8   :  { %495 = vmatpush.bf16.msra.mxu2 %v3066_v6  ;;  %v3074_v9 = vld [vmem:[#allocation2 + $0xf8] sm:$0xff]  ;;  %v3073_v13 = vld [vmem:[#allocation2 + $0xf0] sm:$0xff]  ;;  %v3055_v14 = vld [vmem:[#allocation2 + $0x60] sm:$0xff]  ;;  %s3149_s14 = smov 32   ;;  %s3150_s4 = smov 16  }
   0x9   :  { %v3229_v7 = vmul.u32 2, %v3226_v1  ;;  %621 = vmatpush.bf16.msra.mxu3 %v3074_v9  ;;  %v3047_v15 = vld [vmem:[#allocation2 + $0x20] sm:$0xff]  ;;  %v3064_v16 = vld [vmem:[#allocation2 + $0xa8] sm:$0xff]  ;;  %v60_v17 = vld [vmem:[%s4399_s0] sm:$0xf] }
   0xa   :  { %306 = vmatpush.bf16.msra.mxu0 %v3057_v4  ;;  %v61_v18 = vld [vmem:[%s4399_s0 + $0x4] sm:$0xf]  ;;  %v62_v19 = vld [vmem:[%s4400_s1] sm:$0xf]  ;;  %v3072_v21 = vld [vmem:[#allocation2 + $0xe8] sm:$0xff] }
   0xb   :  { %372 = vmatpush.bf16.msra.mxu1 %v3049_v5  ;;  %v3232_v12 = vadd.s32 1, %v3229_v7  ;;  %v63_v20 = vld [vmem:[%s4400_s1 + $0x4] sm:$0xf]  ;;  %vm67_vm0 = vcmp.eq.s32.totalorder %v62_v19, %v3229_v7  ;;  %v3063_v24 = vld [vmem:[#allocation2 + $0xa0] sm:$0xff]  ;;  %v3053_v43 = vld [vmem:[#allocation2 + $0x50] sm:$0xff] }
   0xc   :  { %496 = vmatpush.bf16.msra.mxu2 %v3065_v8  ;;  %v69_v22 = vsel %vm67_vm0, %v60_v17, 0.0  ;;  %v3054_v28 = vld [vmem:[#allocation2 + $0x58] sm:$0xff]  ;;  %v3071_v34 = vld [vmem:[#allocation2 + $0xe0] sm:$0xff]  ;;  %vm68_vm4 = vcmp.eq.s32.totalorder %v63_v20, %v3229_v7  ;;  %v3045_v44 = vld [vmem:[#allocation2 + $0x10] sm:$0xff] }
   0xd   :  { %vm72_vm1 = vcmp.eq.s32.totalorder %v62_v19, %v3232_v12  ;;  %622 = vmatpush.bf16.msra.mxu3 %v3073_v13  ;;  %vm73_vm2 = vcmp.eq.s32.totalorder %v63_v20, %v3232_v12  ;;  %v78_v26 = vrot.slane %v69_v22, 1  ;;  %v3046_v29 = vld [vmem:[#allocation2 + $0x18] sm:$0xff]  ;;  %v79_v30 = vrot.slane %v69_v22, 2  ;;  %v3061_v50 = vld [vmem:[#allocation2 + $0x90] sm:$0xff]  ;;  %v3052_v54 = vld [vmem:[#allocation2 + $0x48] sm:$0xff] }
   0xe   :  { %307 = vmatpush.bf16.msra.mxu0 %v3056_v10  ;;  %v74_v23 = vsel %vm72_vm1, %v60_v17, 0.0  ;;  %v75_v25 = vsel %vm73_vm2, %v61_v18, 0.0  ;;  %v80_v31 = vrot.slane %v69_v22, 3  ;;  %v3062_v37 = vld [vmem:[#allocation2 + $0x98] sm:$0xff]  ;;  %v70_v45 = vsel %vm68_vm4, %v61_v18, 0.0  ;;  %v3044_v55 = vld [vmem:[#allocation2 + $0x8] sm:$0xff]  ;;  %vm3288_vm8 = vmor %vm199_vm6, %vm200_vm7 }
   0xf   :  { %373 = vmatpush.bf16.msra.mxu1 %v3048_v11  ;;  %v92_v27 = vrot.slane %v74_v23, 1  ;;  %v93_v32 = vrot.slane %v74_v23, 2  ;;  %v94_v33 = vrot.slane %v74_v23, 3  ;;  %v98_v35 = vperm.slane %v74_v23, 0  ;;  %v3051_v62 = vld [vmem:[#allocation2 + $0x40] sm:$0xff]  ;;  %v3060_v9 = vld [vmem:[#allocation2 + $0x88] sm:$0xff]  ;;  %vm3314_vm11 = vmor %vm389_vm9, %vm390_vm10 }
  0x10   :  { %497 = vmatpush.bf16.msra.mxu2 %v3064_v16  ;;  %v95_v40 = vrot.slane %v75_v25, 1  ;;  %v96_v46 = vrot.slane %v75_v25, 2  ;;  %v97_v49 = vrot.slane %v75_v25, 3  ;;  %v102_v51 = vperm.slane %v75_v25, 0  ;;  %v3043_v63 = vld [vmem:[#allocation2] sm:$0xff]  ;;  %v3070_v10 = vld [vmem:[#allocation2 + $0xd8] sm:$0xff]  ;;  %vm3341_vm13 = vmor %vm114_vm3, %vm516_vm12 }
  0x11   :  { %623 = vmatpush.bf16.msra.mxu3 %v3072_v21  ;;  %v99_v36 = vperm.slane %v92_v27, 0  ;;  %v100_v38 = vperm.slane %v93_v32, 0  ;;  %v101_v39 = vperm.slane %v94_v33, 0  ;;  %v115_v41 = vsel %vm114_vm3, %v69_v22, %v98_v35  ;;  %v3059_v18 = vld [vmem:[#allocation2 + $0x80] sm:$0xff]  ;;  %v3069_v19 = vld [vmem:[#allocation2 + $0xd0] sm:$0xff]  ;;  %v3080_v33 = vld [vmem:[#allocation2 + $0x128] sm:$0xff] }
  0x12   :  { %308 = vmatpush.bf16.msra.mxu0 %v3055_v14  ;;  %132 = vst [vmem:[#allocation1 + $0x2] ss:$4 sm:$0xff] %v115_v41  ;;  %v81_v52 = vrot.slane %v70_v45, 1  ;;  %v103_v53 = vperm.slane %v95_v40, 0  ;;  %v82_v56 = vrot.slane %v70_v45, 2  ;;  %v104_v57 = vperm.slane %v96_v46, 0 }
  0x13   :  { %374 = vmatpush.bf16.msra.mxu1 %v3047_v15  ;;  %v116_v42 = vsel %vm114_vm3, %v78_v26, %v99_v36  ;;  %v117_v47 = vsel %vm114_vm3, %v79_v30, %v100_v38  ;;  %v118_v48 = vsel %vm114_vm3, %v80_v31, %v101_v39  ;;  %v83_v58 = vrot.slane %v70_v45, 3  ;;  %v3082_v15 = vld [vmem:[#allocation2 + $0x138] sm:$0xff]  ;;  %v3068_v30 = vld [vmem:[#allocation2 + $0xc8] sm:$0xff]  ;;  %v3067_v40 = vld [vmem:[#allocation2 + $0xc0] sm:$0xff] }
  0x14   :  { %498 = vmatpush.bf16.msra.mxu2 %v3063_v24  ;;  %134 = vst [vmem:[#allocation1 + $0x3] ss:$4 sm:$0xff] %v116_v42  ;;  %v105_v59 = vperm.slane %v97_v49, 0  ;;  %v119_v60 = vsel %vm114_vm3, %v70_v45, %v102_v51  ;;  %v120_v61 = vsel %vm114_vm3, %v81_v52, %v103_v53  ;;  %v121_v0 = vsel %vm114_vm3, %v82_v56, %v104_v57  ;;  %v3079_v45 = vld [vmem:[#allocation2 + $0x120] sm:$0xff] }
  0x15   :  { %624 = vmatpush.bf16.msra.mxu3 %v3071_v34  ;;  %136 = vst [vmem:[#allocation1 + $0x20] ss:$4 sm:$0xff] %v117_v47  ;;  %vm1112_vm9 = vcmask 1045504   ;;  %vm1065_vm10 = vcmask 1046528  }
  0x16   :  { %309 = vmatpush.bf16.msra.mxu0 %v3054_v28  ;;  %138 = vst [vmem:[#allocation1 + $0x21] ss:$4 sm:$0xff] %v118_v48  ;;  %v122_v3 = vsel %vm114_vm3, %v83_v58, %v105_v59  ;;  %v3078_v59 = vld [vmem:[#allocation2 + $0x118] sm:$0xff] }
  0x17   :  { %375 = vmatpush.bf16.msra.mxu1 %v3046_v29  ;;  %v3081_v29 = vld [vmem:[#allocation2 + $0x130] sm:$0xff] }
  0x18   :  { %499 = vmatpush.bf16.msra.mxu2 %v3062_v37 }
  0x19   :  { %625 = vmatpush.bf16.msra.mxu3 %v3070_v10 }
  0x1a   :  { %310 = vmatpush.bf16.msra.mxu0 %v3053_v43 }
  0x1b   :  { %376 = vmatpush.bf16.msra.mxu1 %v3045_v44  ;;  %v139_v2 = vld.sshfl [vmem:[#allocation1] sm:$0xff pattern:$0x73625140] }
  0x1c   :  { %500 = vmatpush.bf16.msra.mxu2 %v3061_v50  ;;  %141 = vst [vmem:[#allocation1 + $0x2] ss:$4 sm:$0xff] %v119_v60  ;;  %v3262_v6 = vsel %vm151_vm5, 0.0, %v139_v2 }
  0x1d   :  { %v140_v4 = vld.sshfl [vmem:[#allocation1 + $0x20] sm:$0xff pattern:$0x73625140]  ;;  %142 = vst [vmem:[#allocation1 + $0x3] ss:$4 sm:$0xff] %v120_v61  ;;  %v3266_v8 = vrot.slane %v3262_v6, 4  ;;  %626 = vmatpush.bf16.msra.mxu3 %v3069_v19 }
  0x1e   :  { %311 = vmatpush.bf16.msra.mxu0 %v3052_v54  ;;  %143 = vst [vmem:[#allocation1 + $0x20] ss:$4 sm:$0xff] %v121_v0  ;;  %v3259_v5 = vsel %vm151_vm5, %v140_v4, 0.0  ;;  %v2813_v23 = vrot.slane %v3262_v6, 9  ;;  %v2879_v47 = vrot.slane %v3262_v6, 10 }
  0x1f   :  { %377 = vmatpush.bf16.msra.mxu1 %v3044_v55  ;;  %144 = vst [vmem:[#allocation1 + $0x21] ss:$4 sm:$0xff] %v122_v3  ;;  %v3269_v13 = vrot.slane %v3259_v5, 4  ;;  %v204_v14 = vrot.slane %v3266_v8, 5  ;;  %v207_v17 = vrot.slane %v3259_v5, 5  ;;  %v394_v39 = vrot.slane %v3266_v8, 6 }
  0x20   :  { %166 = vst [vmem:[#allocation1 + $0x10] ss:$2 sm:$0xff] %v3259_v5  ;;  %501 = vmatpush.bf16.msra.mxu2 %v3060_v9  ;;  %v397_v43 = vrot.slane %v3259_v5, 6  ;;  %v520_v4 = vrot.slane %v3266_v8, 7  ;;  %v523_v9 = vrot.slane %v3259_v5, 7 }
  0x21   :  { %v206_v25 = vrot.slane %v204_v14, 4  ;;  %v209_v27 = vrot.slane %v207_v17, 4  ;;  %v210_v28 = vrot.slane %v3269_v13, 5  ;;  %v205_v32 = vsel %vm3288_vm8, %v2813_v23, %v204_v14  ;;  %627 = vmatpush.bf16.msra.mxu3 %v3068_v30 }
  0x22   :  { %312 = vmatpush.bf16.msra.mxu0 %v3051_v62  ;;  %v396_v50 = vrot.slane %v394_v39, 4  ;;  %v399_v53 = vrot.slane %v397_v43, 4  ;;  %v400_v54 = vrot.slane %v3269_v13, 6  ;;  %v395_v60 = vsel %vm3314_vm11, %v2879_v47, %v394_v39 }
  0x23   :  { %378 = vmatpush.bf16.msra.mxu1 %v3043_v63  ;;  %v208_v34 = vsel %vm3288_vm8, %v206_v25, %v207_v17  ;;  %v211_v37 = vsel %vm3288_vm8, %v209_v27, %v210_v28  ;;  %v522_v19 = vrot.slane %v520_v4, 4  ;;  %v526_v23 = vrot.slane %v3269_v13, 7 }
  0x24   :  { %v145_v11 = vld.sshfl [vmem:[#allocation1] sm:$0xff pattern:$0x73625140]  ;;  %502 = vmatpush.bf16.msra.mxu2 %v3059_v18  ;;  %v398_v61 = vsel %vm3314_vm11, %v396_v50, %v397_v43  ;;  %v401_v2 = vsel %vm3314_vm11, %v399_v53, %v400_v54  ;;  %v2913_v18 = vrot.slane %v3262_v6, 11 }
  0x25   :  { %v3273_v16 = vsel %vm151_vm5, 0.0, %v145_v11  ;;  %162 = vst [vmem:[#allocation1] ss:$2 sm:$0xff] %v3262_v6  ;;  %628 = vmatpush.bf16.msra.mxu3 %v3067_v40  ;;  %v524_v13 = vsel %vm3341_vm13, %v522_v19, %v523_v9 }
  0x26   :  { %v146_v20 = vld.sshfl [vmem:[#allocation1 + $0x20] sm:$0xff pattern:$0x73625140]  ;;  %v3278_v21 = vrot.slane %v3273_v16, 4  ;;  %164 = vst [vmem:[#allocation1 + $0x1] ss:$2 sm:$0xff] %v3266_v8  ;;  %741 = vmatpush.bf16.msrb.mxu0 %v3082_v15  ;;  %v521_v30 = vsel %vm3341_vm13, %v2913_v18, %v520_v4 }
  0x27   :  { %v3282_v22 = vsel %vm151_vm5, %v146_v20, 0.0  ;;  %168 = vst [vmem:[#allocation1 + $0x11] ss:$2 sm:$0xff] %v3273_v16  ;;  %v2814_v31 = vrot.slane %v3273_v16, 9  ;;  %v2880_v55 = vrot.slane %v3273_v16, 10  ;;  %v3077_v15 = vld [vmem:[#allocation2 + $0x110] sm:$0xff] }
  0x28   :  { %v214_v26 = vrot.slane %v3278_v21, 5  ;;  %651 = vst.sshfl [vmem:[#allocation1 + $0x30] sm:$0xff pattern:$0x75316420] %v3282_v22  ;;  %v217_v38 = vrot.slane %v3282_v22, 5  ;;  %v404_v51 = vrot.slane %v3278_v21, 6 }
  0x29   :  { %170 = vst [vmem:[#allocation1 + $0x20] ss:$2 sm:$0xff] %v3278_v21  ;;  %v3320_v52 = vrot.slane %v3282_v22, 4  ;;  %v407_v58 = vrot.slane %v3282_v22, 6  ;;  %v525_v20 = vrot.slane %v523_v9, 4  ;;  %v2914_v25 = vrot.slane %v3273_v16, 11 }
  0x2a   :  { %172 = vst [vmem:[#allocation1 + $0x21] ss:$2 sm:$0xff] %v3282_v22  ;;  %742 = vmatpush.bf16.msrb.mxu0 %v3081_v29  ;;  %v216_v35 = vrot.slane %v214_v26, 4  ;;  %v215_v42 = vsel %vm3288_vm8, %v2814_v31, %v214_v26  ;;  %v219_v48 = vrot.slane %v217_v38, 4  ;;  %v406_v62 = vrot.slane %v404_v51, 4  ;;  %v3076_v29 = vld [vmem:[#allocation2 + $0x108] sm:$0xff] }
  0x2b   :  { %v220_v57 = vrot.slane %v3320_v52, 5  ;;  %v405_v3 = vsel %vm3314_vm11, %v2880_v55, %v404_v51  ;;  %v409_v10 = vrot.slane %v407_v58, 4  ;;  %v410_v11 = vrot.slane %v3320_v52, 6  ;;  %v3113_v18 = vld [vmem:[%s4404_s5] ss:$0 sm:$0xff] }
  0x2c   :  { %v218_v46 = vsel %vm3288_vm8, %v216_v35, %v217_v38  ;;  %v408_v24 = vsel %vm3314_vm11, %v406_v62, %v407_v58  ;;  %v530_v26 = vrot.slane %v3278_v21, 7  ;;  %v533_v27 = vrot.slane %v3282_v22, 7 }
  0x2d   :  { %v173_v36 = vld.sshfl [vmem:[#allocation1] sm:$0xff pattern:$0x75316420]  ;;  %v221_v63 = vsel %vm3288_vm8, %v219_v48, %v220_v57  ;;  %v411_v28 = vsel %vm3314_vm11, %v409_v10, %v410_v11  ;;  %v527_v21 = vsel %vm3341_vm13, %v525_v20, %v526_v23  ;;  %v536_v38 = vrot.slane %v3320_v52, 7 }
  0x2e   :  { %v174_v41 = vld.sshfl [vmem:[#allocation1 + $0x10] sm:$0xff pattern:$0x75316420]  ;;  %222 = vst [vmem:[#allocation1] ss:$2 sm:$0xff] %v205_v32  ;;  %743 = vmatpush.bf16.msrb.mxu0 %v3080_v33  ;;  %v531_v22 = vsel %vm3341_vm13, %v2914_v25, %v530_v26  ;;  %v535_v35 = vrot.slane %v533_v27, 4 }
  0x2f   :  { %224 = vst [vmem:[#allocation1 + $0x1] ss:$2 sm:$0xff] %v208_v34  ;;  %v179_v44 = vpack.c.bf16 %v174_v41, %v173_v36  ;;  %v532_v34 = vrot.slane %v530_v26, 4  ;;  %v3075_v36 = vld [vmem:[#allocation2 + $0x100] sm:$0xff]  ;;  %v655_v47 = vld [vmem:[#allocation1 + $0x30] ss:$2 sm:$0xff] }
  0x30   :  { %226 = vst [vmem:[#allocation1 + $0x10] ss:$2 sm:$0xff] %v211_v37  ;;  %v537_v41 = vsel %vm3341_vm13, %v535_v35, %v536_v38  ;;  %v3114_v23 = vld [vmem:[%s4405_s6] ss:$0 sm:$0xff]  ;;  %vm1159_vm8 = vcmask 1044480  }
  0x31   :  { %228 = vst [vmem:[#allocation1 + $0x11] ss:$2 sm:$0xff] %v215_v42  ;;  %379 = vmatmul.bf16.vlgmr.msra.gmra.mxu1 %v179_v44  ;;  %v175_v56 = vld.sshfl [vmem:[#allocation1 + $0x20] sm:$0xff pattern:$0x75316420]  ;;  %v534_v40 = vsel %vm3341_vm13, %v532_v34, %v533_v27 }
  0x32   :  { %744 = vmatpush.bf16.msrb.mxu0 %v3079_v45  ;;  %230 = vst [vmem:[#allocation1 + $0x20] ss:$2 sm:$0xff] %v218_v46  ;;  %v180_v32 = vpack.c.bf16 %v175_v56, %v175_v56 }
  0x33   :  { %232 = vst [vmem:[#allocation1 + $0x21] ss:$2 sm:$0xff] %v221_v63 }
  0x36   :  { %v233_v0 = vld.sshfl [vmem:[#allocation1] sm:$0xff pattern:$0x75316420]  ;;  %745 = vmatpush.bf16.msrb.mxu0 %v3078_v59 }
  0x37   :  { %412 = vst [vmem:[#allocation1] ss:$2 sm:$0xff] %v395_v60 }
  0x38   :  { %v234_v14 = vld.sshfl [vmem:[#allocation1 + $0x10] sm:$0xff pattern:$0x75316420]  ;;  %414 = vst [vmem:[#allocation1 + $0x1] ss:$2 sm:$0xff] %v398_v61 }
  0x39   :  { %v239_v17 = vpack.c.bf16 %v234_v14, %v233_v0  ;;  %416 = vst [vmem:[#allocation1 + $0x10] ss:$2 sm:$0xff] %v401_v2 }
  0x3a   :  { %418 = vst [vmem:[#allocation1 + $0x11] ss:$2 sm:$0xff] %v405_v3  ;;  %746 = vmatpush.bf16.msrb.mxu0 %v3077_v15  ;;  %v235_v31 = vld.sshfl [vmem:[#allocation1 + $0x20] sm:$0xff pattern:$0x75316420] }
  0x3b   :  { %313 = vmatmul.bf16.vlgmr.msra.gmra.mxu0 %v239_v17  ;;  %420 = vst [vmem:[#allocation1 + $0x20] ss:$2 sm:$0xff] %v408_v24  ;;  %v240_v43 = vpack.c.bf16 %v235_v31, %v235_v31 }
  0x3c   :  { %422 = vst [vmem:[#allocation1 + $0x21] ss:$2 sm:$0xff] %v411_v28 }
  0x3e   :  { %747 = vmatpush.bf16.msrb.mxu0 %v3076_v29 }
  0x3f   :  { %v423_v33 = vld.sshfl [vmem:[#allocation1] sm:$0xff pattern:$0x75316420] }
  0x40   :  { %538 = vst [vmem:[#allocation1] ss:$2 sm:$0xff] %v521_v30 }
  0x41   :  { %v424_v37 = vld.sshfl [vmem:[#allocation1 + $0x10] sm:$0xff pattern:$0x75316420]  ;;  %540 = vst [vmem:[#allocation1 + $0x1] ss:$2 sm:$0xff] %v524_v13  ;;  %384 = vmatmul.bf16.gmra.mxu1 %v180_v32 }
  0x42   :  { %v429_v39 = vpack.c.bf16 %v424_v37, %v423_v33  ;;  %542 = vst [vmem:[#allocation1 + $0x10] ss:$2 sm:$0xff] %v527_v21  ;;  %748 = vmatpush.bf16.msrb.mxu0 %v3075_v36 }
  0x43   :  { %544 = vst [vmem:[#allocation1 + $0x11] ss:$2 sm:$0xff] %v531_v22  ;;  %v425_v42 = vld.sshfl [vmem:[#allocation1 + $0x20] sm:$0xff pattern:$0x75316420] }
  0x44   :  { %503 = vmatmul.bf16.vlgmr.msra.gmra.mxu2 %v429_v39  ;;  %546 = vst [vmem:[#allocation1 + $0x20] ss:$2 sm:$0xff] %v534_v40  ;;  %v430_v50 = vpack.c.bf16 %v425_v42, %v425_v42  ;;  %v785_v39 = vld [vmem:[%s4401_s2] sm:$0xff]  ;;  %v789_v40 = vadd.s32 8, %v3226_v1 }
  0x45   :  { %548 = vst [vmem:[#allocation1 + $0x21] ss:$2 sm:$0xff] %v537_v41  ;;  %vm791_vm14 = vcmp.eq.s32.totalorder %v785_v39, %v3229_v7  ;;  %vm819_vm15 = vcmp.eq.s32.totalorder %v785_v39, %v3232_v12 }
  0x48   :  { %v549_v44 = vld.sshfl [vmem:[#allocation1] sm:$0xff pattern:$0x75316420] }
  0x49   :  { %642 = vst.sshfl [vmem:[#allocation1] sm:$0xff pattern:$0x75316420] %v3262_v6  ;;  %v657_v6 = vld [vmem:[#allocation1 + $0x31] ss:$2 sm:$0xff] }
  0x4a   :  { %v550_v45 = vld.sshfl [vmem:[#allocation1 + $0x10] sm:$0xff pattern:$0x75316420] }
  0x4b   :  { %318 = vmatmul.bf16.gmra.mxu0 %v240_v43  ;;  %v555_v46 = vpack.c.bf16 %v550_v45, %v549_v44  ;;  %643 = vst.sshfl [vmem:[#allocation1 + $0x10] sm:$0xff pattern:$0x75316420] %v3259_v5  ;;  %v3380_v45 = vmul.u32 2, %v789_v40 }
  0x4c   :  { %v551_v48 = vld.sshfl [vmem:[#allocation1 + $0x20] sm:$0xff pattern:$0x75316420] }
  0x4d   :  { %629 = vmatmul.bf16.vlgmr.msra.gmra.mxu3 %v555_v46  ;;  %650 = vst.sshfl [vmem:[#allocation1 + $0x20] sm:$0xff pattern:$0x75316420] %v3273_v16  ;;  %v556_v54 = vpack.c.bf16 %v551_v48, %v551_v48 }
  0x4e   :  { %666 = vst [vmem:[#allocation1 + $0x20] ss:$2 sm:$0xff] %v655_v47  ;;  %v3383_v47 = vadd.s32 1, %v3380_v45 }
  0x50   :  { %v645_v49 = vld [vmem:[#allocation1 + $0x1] ss:$2 sm:$0xff] }
  0x51   :  { %658 = vst [vmem:[#allocation1] ss:$2 sm:$0xff] %v645_v49 }
  0x52   :  { %v647_v51 = vld [vmem:[#allocation1 + $0x10] ss:$2 sm:$0xff]  ;;  %v649_v52 = vld [vmem:[#allocation1 + $0x11] ss:$2 sm:$0xff] }
  0x53   :  { %660 = vst [vmem:[#allocation1 + $0x1] ss:$2 sm:$0xff] %v647_v51 }
  0x54   :  { %662 = vst [vmem:[#allocation1 + $0x10] ss:$2 sm:$0xff] %v649_v52  ;;  %508 = vmatmul.bf16.gmra.mxu2 %v430_v50  ;;  %v653_v53 = vld [vmem:[#allocation1 + $0x21] ss:$2 sm:$0xff] }
  0x55   :  { %664 = vst [vmem:[#allocation1 + $0x11] ss:$2 sm:$0xff] %v653_v53 }
  0x56   :  { %668 = vst [vmem:[#allocation1 + $0x21] ss:$2 sm:$0xff] %v657_v6  ;;  %v786_v6 = vld [vmem:[%s4401_s2 + $0x8] sm:$0xf] }
  0x57   :  { %vm820_vm0 = vcmp.eq.s32.totalorder %v786_v6, %v3383_v47  ;;  %vm792_vm1 = vcmp.eq.s32.totalorder %v786_v6, %v3380_v45 }
  0x5a   :  { %v669_v5 = vld.sshfl [vmem:[#allocation1] sm:$0xff pattern:$0x75316420] }
  0x5c   :  { %v670_v55 = vld.sshfl [vmem:[#allocation1 + $0x10] sm:$0xff pattern:$0x75316420] }
  0x5d   :  { %634 = vmatmul.bf16.gmra.mxu3 %v556_v54  ;;  %v675_v56 = vpack.c.bf16 %v670_v55, %v669_v5  ;;  %v671_v57 = vld.sshfl [vmem:[#allocation1 + $0x20] sm:$0xff pattern:$0x75316420] }
  0x5e   :  { %v676_v16 = vpack.c.bf16 %v671_v57, %v671_v57 }
  0x5f   :  { %749 = vmatmul.bf16.vlgmr.msrb.gmra.mxu0 %v675_v56 }
  0x6f   :  { %754 = vmatmul.bf16.gmra.mxu0 %v676_v16 }
  0xae   :  { %v380_v58 = vpop.f32.mrf.mxu1 }
  0xb6   :  { %v382_v59 = vpop.f32.mrf.mxu1 }
  0xb8   :  { %v314_v60 = vpop.f32.mrf.mxu0 }
  0xb9   :  { %v381_v14 = vadd.f32 %v380_v58, %v314_v60 }
  0xbe   :  { %v385_v61 = vpop.f32.mrf.mxu1 }
  0xc0   :  { %v316_v62 = vpop.f32.mrf.mxu0 }
  0xc1   :  { %v383_v25 = vadd.f32 %v382_v59, %v316_v62 }
  0xc6   :  { %v387_v63 = vpop.f32.mrf.mxu1 }
  0xc7   :  { %v504_v0 = vpop.f32.mrf.mxu2 }
  0xc8   :  { %v319_v2 = vpop.f32.mrf.mxu0  ;;  %v513_v15 = vadd.f32 %v504_v0, %v381_v14 }
  0xc9   :  { %v386_v21 = vadd.f32 %v385_v61, %v319_v2 }
  0xcf   :  { %v506_v3 = vpop.f32.mrf.mxu2 }
  0xd0   :  { %v630_v4 = vpop.f32.mrf.mxu3  ;;  %v321_v9 = vpop.f32.mrf.mxu0  ;;  %v514_v27 = vadd.f32 %v506_v3, %v383_v25 }
  0xd1   :  { %v639_v17 = vadd.f32 %v630_v4, %v513_v15 }
  0xd7   :  { %v509_v10 = vpop.f32.mrf.mxu2 }
  0xd8   :  { %v632_v11 = vpop.f32.mrf.mxu3  ;;  %v515_v34 = vadd.f32 %v509_v10, %v386_v21 }
  0xd9   :  { %v640_v29 = vadd.f32 %v632_v11, %v514_v27 }
  0xdc   :  { %v750_v8 = vpop.f32.mrf.mxu0 }
  0xdd   :  { %v759_v20 = vadd.f32 %v750_v8, %v639_v17 }
  0xdf   :  { %v511_v19 = vpop.f32.mrf.mxu2  ;;  %v766_v26 = vmul.f32 %v3113_v18, %v759_v20 }
  0xe0   :  { %v635_v24 = vpop.f32.mrf.mxu3 }
  0xe1   :  { %v773_v28 = vadd.f32 %v3114_v23, %v766_v26  ;;  %v641_v36 = vadd.f32 %v635_v24, %v515_v34 }
  0xe3   :  { %v776_v30 = vmax.f32 %v773_v28, 0.0 }
  0xe4   :  { %v752_v31 = vpop.f32.mrf.mxu0 }
  0xe5   :  { %v782_v32 = vrot.slane %v776_v30, 4  ;;  %795 = vst [vmem:[#allocation1] ss:$2 sm:$0xff] %v776_v30  ;;  %v760_v13 = vadd.f32 %v752_v31, %v640_v29 }
  0xe7   :  { %797 = vst [vmem:[#allocation1 + $0x1] ss:$2 sm:$0xff] %v782_v32  ;;  %v767_v22 = vmul.f32 %v3113_v18, %v760_v13 }
  0xe8   :  { %v637_v33 = vpop.f32.mrf.mxu3 }
  0xe9   :  { %v774_v35 = vadd.f32 %v3114_v23, %v767_v22 }
  0xeb   :  { %v777_v37 = vmax.f32 %v774_v35, 0.0  ;;  %v3417_v35 = vld [vmem:[%s4401_s2 + $0x18] sm:$0xf] }
  0xec   :  { %v755_v38 = vpop.f32.mrf.mxu0  ;;  %vm822_vm6 = vcmp.eq.s32.totalorder %v3417_v35, %v3383_v47  ;;  %vm794_vm7 = vcmp.eq.s32.totalorder %v3417_v35, %v3380_v45 }
  0xed   :  { %v783_v41 = vrot.slane %v777_v37, 4  ;;  %799 = vst [vmem:[#allocation1 + $0x10] ss:$2 sm:$0xff] %v777_v37  ;;  %v761_v42 = vadd.f32 %v755_v38, %v641_v36 }
  0xee   :  { %v800_v43 = vld.sshfl [vmem:[#allocation1] sm:$0xff pattern:$0x75316420] }
  0xef   :  { %823 = vst [vmem:[#allocation1] ss:$2 sm:$0xff] %v776_v30  ;;  %v768_v44 = vmul.f32 %v3113_v18, %v761_v42  ;;  %v814_v48 = vsel %vm791_vm14, %v800_v43, 0.0  ;;  %v787_v30 = vld [vmem:[%s4401_s2 + $0x10] sm:$0xff]  ;;  %s3148_s2 = smov 48  }
  0xf0   :  { %825 = vst [vmem:[#allocation1 + $0x1] ss:$2 sm:$0xff] %v782_v32  ;;  %v850_v53 = vrot.slane %v814_v48, 1  ;;  %v852_v5 = vrot.slane %v814_v48, 3  ;;  %v855_v56 = vrot.slane %v814_v48, 6  ;;  %v856_v57 = vrot.slane %v814_v48, 7 }
  0xf1   :  { %803 = vst [vmem:[#allocation1 + $0x20] ss:$2 sm:$0xff] %v783_v41  ;;  %v775_v46 = vadd.f32 %v3114_v23, %v768_v44  ;;  %v851_v16 = vrot.slane %v814_v48, 2  ;;  %v853_v15 = vrot.slane %v814_v48, 4  ;;  %v854_v32 = vrot.slane %v814_v48, 5 }
  0xf2   :  { %vm793_vm2 = vcmp.eq.s32.totalorder %v787_v30, %v3229_v7  ;;  %vm821_vm4 = vcmp.eq.s32.totalorder %v787_v30, %v3232_v12 }
  0xf3   :  { %v778_v49 = vmax.f32 %v775_v46, 0.0 }
  0xf4   :  { %v801_v50 = vld.sshfl [vmem:[#allocation1 + $0x10] sm:$0xff pattern:$0x75316420]  ;;  %v757_v51 = vpop.f32.mrf.mxu0 }
  0xf5   :  { %827 = vst [vmem:[#allocation1 + $0x10] ss:$2 sm:$0xff] %v777_v37  ;;  %v784_v52 = vrot.slane %v778_v49, 4  ;;  %v3409_v13 = vsel %vm792_vm1, %v801_v50, 0.0 }
  0xf6   :  { %805 = vst [vmem:[#allocation1 + $0x21] ss:$2 sm:$0xff] %v778_v49  ;;  %v857_v36 = vrot.slane %v3409_v13, 1 }
  0xf7   :  { %v828_v54 = vld.sshfl [vmem:[#allocation1] sm:$0xff pattern:$0x75316420]  ;;  %807 = vst [vmem:[#allocation1 + $0x30] ss:$2 sm:$0xff] %v784_v52 }
  0xf8   :  { %v842_v55 = vsel %vm819_vm15, %v828_v54, 0.0 }
  0xf9   :  { %v894_v58 = vrot.slane %v842_v55, 1  ;;  %v896_v59 = vrot.slane %v842_v55, 3  ;;  %v899_v60 = vrot.slane %v842_v55, 6  ;;  %v900_v61 = vrot.slane %v842_v55, 7 }
  0xfa   :  { %v914_v62 = vperm.slane %v842_v55, 0  ;;  %v895_v63 = vrot.slane %v842_v55, 2  ;;  %v897_v0 = vrot.slane %v842_v55, 4  ;;  %v898_v2 = vrot.slane %v842_v55, 5 }
  0xfb   :  { %v915_v3 = vperm.slane %v894_v58, 0  ;;  %v917_v4 = vperm.slane %v896_v59, 0  ;;  %v920_v9 = vperm.slane %v899_v60, 0  ;;  %v921_v10 = vperm.slane %v900_v61, 0 }
  0xfc   :  { %v829_v11 = vld.sshfl [vmem:[#allocation1 + $0x10] sm:$0xff pattern:$0x75316420]  ;;  %v962_v14 = vsel %vm114_vm3, %v814_v48, %v914_v62  ;;  %v916_v17 = vperm.slane %v895_v63, 0  ;;  %v918_v18 = vperm.slane %v897_v0, 0  ;;  %v919_v26 = vperm.slane %v898_v2, 0 }
  0xfd   :  { %v963_v8 = vsel %vm114_vm3, %v850_v53, %v915_v3  ;;  %v3394_v19 = vsel %vm820_vm0, %v829_v11, 0.0  ;;  %v968_v20 = vsel %vm114_vm3, %v855_v56, %v920_v9  ;;  %v969_v23 = vsel %vm114_vm3, %v856_v57, %v921_v10  ;;  %1011 = vst [vmem:[#allocation1 + $0x2] ss:$4 sm:$0xff] %v962_v14  ;;  %v808_v24 = vld.sshfl [vmem:[#allocation1 + $0x20] sm:$0xff pattern:$0x75316420] }
  0xfe   :  { %1013 = vst [vmem:[#allocation1 + $0x3] ss:$4 sm:$0xff] %v963_v8  ;;  %v3398_v25 = vld.sshfl [vmem:[#allocation1 + $0x30] sm:$0xff pattern:$0x75316420]  ;;  %v964_v27 = vsel %vm114_vm3, %v851_v16, %v916_v17  ;;  %v965_v28 = vsel %vm114_vm3, %v852_v5, %v917_v4  ;;  %v966_v29 = vsel %vm114_vm3, %v853_v15, %v918_v18  ;;  %v901_v31 = vrot.slane %v3394_v19, 1 }
  0xff   :  { %831 = vst [vmem:[#allocation1 + $0x20] ss:$2 sm:$0xff] %v783_v41  ;;  %v922_v33 = vperm.slane %v3394_v19, 0  ;;  %v967_v21 = vsel %vm114_vm3, %v854_v32, %v919_v26  ;;  %v816_v37 = vsel %vm793_vm2, %v808_v24, 0.0  ;;  %v903_v39 = vrot.slane %v3394_v19, 3 }
 0x100   :  { %833 = vst [vmem:[#allocation1 + $0x21] ss:$2 sm:$0xff] %v778_v49  ;;  %v923_v22 = vperm.slane %v901_v31, 0  ;;  %v861_v44 = vrot.slane %v816_v37, 2  ;;  %v862_v50 = vrot.slane %v816_v37, 3  ;;  %v863_v51 = vrot.slane %v816_v37, 4 }
 0x101   :  { %835 = vst [vmem:[#allocation1 + $0x30] ss:$2 sm:$0xff] %v784_v52  ;;  %v970_v38 = vsel %vm114_vm3, %v3409_v13, %v922_v33  ;;  %v902_v56 = vrot.slane %v3394_v19, 2  ;;  %v864_v57 = vrot.slane %v816_v37, 5  ;;  %v925_v59 = vperm.slane %v903_v39, 0 }
 0x102   :  { %v971_v41 = vsel %vm114_vm3, %v857_v36, %v923_v22  ;;  %v860_v0 = vrot.slane %v816_v37, 1  ;;  %v865_v2 = vrot.slane %v816_v37, 6  ;;  %v866_v4 = vrot.slane %v816_v37, 7 }
 0x103   :  { %v859_v15 = vrot.slane %v3409_v13, 3  ;;  %v924_v17 = vperm.slane %v902_v56, 0  ;;  %v858_v26 = vrot.slane %v3409_v13, 2 }
 0x105   :  { %v1022_v34 = vld.sshfl [vmem:[#allocation1] sm:$0xff pattern:$0x73625140] }
 0x106   :  { %1024 = vst [vmem:[#allocation1] ss:$4 sm:$0xff] %v968_v20  ;;  %v3442_v8 = vsel %vm151_vm5, 0.0, %v1022_v34  ;;  %v817_v34 = vsel %vm794_vm7, %v3398_v25, 0.0 }
 0x107   :  { %1026 = vst [vmem:[#allocation1 + $0x1] ss:$4 sm:$0xff] %v969_v23  ;;  %v836_v40 = vld.sshfl [vmem:[#allocation1 + $0x20] sm:$0xff pattern:$0x75316420]  ;;  %v1160_v31 = vrot.slane %v3442_v8, 3 }
 0x108   :  { %1027 = vst [vmem:[#allocation1 + $0x2] ss:$4 sm:$0xff] %v970_v38  ;;  %v837_v42 = vld.sshfl [vmem:[#allocation1 + $0x30] sm:$0xff pattern:$0x75316420]  ;;  %v844_v43 = vsel %vm821_vm4, %v836_v40, 0.0 }
 0x109   :  { %1028 = vst [vmem:[#allocation1 + $0x3] ss:$4 sm:$0xff] %v971_v41  ;;  %v905_v46 = vrot.slane %v844_v43, 2  ;;  %v906_v48 = vrot.slane %v844_v43, 3  ;;  %v907_v49 = vrot.slane %v844_v43, 4  ;;  %v908_v52 = vrot.slane %v844_v43, 5 }
 0x10a   :  { %1015 = vst [vmem:[#allocation1 + $0x20] ss:$4 sm:$0xff] %v964_v27  ;;  %v904_v6 = vrot.slane %v844_v43, 1  ;;  %v909_v55 = vrot.slane %v844_v43, 6  ;;  %v910_v58 = vrot.slane %v844_v43, 7  ;;  %v926_v3 = vperm.slane %v844_v43, 0 }
 0x10b   :  { %v928_v53 = vperm.slane %v905_v46, 0  ;;  %v929_v54 = vperm.slane %v906_v48, 0  ;;  %v930_v5 = vperm.slane %v907_v49, 0  ;;  %1017 = vst [vmem:[#allocation1 + $0x21] ss:$4 sm:$0xff] %v965_v28  ;;  %v931_v16 = vperm.slane %v908_v52, 0 }
 0x10c   :  { %1019 = vst [vmem:[#allocation1 + $0x22] ss:$4 sm:$0xff] %v966_v29  ;;  %v927_v9 = vperm.slane %v904_v6, 0  ;;  %v932_v10 = vperm.slane %v909_v55, 0  ;;  %v933_v11 = vperm.slane %v910_v58, 0  ;;  %v974_v18 = vsel %vm114_vm3, %v816_v37, %v926_v3 }
 0x10d   :  { %v976_v60 = vsel %vm114_vm3, %v861_v44, %v928_v53  ;;  %v3429_v61 = vsel %vm114_vm3, %v862_v50, %v929_v54  ;;  %v3432_v62 = vsel %vm114_vm3, %v863_v51, %v930_v5  ;;  %1021 = vst [vmem:[#allocation1 + $0x23] ss:$4 sm:$0xff] %v967_v21  ;;  %v3435_v63 = vsel %vm114_vm3, %v864_v57, %v931_v16 }
 0x10e   :  { %v3447_v19 = vsel %vm822_vm6, %v837_v42, 0.0  ;;  %v975_v20 = vsel %vm114_vm3, %v860_v0, %v927_v9  ;;  %v980_v23 = vsel %vm114_vm3, %v865_v2, %v932_v10  ;;  %v981_v24 = vsel %vm114_vm3, %v866_v4, %v933_v11 }
 0x10f   :  { %v973_v27 = vsel %vm114_vm3, %v859_v15, %v925_v59  ;;  %v972_v28 = vsel %vm114_vm3, %v858_v26, %v924_v17  ;;  %v911_v30 = vrot.slane %v3447_v19, 1  ;;  %v1113_v32 = vrot.slane %v3442_v8, 2 }
 0x110   :  { %v3437_v14 = vld.sshfl [vmem:[#allocation1] sm:$0xff pattern:$0x73625140]  ;;  %v1066_v21 = vrot.slane %v3442_v8, 1  ;;  %v934_v36 = vperm.slane %v3447_v19, 0  ;;  %v867_v35 = vrot.slane %v817_v34, 1 }
 0x111   :  { %1033 = vst [vmem:[#allocation1 + $0x2] ss:$4 sm:$0xff] %v974_v18  ;;  %v935_v40 = vperm.slane %v911_v30, 0  ;;  %v1163_v43 = vrot.slane %v3437_v14, 3  ;;  %v1116_v46 = vrot.slane %v3437_v14, 2  ;;  %v1069_v48 = vrot.slane %v3437_v14, 1 }
 0x112   :  { %1034 = vst [vmem:[#allocation1 + $0x3] ss:$4 sm:$0xff] %v975_v20  ;;  %v982_v41 = vsel %vm114_vm3, %v817_v34, %v934_v36  ;;  %v912_v51 = vrot.slane %v3447_v19, 2  ;;  %v913_v53 = vrot.slane %v3447_v19, 3  ;;  %v1209_v57 = vrot.slane %v3437_v14, 4 }
 0x113   :  { %v983_v42 = vsel %vm114_vm3, %v867_v35, %v935_v40  ;;  %v868_v16 = vrot.slane %v817_v34, 2  ;;  %v1206_v58 = vrot.slane %v3442_v8, 4  ;;  %v869_v59 = vrot.slane %v817_v34, 3 }
 0x114   :  { %v3457_v29 = vld.sshfl [vmem:[#allocation1 + $0x20] sm:$0xff pattern:$0x73625140]  ;;  %v936_v55 = vperm.slane %v912_v51, 0  ;;  %v937_v56 = vperm.slane %v913_v53, 0  ;;  %v3090_v51 = vld [vmem:[%s4406_s7 + $0x38] sm:$0xff] }
 0x115   :  { %1029 = vst [vmem:[#allocation1 + $0x20] ss:$4 sm:$0xff] %v972_v28  ;;  %v1161_v33 = vrot.slane %v3457_v29, 3  ;;  %v1114_v13 = vrot.slane %v3457_v29, 2  ;;  %v1067_v22 = vrot.slane %v3457_v29, 1  ;;  %v1207_v54 = vrot.slane %v3457_v29, 4  ;;  %1369 = vmatpush.bf16.msrb.mxu1 %v3090_v51 }
 0x116   :  { %1030 = vst [vmem:[#allocation1 + $0x21] ss:$4 sm:$0xff] %v973_v27  ;;  %v985_v2 = vsel %vm114_vm3, %v869_v59, %v937_v56  ;;  %v3088_v53 = vld [vmem:[%s4406_s7 + $0x28] sm:$0xff]  ;;  %v3083_v59 = vld [vmem:[%s4406_s7] sm:$0xff] }
 0x117   :  { %v1162_v37 = vsel %vm1159_vm8, %v1160_v31, %v1161_v33  ;;  %v1115_v38 = vsel %vm1112_vm9, %v1113_v32, %v1114_v13  ;;  %v1068_v39 = vsel %vm1065_vm10, %v1066_v21, %v1067_v22  ;;  %v1164_v49 = vsel %vm1159_vm8, %v1161_v33, %v1163_v43 }
 0x118   :  { %1182 = vrot.lane.b32.xlu2 %v1162_v37, %s3148_s2  ;;  %1135 = vrot.lane.b32.xlu1 %v1115_v38, %s3149_s14  ;;  %v1117_v50 = vsel %vm1112_vm9, %v1114_v13, %v1116_v46  ;;  %v1070_v52 = vsel %vm1065_vm10, %v1067_v22, %v1069_v48  ;;  %v1208_v0 = vsel %vm151_vm5, %v1206_v58, %v1207_v54  ;;  %v3084_v58 = vld [vmem:[%s4406_s7 + $0x8] sm:$0xff] }
 0x119   :  { %1088 = vrot.lane.b32.xlu0 %v1068_v39, %s3150_s4  ;;  %v1039_v25 = vld.sshfl [vmem:[#allocation1] sm:$0xff pattern:$0x73625140] }
 0x11a   :  { %1041 = vst [vmem:[#allocation1] ss:$4 sm:$0xff] %v980_v23  ;;  %v3511_v3 = vsel %vm151_vm5, 0.0, %v1039_v25 }
 0x11b   :  { %1042 = vst [vmem:[#allocation1 + $0x1] ss:$4 sm:$0xff] %v981_v24  ;;  %v1073_v10 = vrot.slane %v3511_v3, 1  ;;  %v1120_v19 = vrot.slane %v3511_v3, 2  ;;  %v1167_v27 = vrot.slane %v3511_v3, 3  ;;  %v1213_v13 = vrot.slane %v3511_v3, 4 }
 0x11c   :  { %1043 = vst [vmem:[#allocation1 + $0x2] ss:$4 sm:$0xff] %v982_v41 }
 0x11d   :  { %v1032_v44 = vld.sshfl [vmem:[#allocation1 + $0x20] sm:$0xff pattern:$0x73625140]  ;;  %1044 = vst [vmem:[#allocation1 + $0x3] ss:$4 sm:$0xff] %v983_v42 }
 0x11e   :  { %1035 = vst [vmem:[#allocation1 + $0x20] ss:$4 sm:$0xff] %v976_v60  ;;  %v3491_v6 = vsel %vm151_vm5, %v1032_v44, 0.0  ;;  %v1210_v60 = vsel %vm151_vm5, %v1207_v54, %v1209_v57 }
 0x11f   :  { %1036 = vst [vmem:[#allocation1 + $0x21] ss:$4 sm:$0xff] %v3429_v61  ;;  %v1071_v5 = vrot.slane %v3491_v6, 1  ;;  %v1118_v4 = vrot.slane %v3491_v6, 2  ;;  %v1165_v17 = vrot.slane %v3491_v6, 3  ;;  %v1211_v24 = vrot.slane %v3491_v6, 4 }
 0x120   :  { %1037 = vst [vmem:[#allocation1 + $0x22] ss:$4 sm:$0xff] %v3432_v62  ;;  %1184 = vrot.lane.b32.xlu2 %v1164_v49, %s3148_s2  ;;  %1137 = vrot.lane.b32.xlu1 %v1117_v50, %s3149_s14  ;;  %v984_v62 = vsel %vm114_vm3, %v868_v16, %v936_v55  ;;  %v3086_v55 = vld [vmem:[%s4406_s7 + $0x18] sm:$0xff]  ;;  %v3085_v16 = vld [vmem:[%s4406_s7 + $0x10] sm:$0xff] }
 0x121   :  { %1038 = vst [vmem:[#allocation1 + $0x23] ss:$4 sm:$0xff] %v3435_v63  ;;  %1090 = vrot.lane.b32.xlu0 %v1070_v52, %s3150_s4  ;;  %v1072_v61 = vsel %vm1065_vm10, %v1069_v48, %v1071_v5  ;;  %v1119_v11 = vsel %vm1112_vm9, %v1116_v46, %v1118_v4  ;;  %v1166_v20 = vsel %vm1159_vm8, %v1163_v43, %v1165_v17  ;;  %v3089_v52 = vld [vmem:[%s4406_s7 + $0x30] sm:$0xff] }
 0x122   :  { %v1212_v28 = vsel %vm151_vm5, %v1209_v57, %v1211_v24  ;;  %1370 = vmatpush.bf16.msrb.mxu1 %v3089_v52 }
 0x124   :  { %v3537_v31 = vld.sshfl [vmem:[#allocation1] sm:$0xff pattern:$0x73625140] }
 0x125   :  { %v1076_v21 = vrot.slane %v3537_v31, 1  ;;  %v1123_v38 = vrot.slane %v3537_v31, 2  ;;  %v1170_v39 = vrot.slane %v3537_v31, 3  ;;  %v1216_v43 = vrot.slane %v3537_v31, 4 }
 0x126   :  { %1371 = vmatpush.bf16.msrb.mxu1 %v3088_v53 }
 0x128   :  { %v3503_v63 = vld.sshfl [vmem:[#allocation1 + $0x20] sm:$0xff pattern:$0x73625140]  ;;  %1230 = vrot.lane.b32.xlu1 %v1210_v60, %s3146_s30  ;;  %1092 = vrot.lane.b32.xlu2 %v1072_v61, %s3150_s4 }
 0x129   :  { %1045 = vst [vmem:[#allocation1 + $0x20] ss:$4 sm:$0xff] %v984_v62  ;;  %1228 = vrot.lane.b32.xlu0 %v1208_v0, %s3146_s30  ;;  %v1074_v9 = vrot.slane %v3503_v63, 1  ;;  %v1121_v18 = vrot.slane %v3503_v63, 2  ;;  %v1168_v26 = vrot.slane %v3503_v63, 3  ;;  %v1214_v32 = vrot.slane %v3503_v63, 4 }
 0x12a   :  { %1046 = vst [vmem:[#allocation1 + $0x21] ss:$4 sm:$0xff] %v985_v2 }
 0x12b   :  { %v1075_v15 = vsel %vm1065_vm10, %v1073_v10, %v1074_v9  ;;  %v1122_v23 = vsel %vm1112_vm9, %v1120_v19, %v1121_v18  ;;  %v1169_v30 = vsel %vm1159_vm8, %v1167_v27, %v1168_v26  ;;  %v1215_v22 = vsel %vm151_vm5, %v1213_v13, %v1214_v32 }
 0x12c   :  { %v1077_v34 = vsel %vm1065_vm10, %v1074_v9, %v1076_v21  ;;  %v1124_v40 = vsel %vm1112_vm9, %v1121_v18, %v1123_v38  ;;  %v1171_v35 = vsel %vm1159_vm8, %v1168_v26, %v1170_v39  ;;  %v1217_v46 = vsel %vm151_vm5, %v1214_v32, %v1216_v43 }
 0x130   :  { %1139 = vrot.lane.b32.xlu2 %v1119_v11, %s3149_s14  ;;  %1096 = vrot.lane.b32.xlu1 %v1075_v15, %s3150_s4 }
 0x131   :  { %1094 = vrot.lane.b32.xlu0 %v1071_v5, %s3150_s4  ;;  %v1048_v33 = vld.sshfl [vmem:[#allocation1 + $0x20] sm:$0xff pattern:$0x73625140] }
 0x132   :  { %v3547_v36 = vsel %vm151_vm5, %v1048_v33, 0.0  ;;  %v3087_v5 = vld [vmem:[%s4406_s7 + $0x20] sm:$0xff] }
 0x133   :  { %v1125_v37 = vrot.slane %v3547_v36, 2  ;;  %v1172_v41 = vrot.slane %v3547_v36, 3  ;;  %v1078_v42 = vrot.slane %v3547_v36, 1  ;;  %v1218_v49 = vrot.slane %v3547_v36, 4  ;;  %1372 = vmatpush.bf16.msrb.mxu1 %v3087_v5 }
 0x135   :  { %v1126_v25 = vsel %vm1112_vm9, %v1123_v38, %v1125_v37  ;;  %v1173_v44 = vsel %vm1159_vm8, %v1170_v39, %v1172_v41  ;;  %v1079_v48 = vsel %vm1065_vm10, %v1076_v21, %v1078_v42  ;;  %v1219_v50 = vsel %vm151_vm5, %v1216_v43, %v1218_v49 }
 0x137   :  { %1373 = vmatpush.bf16.msrb.mxu1 %v3086_v55 }
 0x138   :  { %1186 = vrot.lane.b32.xlu2 %v1166_v20, %s3148_s2  ;;  %1143 = vrot.lane.b32.xlu1 %v1122_v23, %s3149_s14 }
 0x139   :  { %1141 = vrot.lane.b32.xlu0 %v1118_v4, %s3149_s14 }
 0x13b   :  { %1374 = vmatpush.bf16.msrb.mxu1 %v3085_v16 }
 0x13f   :  { %1375 = vmatpush.bf16.msrb.mxu1 %v3084_v58 }
 0x140   :  { %1232 = vrot.lane.b32.xlu2 %v1212_v28, %s3146_s30  ;;  %1190 = vrot.lane.b32.xlu1 %v1169_v30, %s3148_s2 }
 0x141   :  { %1188 = vrot.lane.b32.xlu0 %v1165_v17, %s3148_s2 }
 0x143   :  { %1376 = vmatpush.bf16.msrb.mxu1 %v3083_v59 }
 0x148   :  { %1236 = vrot.lane.b32.xlu1 %v1215_v22, %s3146_s30  ;;  %1098 = vrot.lane.b32.xlu2 %v1077_v34, %s3150_s4 }
 0x149   :  { %1234 = vrot.lane.b32.xlu0 %v1211_v24, %s3146_s30 }
 0x150   :  { %1145 = vrot.lane.b32.xlu1 %v1124_v40, %s3149_s14  ;;  %1147 = vrot.lane.b32.xlu2 %v1126_v25, %s3149_s14 }
 0x151   :  { %1192 = vrot.lane.b32.xlu0 %v1171_v35, %s3148_s2 }
 0x158   :  { %1194 = vrot.lane.b32.xlu1 %v1173_v44, %s3148_s2  ;;  %1238 = vrot.lane.b32.xlu2 %v1217_v46, %s3146_s30 }
 0x159   :  { %1100 = vrot.lane.b32.xlu0 %v1079_v48, %s3150_s4 }
 0x160   :  { %1102 = vrot.lane.b32.xlu1 %v1078_v42, %s3150_s4  ;;  %1149 = vrot.lane.b32.xlu2 %v1125_v37, %s3149_s14 }
 0x161   :  { %1240 = vrot.lane.b32.xlu0 %v1219_v50, %s3146_s30 }
 0x168   :  { %1242 = vrot.lane.b32.xlu1 %v1218_v49, %s3146_s30 }
 0x169   :  { %1196 = vrot.lane.b32.xlu0 %v1172_v41, %s3148_s2 }
 0x172   :  { %v1183_v54 = vpop.permute.xlu2 %1182 }
 0x17a   :  { %v1185_v56 = vpop.permute.xlu2 %1184 }
 0x182   :  { %v1093_v57 = vpop.permute.xlu2 %1092 }
 0x183   :  { %v1106_v11 = vadd.f32 %v1093_v57, %v3437_v14 }
 0x18a   :  { %v1136_v60 = vpop.permute.xlu1 %1135  ;;  %v1140_v61 = vpop.permute.xlu2 %1139 }
 0x18b   :  { %v1089_v62 = vpop.permute.xlu0 %1088  ;;  %v1153_v18 = vadd.f32 %v1140_v61, %v1106_v11 }
 0x18c   :  { %v1104_v0 = vadd.f32 %v1089_v62, %v3442_v8 }
 0x18e   :  { %v1151_v15 = vadd.f32 %v1136_v60, %v1104_v0 }
 0x190   :  { %v1198_v24 = vadd.f32 %v1183_v54, %v1151_v15 }
 0x192   :  { %v1138_v2 = vpop.permute.xlu1 %1137  ;;  %v1187_v4 = vpop.permute.xlu2 %1186 }
 0x193   :  { %v1091_v9 = vpop.permute.xlu0 %1090  ;;  %v1200_v19 = vadd.f32 %v1187_v4, %v1153_v18 }
 0x194   :  { %v1105_v10 = vadd.f32 %v1091_v9, %v3457_v29 }
 0x196   :  { %v1152_v17 = vadd.f32 %v1138_v2, %v1105_v10 }
 0x198   :  { %v1199_v20 = vadd.f32 %v1185_v56, %v1152_v17 }
 0x19a   :  { %v1231_v23 = vpop.permute.xlu1 %1230  ;;  %v1233_v26 = vpop.permute.xlu2 %1232 }
 0x19b   :  { %v1245_v27 = vadd.f32 %v1231_v23, %v1199_v20  ;;  %v1229_v28 = vpop.permute.xlu0 %1228  ;;  %v1246_v30 = vadd.f32 %v1233_v26, %v1200_v19 }
 0x19c   :  { %v1244_v32 = vadd.f32 %v1229_v28, %v1198_v24 }
 0x19d   :  { %v1261_v8 = vrot.slane %v1245_v27, 4  ;;  %1270 = vst [vmem:[#allocation1 + $0x10] ss:$2 sm:$0xff] %v1245_v27  ;;  %v1262_v13 = vrot.slane %v1246_v30, 4 }
 0x19e   :  { %v1260_v33 = vrot.slane %v1244_v32, 4  ;;  %1266 = vst [vmem:[#allocation1] ss:$2 sm:$0xff] %v1244_v32  ;;  %v3116_v32 = vld [vmem:[%s4408_s9] ss:$0 sm:$0xff] }
 0x19f   :  { %1272 = vst [vmem:[#allocation1 + $0x11] ss:$2 sm:$0xff] %v1261_v8 }
 0x1a0   :  { %1268 = vst [vmem:[#allocation1 + $0x1] ss:$2 sm:$0xff] %v1260_v33 }
 0x1a1   :  { %1274 = vst [vmem:[#allocation1 + $0x20] ss:$2 sm:$0xff] %v1246_v30 }
 0x1a2   :  { %1276 = vst [vmem:[#allocation1 + $0x21] ss:$2 sm:$0xff] %v1262_v13  ;;  %v1097_v14 = vpop.permute.xlu1 %1096  ;;  %v1099_v39 = vpop.permute.xlu2 %1098 }
 0x1a3   :  { %v1095_v29 = vpop.permute.xlu0 %1094  ;;  %v1108_v35 = vadd.f32 %v1097_v14, %v3511_v3  ;;  %v1109_v54 = vadd.f32 %v1099_v39, %v3503_v63 }
 0x1a4   :  { %v1107_v41 = vadd.f32 %v1095_v29, %v3491_v6 }
 0x1a6   :  { %v1282_v21 = vld.sshfl [vmem:[#allocation1 + $0x10] sm:$0xff pattern:$0x75316420] }
 0x1a7   :  { %v1281_v22 = vld.sshfl [vmem:[#allocation1] sm:$0xff pattern:$0x75316420] }
 0x1a8   :  { %v1301_v34 = vpack.c.bf16 %v1282_v21, %v1281_v22 }
 0x1a9   :  { %v1283_v56 = vld.sshfl [vmem:[#allocation1 + $0x20] sm:$0xff pattern:$0x75316420] }
 0x1aa   :  { %1377 = vmatmul.bf16.vlgmr.msrb.gmra.mxu1 %v1301_v34  ;;  %v1144_v37 = vpop.permute.xlu1 %1143  ;;  %v1148_v51 = vpop.permute.xlu2 %1147 }
 0x1ab   :  { %v1142_v38 = vpop.permute.xlu0 %1141  ;;  %v1155_v42 = vadd.f32 %v1144_v37, %v1108_v35 }
 0x1ac   :  { %v1154_v43 = vadd.f32 %v1142_v38, %v1107_v41 }
 0x1b2   :  { %v1191_v40 = vpop.permute.xlu1 %1190  ;;  %v1239_v16 = vpop.permute.xlu2 %1238 }
 0x1b3   :  { %v1189_v25 = vpop.permute.xlu0 %1188  ;;  %v1202_v44 = vadd.f32 %v1191_v40, %v1155_v42 }
 0x1b4   :  { %v1201_v46 = vadd.f32 %v1189_v25, %v1154_v43 }
 0x1ba   :  { %v1237_v48 = vpop.permute.xlu1 %1236  ;;  %v1150_v17 = vpop.permute.xlu2 %1149 }
 0x1bb   :  { %v1235_v49 = vpop.permute.xlu0 %1234  ;;  %v1248_v50 = vadd.f32 %v1237_v48, %v1202_v44 }
 0x1bc   :  { %v1247_v52 = vadd.f32 %v1235_v49, %v1201_v46 }
 0x1bd   :  { %v1263_v53 = vrot.slane %v1248_v50, 4  ;;  %1280 = vst [vmem:[#allocation1 + $0x31] ss:$2 sm:$0xff] %v1248_v50 }
 0x1be   :  { %1278 = vst [vmem:[#allocation1 + $0x30] ss:$2 sm:$0xff] %v1247_v52 }
 0x1bf   :  { %1285 = vst [vmem:[#allocation1] ss:$2 sm:$0xff] %v1263_v53 }
 0x1c2   :  { %v1146_v5 = vpop.permute.xlu1 %1145 }
 0x1c3   :  { %v1193_v55 = vpop.permute.xlu0 %1192  ;;  %v1156_v3 = vadd.f32 %v1146_v5, %v1109_v54 }
 0x1c5   :  { %v1284_v6 = vld.sshfl [vmem:[#allocation1 + $0x30] sm:$0xff pattern:$0x75316420]  ;;  %v1203_v57 = vadd.f32 %v1193_v55, %v1156_v3 }
 0x1c6   :  { %v1302_v58 = vpack.c.bf16 %v1284_v6, %v1283_v56  ;;  %v1440_v6 = vld [vmem:[%s4402_s3] sm:$0xff] }
 0x1c7   :  { %v1249_v59 = vadd.f32 %v1239_v16, %v1203_v57  ;;  %vm1452_vm11 = vcmp.eq.s32.totalorder %v1440_v6, %v3229_v7  ;;  %vm1506_vm12 = vcmp.eq.s32.totalorder %v1440_v6, %v3232_v12 }
 0x1c8   :  { %1382 = vmatmul.bf16.gmra.mxu1 %v1302_v58 }
 0x1c9   :  { %v1264_v60 = vrot.slane %v1249_v59, 4  ;;  %1286 = vst [vmem:[#allocation1 + $0x1] ss:$2 sm:$0xff] %v1249_v59 }
 0x1ca   :  { %v1195_v61 = vpop.permute.xlu1 %1194 }
 0x1cb   :  { %1287 = vst [vmem:[#allocation1 + $0x10] ss:$2 sm:$0xff] %v1264_v60  ;;  %v1101_v62 = vpop.permute.xlu0 %1100 }
 0x1cc   :  { %v1110_v0 = vadd.f32 %v1101_v62, %v3537_v31 }
 0x1ce   :  { %v1157_v2 = vadd.f32 %v1148_v51, %v1110_v0 }
 0x1d0   :  { %v1204_v4 = vadd.f32 %v1195_v61, %v1157_v2  ;;  %v1291_v23 = vld.sshfl [vmem:[#allocation1] sm:$0xff pattern:$0x75316420]  ;;  %v3654_v2 = vld [vmem:[%s4402_s3 + $0x8] sm:$0xff] }
 0x1d1   :  { %vm1453_vm13 = vcmp.eq.s32.totalorder %v3654_v2, %v3380_v45  ;;  %vm1507_vm14 = vcmp.eq.s32.totalorder %v3654_v2, %v3383_v47 }
 0x1d2   :  { %v1103_v63 = vpop.permute.xlu1 %1102 }
 0x1d3   :  { %v1241_v9 = vpop.permute.xlu0 %1240  ;;  %v1111_v11 = vadd.f32 %v1103_v63, %v3547_v36  ;;  %v3115_v36 = vld [vmem:[%s4407_s8] ss:$0 sm:$0xff] }
 0x1d4   :  { %v1250_v10 = vadd.f32 %v1241_v9, %v1204_v4 }
 0x1d5   :  { %v1158_v18 = vadd.f32 %v1150_v17, %v1111_v11 }
 0x1d6   :  { %v1265_v15 = vrot.slane %v1250_v10, 4  ;;  %1288 = vst [vmem:[#allocation1 + $0x11] ss:$2 sm:$0xff] %v1250_v10 }
 0x1d8   :  { %1289 = vst [vmem:[#allocation1 + $0x20] ss:$2 sm:$0xff] %v1265_v15 }
 0x1da   :  { %v1243_v26 = vpop.permute.xlu1 %1242 }
 0x1db   :  { %v1197_v19 = vpop.permute.xlu0 %1196 }
 0x1dc   :  { %v1205_v20 = vadd.f32 %v1197_v19, %v1158_v18 }
 0x1dd   :  { %v1292_v24 = vld.sshfl [vmem:[#allocation1 + $0x10] sm:$0xff pattern:$0x75316420] }
 0x1de   :  { %v1251_v27 = vadd.f32 %v1243_v26, %v1205_v20  ;;  %v1303_v28 = vpack.c.bf16 %v1292_v24, %v1291_v23 }
 0x1e0   :  { %1290 = vst [vmem:[#allocation1 + $0x21] ss:$2 sm:$0xff] %v1251_v27  ;;  %1387 = vmatmul.bf16.gmra.mxu1 %v1303_v28 }
 0x1e7   :  { %v1293_v31 = vld.sshfl [vmem:[#allocation1 + $0x20] sm:$0xff pattern:$0x75316420] }
 0x1e8   :  { %v1304_v30 = vpack.c.bf16 %v1293_v31, %v1293_v31 }
 0x1f0   :  { %1392 = vmatmul.bf16.gmra.mxu1 %v1304_v30 }
 0x227   :  { %v1378_v8 = vpop.f32.mrf.mxu1 }
 0x228   :  { %v1401_v33 = vmul.f32 %v3115_v36, %v1378_v8 }
 0x22a   :  { %v1412_v13 = vadd.f32 %v3116_v32, %v1401_v33 }
 0x22c   :  { %v1419_v14 = vmax.f32 %v1412_v13, 0.0 }
 0x22e   :  { %v1433_v29 = vrot.slane %v1419_v14, 4  ;;  %1460 = vst [vmem:[#allocation1] ss:$2 sm:$0xff] %v1419_v14 }
 0x22f   :  { %v1380_v21 = vpop.f32.mrf.mxu1 }
 0x230   :  { %1462 = vst [vmem:[#allocation1 + $0x1] ss:$2 sm:$0xff] %v1433_v29  ;;  %v1402_v22 = vmul.f32 %v3115_v36, %v1380_v21 }
 0x232   :  { %v1413_v34 = vadd.f32 %v3116_v32, %v1402_v22 }
 0x234   :  { %v3613_v37 = vmax.f32 %v1413_v34, 0.0 }
 0x236   :  { %v1434_v38 = vrot.slane %v3613_v37, 4  ;;  %1464 = vst [vmem:[#allocation1 + $0x10] ss:$2 sm:$0xff] %v3613_v37 }
 0x237   :  { %v1473_v49 = vld.sshfl [vmem:[#allocation1] sm:$0xff pattern:$0x75316420] }
 0x238   :  { %1466 = vst [vmem:[#allocation1 + $0x11] ss:$2 sm:$0xff] %v1434_v38  ;;  %v1496_v62 = vsel %vm1452_vm11, %v1473_v49, 0.0 }
 0x239   :  { %v1566_v4 = vrot.slane %v1496_v62, 1  ;;  %v1567_v9 = vrot.slane %v1496_v62, 2  ;;  %v1568_v10 = vrot.slane %v1496_v62, 3  ;;  %v1569_v11 = vrot.slane %v1496_v62, 4 }
 0x23a   :  { %v1571_v15 = vrot.slane %v1496_v62, 6  ;;  %v1572_v30 = vrot.slane %v1496_v62, 7 }
 0x23f   :  { %v3633_v5 = vld.sshfl [vmem:[#allocation1 + $0x10] sm:$0xff pattern:$0x75316420] }
 0x245   :  { %v1383_v39 = vpop.f32.mrf.mxu1 }
 0x246   :  { %v1403_v40 = vmul.f32 %v3115_v36, %v1383_v39 }
 0x248   :  { %v1414_v25 = vadd.f32 %v3116_v32, %v1403_v40  ;;  %v1570_v40 = vrot.slane %v1496_v62, 5 }
 0x24a   :  { %v3619_v35 = vmax.f32 %v1414_v25, 0.0 }
 0x24c   :  { %v1435_v41 = vrot.slane %v3619_v35, 4  ;;  %1468 = vst [vmem:[#allocation1 + $0x20] ss:$2 sm:$0xff] %v3619_v35 }
 0x24d   :  { %v1385_v42 = vpop.f32.mrf.mxu1 }
 0x24e   :  { %1470 = vst [vmem:[#allocation1 + $0x21] ss:$2 sm:$0xff] %v1435_v41  ;;  %v1404_v43 = vmul.f32 %v3115_v36, %v1385_v42 }
 0x250   :  { %v1415_v44 = vadd.f32 %v3116_v32, %v1404_v43 }
 0x252   :  { %v3625_v46 = vmax.f32 %v1415_v44, 0.0 }
 0x254   :  { %v1436_v48 = vrot.slane %v3625_v46, 4  ;;  %1472 = vst [vmem:[#allocation1 + $0x30] ss:$2 sm:$0xff] %v3625_v46 }
 0x255   :  { %v3646_v60 = vld.sshfl [vmem:[#allocation1 + $0x20] sm:$0xff pattern:$0x75316420] }
 0x256   :  { %1477 = vst [vmem:[#allocation1] ss:$2 sm:$0xff] %v1436_v48 }
 0x25b   :  { %v3665_v24 = vld.sshfl [vmem:[#allocation1 + $0x30] sm:$0xff pattern:$0x75316420] }
 0x25d   :  { %v1388_v50 = vpop.f32.mrf.mxu1 }
 0x25e   :  { %v1405_v51 = vmul.f32 %v3115_v36, %v1388_v50  ;;  %v1444_v50 = vld [vmem:[%s4402_s3 + $0x20] sm:$0xff] }
 0x25f   :  { %vm1510_vm15 = vcmp.eq.s32.totalorder %v1444_v50, %v3232_v12  ;;  %vm1456_vm0 = vcmp.eq.s32.totalorder %v1444_v50, %v3229_v7 }
 0x260   :  { %v1416_v52 = vadd.f32 %v3116_v32, %v1405_v51  ;;  %v3701_v51 = vsel %vm1453_vm13, %v3633_v5, 0.0 }
 0x261   :  { %v1574_v5 = vrot.slane %v3701_v51, 2  ;;  %v1575_v6 = vrot.slane %v3701_v51, 3  ;;  %v1577_v2 = vrot.slane %v3701_v51, 5 }
 0x262   :  { %v3629_v53 = vmax.f32 %v1416_v52, 0.0 }
 0x264   :  { %v1437_v54 = vrot.slane %v3629_v53, 4  ;;  %1478 = vst [vmem:[#allocation1 + $0x1] ss:$2 sm:$0xff] %v3629_v53 }
 0x265   :  { %v1390_v55 = vpop.f32.mrf.mxu1 }
 0x266   :  { %1479 = vst [vmem:[#allocation1 + $0x10] ss:$2 sm:$0xff] %v1437_v54  ;;  %v1406_v3 = vmul.f32 %v3115_v36, %v1390_v55 }
 0x268   :  { %v1417_v56 = vadd.f32 %v3116_v32, %v1406_v3  ;;  %v1573_v3 = vrot.slane %v3701_v51, 1 }
 0x26a   :  { %v3640_v57 = vmax.f32 %v1417_v56, 0.0 }
 0x26b   :  { %v3642_v16 = vld.sshfl [vmem:[#allocation1] sm:$0xff pattern:$0x75316420] }
 0x26c   :  { %1514 = vst [vmem:[#allocation1] ss:$2 sm:$0xff] %v1419_v14  ;;  %v1438_v58 = vrot.slane %v3640_v57, 4 }
 0x26d   :  { %1516 = vst [vmem:[#allocation1 + $0x1] ss:$2 sm:$0xff] %v1433_v29  ;;  %v1393_v59 = vpop.f32.mrf.mxu1 }
 0x26e   :  { %1480 = vst [vmem:[#allocation1 + $0x11] ss:$2 sm:$0xff] %v3640_v57  ;;  %v1407_v61 = vmul.f32 %v3115_v36, %v1393_v59  ;;  %v1576_v59 = vrot.slane %v3701_v51, 4 }
 0x26f   :  { %1481 = vst [vmem:[#allocation1 + $0x20] ss:$2 sm:$0xff] %v1438_v58 }
 0x270   :  { %v1418_v0 = vadd.f32 %v3116_v32, %v1407_v61 }
 0x272   :  { %v3657_v63 = vmax.f32 %v1418_v0, 0.0 }
 0x274   :  { %v1527_v17 = vld.sshfl [vmem:[#allocation1] sm:$0xff pattern:$0x75316420]  ;;  %v1439_v18 = vrot.slane %v3657_v63, 4  ;;  %1482 = vst [vmem:[#allocation1 + $0x21] ss:$2 sm:$0xff] %v3657_v63 }
 0x275   :  { %1531 = vst [vmem:[#allocation1] ss:$2 sm:$0xff] %v1436_v48  ;;  %v1550_v19 = vsel %vm1506_vm12, %v1527_v17, 0.0  ;;  %v3663_v20 = vld.sshfl [vmem:[#allocation1 + $0x10] sm:$0xff pattern:$0x75316420]  ;;  %v1395_v23 = vpop.f32.mrf.mxu1 }
 0x276   :  { %1532 = vst [vmem:[#allocation1 + $0x1] ss:$2 sm:$0xff] %v3629_v53  ;;  %v1670_v26 = vrot.slane %v1550_v19, 1  ;;  %v1675_v27 = vrot.slane %v1550_v19, 6  ;;  %v1676_v28 = vrot.slane %v1550_v19, 7  ;;  %v1718_v31 = vperm.slane %v1550_v19, 0 }
 0x277   :  { %1518 = vst [vmem:[#allocation1 + $0x10] ss:$2 sm:$0xff] %v3613_v37  ;;  %v1671_v36 = vrot.slane %v1550_v19, 2  ;;  %v1672_v32 = vrot.slane %v1550_v19, 3  ;;  %v1673_v8 = vrot.slane %v1550_v19, 4  ;;  %v1674_v21 = vrot.slane %v1550_v19, 5 }
 0x278   :  { %1520 = vst [vmem:[#allocation1 + $0x11] ss:$2 sm:$0xff] %v1434_v38  ;;  %v1719_v33 = vperm.slane %v1670_v26, 0  ;;  %v1724_v13 = vperm.slane %v1675_v27, 0  ;;  %v1725_v14 = vperm.slane %v1676_v28, 0  ;;  %v3672_v29 = vsel %vm114_vm3, %v1496_v62, %v1718_v31 }
 0x279   :  { %1483 = vst [vmem:[#allocation1 + $0x30] ss:$2 sm:$0xff] %v1439_v18  ;;  %v1720_v22 = vperm.slane %v1671_v36, 0  ;;  %v1721_v34 = vperm.slane %v1672_v32, 0  ;;  %v1722_v39 = vperm.slane %v1673_v8, 0  ;;  %v1723_v43 = vperm.slane %v1674_v21, 0 }
 0x27a   :  { %v1831_v25 = vsel %vm114_vm3, %v1566_v4, %v1719_v33  ;;  %v3678_v42 = vsel %vm114_vm3, %v1571_v15, %v1724_v13  ;;  %v3681_v37 = vsel %vm114_vm3, %v1572_v30, %v1725_v14  ;;  %v3739_v30 = vsel %vm1456_vm0, %v3642_v16, 0.0 }
 0x27b   :  { %v3683_v38 = vld.sshfl [vmem:[#allocation1 + $0x20] sm:$0xff pattern:$0x75316420]  ;;  %v3686_v44 = vsel %vm114_vm3, %v1567_v9, %v1720_v22  ;;  %v3689_v48 = vsel %vm114_vm3, %v1568_v10, %v1721_v34  ;;  %v3692_v49 = vsel %vm114_vm3, %v1569_v11, %v1722_v39  ;;  %v3710_v55 = vsel %vm114_vm3, %v1570_v40, %v1723_v43 }
 0x27c   :  { %1522 = vst [vmem:[#allocation1 + $0x20] ss:$2 sm:$0xff] %v3619_v35  ;;  %v1448_v8 = vadd.s32 16, %v3226_v1  ;;  %v1578_v33 = vrot.slane %v3701_v51, 6  ;;  %v1579_v21 = vrot.slane %v3701_v51, 7 }
 0x27d   :  { %v1538_v52 = vld.sshfl [vmem:[#allocation1] sm:$0xff pattern:$0x75316420]  ;;  %1524 = vst [vmem:[#allocation1 + $0x21] ss:$2 sm:$0xff] %v1435_v41 }
 0x27e   :  { %v3717_v61 = vsel %vm1510_vm15, %v1538_v52, 0.0  ;;  %v3771_v50 = vmul.u32 2, %v1448_v8 }
 0x27f   :  { %v1528_v56 = vld.sshfl [vmem:[#allocation1 + $0x10] sm:$0xff pattern:$0x75316420]  ;;  %v1746_v53 = vperm.slane %v3717_v61, 0  ;;  %v1694_v13 = vrot.slane %v3717_v61, 1  ;;  %v1695_v22 = vrot.slane %v3717_v61, 2 }
 0x280   :  { %1533 = vst [vmem:[#allocation1 + $0x10] ss:$2 sm:$0xff] %v1437_v54  ;;  %v1551_v12 = vsel %vm1507_vm14, %v1528_v56, 0.0  ;;  %v3728_v54 = vld.sshfl [vmem:[#allocation1 + $0x30] sm:$0xff pattern:$0x75316420] }
 0x281   :  { %1534 = vst [vmem:[#allocation1 + $0x11] ss:$2 sm:$0xff] %v3640_v57  ;;  %v1677_v35 = vrot.slane %v1551_v12, 1  ;;  %v1726_v41 = vperm.slane %v1551_v12, 0  ;;  %v1678_v62 = vrot.slane %v1551_v12, 2  ;;  %v1679_v0 = vrot.slane %v1551_v12, 3 }
 0x282   :  { %v1680_v4 = vrot.slane %v1551_v12, 4  ;;  %v1681_v9 = vrot.slane %v1551_v12, 5  ;;  %v1682_v10 = vrot.slane %v1551_v12, 6  ;;  %v1683_v17 = vrot.slane %v1551_v12, 7  ;;  %1526 = vst [vmem:[#allocation1 + $0x30] ss:$2 sm:$0xff] %v3625_v46 }
 0x283   :  { %v1727_v11 = vperm.slane %v1677_v35, 0  ;;  %v3725_v15 = vsel %vm114_vm3, %v3701_v51, %v1726_v41  ;;  %v1728_v23 = vperm.slane %v1678_v62, 0  ;;  %v1729_v27 = vperm.slane %v1679_v0, 0 }
 0x284   :  { %v3731_v19 = vld.sshfl [vmem:[#allocation1 + $0x20] sm:$0xff pattern:$0x75316420]  ;;  %v1730_v28 = vperm.slane %v1680_v4, 0  ;;  %v1731_v31 = vperm.slane %v1681_v9, 0  ;;  %v3757_v16 = vsel %vm114_vm3, %v3739_v30, %v1746_v53  ;;  %v1733_v14 = vperm.slane %v1683_v17, 0 }
 0x285   :  { %v1839_v26 = vsel %vm114_vm3, %v1573_v3, %v1727_v11  ;;  %1535 = vst [vmem:[#allocation1 + $0x20] ss:$2 sm:$0xff] %v1438_v58  ;;  %v3743_v46 = vsel %vm114_vm3, %v1574_v5, %v1728_v23  ;;  %v3746_v36 = vsel %vm114_vm3, %v1575_v6, %v1729_v27  ;;  %v1732_v58 = vperm.slane %v1682_v10, 0 }
 0x286   :  { %1536 = vst [vmem:[#allocation1 + $0x21] ss:$2 sm:$0xff] %v3657_v63  ;;  %v3749_v32 = vsel %vm114_vm3, %v1576_v59, %v1730_v28  ;;  %v3752_v57 = vsel %vm114_vm3, %v1577_v2, %v1731_v31  ;;  %v1696_v34 = vrot.slane %v3717_v61, 3  ;;  %v1697_v39 = vrot.slane %v3717_v61, 4  ;;  %v1442_v2 = vld [vmem:[%s4402_s3 + $0x10] sm:$0xff] }
 0x287   :  { %v3769_v43 = vsel %vm114_vm3, %v1578_v33, %v1732_v58  ;;  %v3779_v51 = vsel %vm114_vm3, %v1579_v21, %v1733_v14  ;;  %v3782_v52 = vadd.s32 1, %v3771_v50  ;;  %v1590_v3 = vrot.slane %v3739_v30, 1 }
 0x288   :  { %v1539_v7 = vld.sshfl [vmem:[#allocation1 + $0x10] sm:$0xff pattern:$0x75316420]  ;;  %v1748_v5 = vperm.slane %v1695_v22, 0  ;;  %v1749_v56 = vperm.slane %v1696_v34, 0  ;;  %v1750_v6 = vperm.slane %v1697_v39, 0  ;;  %vm1454_vm6 = vcmp.eq.s32.totalorder %v1442_v2, %v3771_v50 }
 0x289   :  { %1943 = vst [vmem:[#allocation1 + $0x2] ss:$4 sm:$0xff] %v3672_v29  ;;  %v3766_v40 = vld.sshfl [vmem:[#allocation1 + $0x30] sm:$0xff pattern:$0x75316420]  ;;  %v1445_v29 = vld [vmem:[%s4402_s3 + $0x28] sm:$0xff]  ;;  %vm1508_vm4 = vcmp.eq.s32.totalorder %v1442_v2, %v3782_v52 }
 0x28a   :  { %1945 = vst [vmem:[#allocation1 + $0x3] ss:$4 sm:$0xff] %v1831_v25  ;;  %v1747_v25 = vperm.slane %v1694_v13, 0  ;;  %vm1511_vm1 = vcmp.eq.s32.totalorder %v1445_v29, %v3383_v47  ;;  %v1698_v63 = vrot.slane %v3717_v61, 5  ;;  %v1700_v59 = vrot.slane %v3717_v61, 7 }
 0x28b   :  { %1537 = vst [vmem:[#allocation1 + $0x30] ss:$2 sm:$0xff] %v1439_v18  ;;  %v1699_v18 = vrot.slane %v3717_v61, 6  ;;  %v1591_v35 = vrot.slane %v3739_v30, 2  ;;  %v1592_v41 = vrot.slane %v3739_v30, 3  ;;  %v1593_v62 = vrot.slane %v3739_v30, 4 }
 0x28c   :  { %v3795_v0 = vsel %vm114_vm3, %v1590_v3, %v1747_v25  ;;  %v1449_v4 = vadd.s32 24, %v3226_v1  ;;  %vm1457_vm2 = vcmp.eq.s32.totalorder %v1445_v29, %v3380_v45  ;;  %v1555_v61 = vsel %vm1511_vm1, %v1539_v7, 0.0 }
 0x28d   :  { %v3810_v10 = vsel %vm114_vm3, %v1591_v35, %v1748_v5  ;;  %v3813_v11 = vsel %vm114_vm3, %v1592_v41, %v1749_v56  ;;  %v3816_v1 = vsel %vm114_vm3, %v1593_v62, %v1750_v6  ;;  %v1594_v47 = vrot.slane %v3739_v30, 5 }
 0x28e   :  { %v1752_v17 = vperm.slane %v1699_v18, 0  ;;  %v1753_v53 = vperm.slane %v1700_v59, 0  ;;  %v1754_v23 = vperm.slane %v1555_v61, 0  ;;  %v1501_v27 = vsel %vm1457_vm2, %v3663_v20, 0.0 }
 0x28f   :  { %v1595_v28 = vrot.slane %v3739_v30, 6  ;;  %v1596_v31 = vrot.slane %v3739_v30, 7  ;;  %v1702_v58 = vrot.slane %v1555_v61, 2  ;;  %v1703_v8 = vrot.slane %v1555_v61, 3 }
 0x290   :  { %v1704_v7 = vrot.slane %v1555_v61, 4  ;;  %v1705_v45 = vrot.slane %v1555_v61, 5  ;;  %v1706_v20 = vrot.slane %v1555_v61, 6  ;;  %v3849_v13 = vmul.u32 2, %v1449_v4 }
 0x291   :  { %v3789_v12 = vld.sshfl [vmem:[#allocation1] sm:$0xff pattern:$0x73625140]  ;;  %v3844_v30 = vsel %vm114_vm3, %v1596_v31, %v1753_v53  ;;  %v1597_v14 = vrot.slane %v1501_v27, 1  ;;  %v1598_v22 = vrot.slane %v1501_v27, 2  ;;  %v1757_v39 = vperm.slane %v1703_v8, 0 }
 0x292   :  { %1956 = vst [vmem:[#allocation1] ss:$4 sm:$0xff] %v3678_v42  ;;  %v3807_v9 = vld.sshfl [vmem:[#allocation1 + $0x30] sm:$0xff pattern:$0x75316420]  ;;  %v1751_v42 = vperm.slane %v1698_v63, 0 }
 0x293   :  { %1958 = vst [vmem:[#allocation1 + $0x1] ss:$4 sm:$0xff] %v3681_v37  ;;  %v3821_v37 = vld.sshfl [vmem:[#allocation1 + $0x20] sm:$0xff pattern:$0x75316420]  ;;  %v1758_v25 = vperm.slane %v1704_v7, 0 }
 0x294   :  { %1959 = vst [vmem:[#allocation1 + $0x2] ss:$4 sm:$0xff] %v3725_v15  ;;  %v3832_v15 = vsel %vm1508_vm4, %v3731_v19, 0.0  ;;  %v3837_v33 = vsel %vm114_vm3, %v1594_v47, %v1751_v42  ;;  %v1707_v19 = vrot.slane %v1555_v61, 7  ;;  %v1759_v3 = vperm.slane %v1705_v45, 0 }
 0x295   :  { %1960 = vst [vmem:[#allocation1 + $0x3] ss:$4 sm:$0xff] %v1839_v26  ;;  %v1701_v26 = vrot.slane %v1555_v61, 1  ;;  %v1734_v21 = vperm.slane %v3832_v15, 0  ;;  %v1760_v5 = vperm.slane %v1706_v20, 0  ;;  %v1599_v56 = vrot.slane %v1501_v27, 3 }
 0x296   :  { %1947 = vst [vmem:[#allocation1 + $0x20] ss:$4 sm:$0xff] %v3686_v44  ;;  %v3840_v44 = vsel %vm114_vm3, %v1595_v28, %v1752_v17  ;;  %v1600_v6 = vrot.slane %v1501_v27, 4  ;;  %v1684_v63 = vrot.slane %v3832_v15, 1  ;;  %v1761_v18 = vperm.slane %v1707_v19, 0 }
 0x297   :  { %1949 = vst [vmem:[#allocation1 + $0x21] ss:$4 sm:$0xff] %v3689_v48  ;;  %v3847_v48 = vsel %vm114_vm3, %v1501_v27, %v1754_v23  ;;  %v1755_v34 = vperm.slane %v1701_v26, 0  ;;  %v1602_v59 = vrot.slane %v1501_v27, 6  ;;  %v3863_v35 = vsel %vm151_vm5, 0.0, %v3789_v12 }
 0x298   :  { %1951 = vst [vmem:[#allocation1 + $0x22] ss:$4 sm:$0xff] %v3692_v49  ;;  %v3854_v49 = vsel %vm1454_vm6, %v3646_v60, 0.0  ;;  %v1601_v60 = vrot.slane %v1501_v27, 5  ;;  %v3869_v62 = vadd.s32 1, %v3849_v13  ;;  %v1603_v2 = vrot.slane %v1501_v27, 7 }
 0x299   :  { %1953 = vst [vmem:[#allocation1 + $0x23] ss:$4 sm:$0xff] %v3710_v55  ;;  %v1756_v55 = vperm.slane %v1702_v58, 0  ;;  %v1846_v41 = vsel %vm114_vm3, %v3854_v49, %v1734_v21  ;;  %v3872_v4 = vsel %vm114_vm3, %v1597_v14, %v1755_v34  ;;  %v3880_v12 = vsel %vm114_vm3, %v1599_v56, %v1757_v39  ;;  %v1443_v26 = vld [vmem:[%s4402_s3 + $0x18] sm:$0xf] }
 0x29a   :  { %v3883_v47 = vsel %vm114_vm3, %v1600_v6, %v1758_v25  ;;  %v3889_v42 = vsel %vm114_vm3, %v1602_v59, %v1760_v5  ;;  %v2139_v17 = vrot.slane %v3863_v35, 2  ;;  %v1735_v23 = vperm.slane %v1684_v63, 0 }
 0x29b   :  { %v3895_v27 = vsel %vm114_vm3, %v1603_v2, %v1761_v18  ;;  %v1685_v58 = vrot.slane %v3832_v15, 2  ;;  %vm1509_vm7 = vcmp.eq.s32.totalorder %v1443_v26, %v3869_v62  ;;  %vm1455_vm11 = vcmp.eq.s32.totalorder %v1443_v26, %v3849_v13 }
 0x29c   :  { %v3857_v29 = vld.sshfl [vmem:[#allocation1] sm:$0xff pattern:$0x73625140]  ;;  %v1581_v20 = vrot.slane %v3854_v49, 2  ;;  %v2045_v19 = vrot.slane %v3863_v35, 1  ;;  %v1582_v14 = vrot.slane %v3854_v49, 3 }
 0x29d   :  { %1967 = vst [vmem:[#allocation1] ss:$4 sm:$0xff] %v3769_v43  ;;  %v3875_v43 = vsel %vm114_vm3, %v1598_v22, %v1756_v55  ;;  %v2048_v31 = vrot.slane %v3857_v29, 1  ;;  %v1553_v21 = vsel %vm1509_vm7, %v3766_v40, 0.0  ;;  %v1689_v22 = vrot.slane %v3832_v15, 6 }
 0x29e   :  { %1968 = vst [vmem:[#allocation1 + $0x1] ss:$4 sm:$0xff] %v3779_v51  ;;  %v3886_v51 = vsel %vm114_vm3, %v1601_v60, %v1759_v3  ;;  %v1736_v34 = vperm.slane %v1685_v58, 0  ;;  %v1690_v55 = vrot.slane %v3832_v15, 7  ;;  %v1583_v5 = vrot.slane %v3854_v49, 4 }
 0x29f   :  { %1969 = vst [vmem:[#allocation1 + $0x2] ss:$4 sm:$0xff] %v1846_v41  ;;  %v1584_v56 = vrot.slane %v3854_v49, 5  ;;  %v2236_v63 = vrot.slane %v3857_v29, 3  ;;  %v1585_v40 = vrot.slane %v3854_v49, 6  ;;  %v1691_v18 = vrot.slane %v1553_v21, 1 }
 0x2a0   :  { %v3877_v61 = vld.sshfl [vmem:[#allocation1 + $0x20] sm:$0xff pattern:$0x73625140]  ;;  %v1586_v59 = vrot.slane %v3854_v49, 7  ;;  %v1740_v2 = vperm.slane %v1689_v22, 0  ;;  %v2142_v26 = vrot.slane %v3857_v29, 2 }
 0x2a1   :  { %1961 = vst [vmem:[#allocation1 + $0x20] ss:$4 sm:$0xff] %v3743_v46  ;;  %v2140_v53 = vrot.slane %v3877_v61, 2  ;;  %v2046_v28 = vrot.slane %v3877_v61, 1  ;;  %v1580_v46 = vrot.slane %v3854_v49, 1  ;;  %v2234_v3 = vrot.slane %v3877_v61, 3 }
 0x2a2   :  { %1962 = vst [vmem:[#allocation1 + $0x21] ss:$4 sm:$0xff] %v3746_v36  ;;  %v1686_v36 = vrot.slane %v3832_v15, 3 }
 0x2a3   :  { %1963 = vst [vmem:[#allocation1 + $0x22] ss:$4 sm:$0xff] %v3749_v32  ;;  %v2141_v8 = vsel %vm1112_vm9, %v2139_v17, %v2140_v53  ;;  %v2049_v7 = vsel %vm1065_vm10, %v2046_v28, %v2048_v31  ;;  %v1687_v32 = vrot.slane %v3832_v15, 4  ;;  %v1847_v45 = vsel %vm114_vm3, %v1580_v46, %v1735_v23 }
 0x2a4   :  { %1964 = vst [vmem:[#allocation1 + $0x23] ss:$4 sm:$0xff] %v3752_v57  ;;  %2185 = vrot.lane.b32.xlu1 %v2141_v8, %s3149_s14  ;;  %2093 = vrot.lane.b32.xlu0 %v2049_v7, %s3150_s4  ;;  %v1688_v57 = vrot.slane %v3832_v15, 5  ;;  %v1737_v39 = vperm.slane %v1686_v36, 0  ;;  %v2047_v25 = vsel %vm1065_vm10, %v2045_v19, %v2046_v28  ;;  %v2233_v15 = vrot.slane %v3863_v35, 3 }
 0x2a5   :  { %1970 = vst [vmem:[#allocation1 + $0x3] ss:$4 sm:$0xff] %v1847_v45  ;;  %v1738_v6 = vperm.slane %v1687_v32, 0  ;;  %2091 = vrot.lane.b32.xlu2 %v2047_v25, %s3150_s4  ;;  %v1848_v17 = vsel %vm114_vm3, %v1581_v20, %v1736_v34  ;;  %v2237_v23 = vsel %vm1159_vm8, %v2234_v3, %v2236_v63  ;;  %v1499_v28 = vsel %vm1455_vm11, %v3665_v24, 0.0 }
 0x2a6   :  { %v1739_v60 = vperm.slane %v1688_v57, 0  ;;  %v1741_v46 = vperm.slane %v1690_v55, 0  ;;  %v1849_v58 = vsel %vm114_vm3, %v1582_v14, %v1737_v39  ;;  %v2235_v49 = vsel %vm1159_vm8, %v2233_v15, %v2234_v3 }
 0x2a7   :  { %v1742_v8 = vperm.slane %v1553_v21, 0  ;;  %v1850_v36 = vsel %vm114_vm3, %v1583_v5, %v1738_v6  ;;  %v1692_v32 = vrot.slane %v1553_v21, 2  ;;  %v1743_v45 = vperm.slane %v1691_v18, 0 }
 0x2a8   :  { %v1851_v24 = vsel %vm114_vm3, %v1584_v56, %v1739_v60  ;;  %v1693_v20 = vrot.slane %v1553_v21, 3  ;;  %v1852_v57 = vsel %vm114_vm3, %v1585_v40, %v1740_v2  ;;  %v1587_v14 = vrot.slane %v1499_v28, 1 }
 0x2a9   :  { %v1853_v22 = vsel %vm114_vm3, %v1586_v59, %v1741_v46  ;;  %v2143_v34 = vsel %vm1112_vm9, %v2140_v53, %v2142_v26  ;;  %v2328_v55 = vrot.slane %v3877_v61, 4  ;;  %v1854_v39 = vsel %vm114_vm3, %v1499_v28, %v1742_v8 }
 0x2aa   :  { %v1744_v25 = vperm.slane %v1692_v32, 0  ;;  %v1855_v3 = vsel %vm114_vm3, %v1587_v14, %v1743_v45  ;;  %v2330_v5 = vrot.slane %v3857_v29, 4  ;;  %v1745_v56 = vperm.slane %v1693_v20, 0 }
 0x2ab   :  { %v3936_v41 = vld.sshfl [vmem:[#allocation1 + $0x20] sm:$0xff pattern:$0x73625140]  ;;  %v1588_v53 = vrot.slane %v1499_v28, 2  ;;  %v1589_v18 = vrot.slane %v1499_v28, 3  ;;  %v2327_v15 = vrot.slane %v3863_v35, 4 }
 0x2ac   :  { %1971 = vst [vmem:[#allocation1 + $0x20] ss:$4 sm:$0xff] %v1848_v17  ;;  %2281 = vrot.lane.b32.xlu1 %v2237_v23, %s3148_s2  ;;  %2279 = vrot.lane.b32.xlu0 %v2235_v49, %s3148_s2  ;;  %v3950_v7 = vld.sshfl [vmem:[#allocation1] sm:$0xff pattern:$0x73625140]  ;;  %v2050_v19 = vrot.slane %v3936_v41, 1  ;;  %v2331_v40 = vsel %vm151_vm5, %v2328_v55, %v2330_v5 }
 0x2ad   :  { %1972 = vst [vmem:[#allocation1 + $0x21] ss:$4 sm:$0xff] %v1849_v58  ;;  %2187 = vrot.lane.b32.xlu2 %v2143_v34, %s3149_s14  ;;  %v2052_v21 = vrot.slane %v3950_v7, 1  ;;  %v1856_v60 = vsel %vm114_vm3, %v1588_v53, %v1744_v25  ;;  %v1857_v2 = vsel %vm114_vm3, %v1589_v18, %v1745_v56  ;;  %v2144_v17 = vrot.slane %v3936_v41, 2 }
 0x2ae   :  { %1973 = vst [vmem:[#allocation1 + $0x22] ss:$4 sm:$0xff] %v1850_v36  ;;  %v2329_v23 = vsel %vm151_vm5, %v2327_v15, %v2328_v55  ;;  %v2051_v58 = vsel %vm1065_vm10, %v2048_v31, %v2050_v19  ;;  %v2146_v49 = vrot.slane %v3950_v7, 2  ;;  %v2238_v32 = vrot.slane %v3936_v41, 3 }
 0x2af   :  { %1974 = vst [vmem:[#allocation1 + $0x23] ss:$4 sm:$0xff] %v1851_v24  ;;  %v2053_v6 = vsel %vm1065_vm10, %v2050_v19, %v2052_v21  ;;  %v2145_v28 = vsel %vm1112_vm9, %v2142_v26, %v2144_v17  ;;  %v2240_v31 = vrot.slane %v3950_v7, 3  ;;  %v2332_v24 = vrot.slane %v3936_v41, 4 }
 0x2b0   :  { %1977 = vst [vmem:[#allocation1] ss:$4 sm:$0xff] %v1852_v57 }
 0x2b1   :  { %1978 = vst [vmem:[#allocation1 + $0x1] ss:$4 sm:$0xff] %v1853_v22 }
 0x2b2   :  { %1979 = vst [vmem:[#allocation1 + $0x2] ss:$4 sm:$0xff] %v1854_v39 }
 0x2b3   :  { %1980 = vst [vmem:[#allocation1 + $0x3] ss:$4 sm:$0xff] %v1855_v3 }
 0x2b4   :  { %2097 = vrot.lane.b32.xlu1 %v2053_v6, %s3150_s4  ;;  %2375 = vrot.lane.b32.xlu0 %v2331_v40, %s3146_s30 }
 0x2b5   :  { %2373 = vrot.lane.b32.xlu2 %v2329_v23, %s3146_s30 }
 0x2b6   :  { %v3974_v59 = vld.sshfl [vmem:[#allocation1 + $0x20] sm:$0xff pattern:$0x73625140] }
 0x2b7   :  { %1981 = vst [vmem:[#allocation1 + $0x20] ss:$4 sm:$0xff] %v1856_v60  ;;  %v2054_v8 = vrot.slane %v3974_v59, 1  ;;  %v2336_v22 = vrot.slane %v3974_v59, 4  ;;  %v2148_v34 = vrot.slane %v3974_v59, 2 }
 0x2b8   :  { %1982 = vst [vmem:[#allocation1 + $0x21] ss:$4 sm:$0xff] %v1857_v2 }
 0x2b9   :  { %v2055_v45 = vsel %vm1065_vm10, %v2052_v21, %v2054_v8 }
 0x2ba   :  { %v3980_v46 = vld.sshfl [vmem:[#allocation1] sm:$0xff pattern:$0x73625140] }
 0x2bb   :  { %1985 = vst [vmem:[#allocation1 + $0x2] ss:$4 sm:$0xff] %v3757_v16  ;;  %v2147_v16 = vsel %vm1112_vm9, %v2144_v17, %v2146_v49  ;;  %v2150_v56 = vrot.slane %v3980_v46, 2 }
 0x2bc   :  { %2189 = vrot.lane.b32.xlu1 %v2145_v28, %s3149_s14  ;;  %1986 = vst [vmem:[#allocation1 + $0x3] ss:$4 sm:$0xff] %v3795_v0  ;;  %2095 = vrot.lane.b32.xlu0 %v2051_v58, %s3150_s4  ;;  %v1446_v0 = vld [vmem:[%s4402_s3 + $0x30] sm:$0xff] }
 0x2bd   :  { %2191 = vrot.lane.b32.xlu2 %v2147_v16, %s3149_s14  ;;  %vm1512_vm12 = vcmp.eq.s32.totalorder %v1446_v0, %v3782_v52  ;;  %vm1458_vm13 = vcmp.eq.s32.totalorder %v1446_v0, %v3771_v50  ;;  %v1447_v50 = vld [vmem:[%s4402_s3 + $0x38] sm:$0xf]  ;;  %v2151_v60 = vsel %vm1112_vm9, %v2148_v34, %v2150_v56  ;;  %v2056_v16 = vrot.slane %v3980_v46, 1 }
 0x2be   :  { %v4021_v52 = vsel %vm1512_vm12, %v3821_v37, 0.0  ;;  %v2244_v37 = vrot.slane %v3980_v46, 3  ;;  %vm1513_vm14 = vcmp.eq.s32.totalorder %v1447_v50, %v3869_v62  ;;  %vm1459_vm15 = vcmp.eq.s32.totalorder %v1447_v50, %v3849_v13 }
 0x2bf   :  { %v3992_v36 = vld.sshfl [vmem:[#allocation1 + $0x20] sm:$0xff pattern:$0x73625140]  ;;  %v1762_v26 = vperm.slane %v4021_v52, 0  ;;  %v1709_v57 = vrot.slane %v4021_v52, 2  ;;  %v1557_v55 = vsel %vm1513_vm14, %v3807_v9, 0.0 }
 0x2c0   :  { %1987 = vst [vmem:[#allocation1 + $0x20] ss:$4 sm:$0xff] %v3810_v10  ;;  %v1713_v39 = vrot.slane %v4021_v52, 6  ;;  %v1714_v25 = vrot.slane %v4021_v52, 7  ;;  %v1715_v40 = vrot.slane %v1557_v55, 1  ;;  %v1770_v0 = vperm.slane %v1557_v55, 0 }
 0x2c1   :  { %1988 = vst [vmem:[#allocation1 + $0x21] ss:$4 sm:$0xff] %v3813_v11  ;;  %v2241_v11 = vsel %vm1159_vm8, %v2238_v32, %v2240_v31  ;;  %v1764_v21 = vperm.slane %v1709_v57, 0 }
 0x2c2   :  { %1989 = vst [vmem:[#allocation1 + $0x22] ss:$4 sm:$0xff] %v3816_v1  ;;  %v2242_v1 = vrot.slane %v3974_v59, 3  ;;  %v1768_v15 = vperm.slane %v1713_v39, 0  ;;  %v1769_v28 = vperm.slane %v1714_v25, 0  ;;  %v2338_v39 = vrot.slane %v3980_v46, 4 }
 0x2c3   :  { %1990 = vst [vmem:[#allocation1 + $0x23] ss:$4 sm:$0xff] %v3837_v33  ;;  %v4011_v10 = vld.sshfl [vmem:[#allocation1] sm:$0xff pattern:$0x73625140]  ;;  %v2239_v33 = vsel %vm1159_vm8, %v2236_v63, %v2238_v32  ;;  %v4047_v63 = vsel %vm1458_vm13, %v3683_v38, 0.0 }
 0x2c4   :  { %2099 = vrot.lane.b32.xlu1 %v2055_v45, %s3150_s4  ;;  %1993 = vst [vmem:[#allocation1] ss:$4 sm:$0xff] %v3840_v44  ;;  %2285 = vrot.lane.b32.xlu0 %v2241_v11, %s3148_s2  ;;  %v1708_v44 = vrot.slane %v4021_v52, 1  ;;  %v1710_v38 = vrot.slane %v4021_v52, 3  ;;  %v1604_v14 = vrot.slane %v4047_v63, 1  ;;  %v1874_v62 = vsel %vm114_vm3, %v4047_v63, %v1762_v26 }
 0x2c5   :  { %1994 = vst [vmem:[#allocation1 + $0x1] ss:$4 sm:$0xff] %v3844_v30  ;;  %2283 = vrot.lane.b32.xlu2 %v2239_v33, %s3148_s2  ;;  %v2334_v30 = vrot.slane %v3950_v7, 4  ;;  %v1605_v9 = vrot.slane %v4047_v63, 2  ;;  %v1606_v53 = vrot.slane %v4047_v63, 3  ;;  %v1608_v13 = vrot.slane %v4047_v63, 5 }
 0x2c6   :  { %1995 = vst [vmem:[#allocation1 + $0x2] ss:$4 sm:$0xff] %v3847_v48  ;;  %v1763_v19 = vperm.slane %v1708_v44, 0  ;;  %v1765_v3 = vperm.slane %v1710_v38, 0  ;;  %v1609_v23 = vrot.slane %v4047_v63, 6  ;;  %v1610_v32 = vrot.slane %v4047_v63, 7 }
 0x2c7   :  { %1996 = vst [vmem:[#allocation1 + $0x3] ss:$4 sm:$0xff] %v3872_v4  ;;  %v2245_v4 = vsel %vm1159_vm8, %v2242_v1, %v2244_v37  ;;  %v2335_v20 = vsel %vm151_vm5, %v2332_v24, %v2334_v30  ;;  %v2337_v6 = vsel %vm151_vm5, %v2334_v30, %v2336_v22  ;;  %v1876_v2 = vsel %vm114_vm3, %v1605_v9, %v1764_v21 }
 0x2c8   :  { %v1877_v58 = vsel %vm114_vm3, %v1606_v53, %v1765_v3  ;;  %v4107_v11 = vsel %vm151_vm5, %v3992_v36, 0.0  ;;  %v1771_v33 = vperm.slane %v1715_v40, 0  ;;  %v2057_v44 = vsel %vm1065_vm10, %v2054_v8, %v2056_v16  ;;  %v3097_v40 = vld [vmem:[%s4409_s10 + $0x30] sm:$0xff] }
 0x2c9   :  { %v1717_v30 = vrot.slane %v1557_v55, 3  ;;  %v2246_v26 = vrot.slane %v4107_v11, 3  ;;  %v4156_v25 = vsel %vm151_vm5, 0.0, %v4011_v10 }
 0x2ca   :  { %v4035_v48 = vld.sshfl [vmem:[#allocation1 + $0x20] sm:$0xff pattern:$0x73625140]  ;;  %v2060_v3 = vrot.slane %v4156_v25, 1 }
 0x2cb   :  { %1997 = vst [vmem:[#allocation1 + $0x20] ss:$4 sm:$0xff] %v3875_v43  ;;  %v1773_v38 = vperm.slane %v1717_v30, 0  ;;  %v2247_v21 = vsel %vm1159_vm8, %v2244_v37, %v2246_v26  ;;  %v2155_v10 = vrot.slane %v4035_v48, 2 }
 0x2cc   :  { %2289 = vrot.lane.b32.xlu1 %v2245_v4, %s3148_s2  ;;  %1998 = vst [vmem:[#allocation1 + $0x21] ss:$4 sm:$0xff] %v3880_v12  ;;  %2379 = vrot.lane.b32.xlu0 %v2335_v20, %s3146_s30  ;;  %v1711_v12 = vrot.slane %v4021_v52, 4  ;;  %v1880_v4 = vsel %vm114_vm3, %v1609_v23, %v1768_v15  ;;  %v2249_v15 = vrot.slane %v4035_v48, 3 }
 0x2cd   :  { %1999 = vst [vmem:[#allocation1 + $0x22] ss:$4 sm:$0xff] %v3883_v47  ;;  %v1712_v47 = vrot.slane %v4021_v52, 5  ;;  %v1716_v52 = vrot.slane %v1557_v55, 2  ;;  %v2058_v55 = vrot.slane %v4107_v11, 1 }
 0x2ce   :  { %2000 = vst [vmem:[#allocation1 + $0x23] ss:$4 sm:$0xff] %v3886_v51  ;;  %v4059_v43 = vld.sshfl [vmem:[#allocation1] sm:$0xff pattern:$0x73625140]  ;;  %v2333_v51 = vsel %vm151_vm5, %v2330_v5, %v2332_v24  ;;  %v1766_v5 = vperm.slane %v1711_v12, 0 }
 0x2cf   :  { %2003 = vst [vmem:[#allocation1] ss:$4 sm:$0xff] %v3889_v42  ;;  %v1875_v42 = vsel %vm114_vm3, %v1604_v14, %v1763_v19  ;;  %2377 = vrot.lane.b32.xlu2 %v2333_v51, %s3146_s30  ;;  %v1767_v18 = vperm.slane %v1712_v47, 0  ;;  %v1772_v57 = vperm.slane %v1716_v52, 0  ;;  %v2243_v19 = vsel %vm1159_vm8, %v2240_v31, %v2242_v1 }
 0x2d0   :  { %2004 = vst [vmem:[#allocation1 + $0x1] ss:$4 sm:$0xff] %v3895_v27  ;;  %v1503_v27 = vsel %vm1459_vm15, %v3728_v54, 0.0  ;;  %v1607_v54 = vrot.slane %v4047_v63, 4  ;;  %v1881_v63 = vsel %vm114_vm3, %v1610_v32, %v1769_v28  ;;  %v2340_v1 = vrot.slane %v4107_v11, 4  ;;  %v3095_v32 = vld [vmem:[%s4409_s10 + $0x20] sm:$0xff] }
 0x2d1   :  { %2005 = vst [vmem:[#allocation1 + $0x2] ss:$4 sm:$0xff] %v1874_v62  ;;  %v1879_v24 = vsel %vm114_vm3, %v1608_v13, %v1767_v18  ;;  %v1611_v36 = vrot.slane %v1503_v27, 1  ;;  %v1882_v20 = vsel %vm114_vm3, %v1503_v27, %v1770_v0  ;;  %v1612_v14 = vrot.slane %v1503_v27, 2 }
 0x2d2   :  { %2006 = vst [vmem:[#allocation1 + $0x3] ss:$4 sm:$0xff] %v1875_v42  ;;  %v1878_v45 = vsel %vm114_vm3, %v1607_v54, %v1766_v5  ;;  %v1613_v12 = vrot.slane %v1503_v27, 3  ;;  %v2149_v62 = vsel %vm1112_vm9, %v2146_v49, %v2148_v34  ;;  %v2339_v49 = vsel %vm151_vm5, %v2336_v22, %v2338_v39 }
 0x2d3   :  { %v1883_v8 = vsel %vm114_vm3, %v1611_v36, %v1771_v33  ;;  %v1884_v47 = vsel %vm114_vm3, %v1612_v14, %v1772_v57  ;;  %v2059_v34 = vsel %vm1065_vm10, %v2056_v16, %v2058_v55  ;;  %v2152_v42 = vrot.slane %v4107_v11, 2 }
 0x2d4   :  { %2381 = vrot.lane.b32.xlu1 %v2337_v6, %s3146_s30  ;;  %2195 = vrot.lane.b32.xlu0 %v2151_v60, %s3149_s14  ;;  %v1885_v31 = vsel %vm114_vm3, %v1613_v12, %v1773_v38  ;;  %v2061_v22 = vrot.slane %v4035_v48, 1  ;;  %v2341_v9 = vsel %vm151_vm5, %v2338_v39, %v2340_v1  ;;  %v2063_v5 = vrot.slane %v4059_v43, 1  ;;  %v3098_v6 = vld [vmem:[%s4409_s10 + $0x38] sm:$0xff] }
 0x2d5   :  { %v4098_v17 = vld.sshfl [vmem:[#allocation1 + $0x20] sm:$0xff pattern:$0x73625140]  ;;  %v2153_v37 = vsel %vm1112_vm9, %v2150_v56, %v2152_v42  ;;  %v2157_v56 = vrot.slane %v4059_v43, 2  ;;  %2590 = vmatpush.bf16.msrb.mxu2 %v3098_v6  ;;  %3099 = vmatpush.bf16.msrb.mxu3 %v3098_v6  ;;  %v2154_v60 = vrot.slane %v4156_v25, 2  ;;  %v2251_v23 = vrot.slane %v4059_v43, 3 }
 0x2d6   :  { %2007 = vst [vmem:[#allocation1 + $0x20] ss:$4 sm:$0xff] %v1876_v2  ;;  %v2062_v27 = vsel %vm1065_vm10, %v2060_v3, %v2061_v22  ;;  %v2064_v53 = vsel %vm1065_vm10, %v2061_v22, %v2063_v5  ;;  %v2065_v54 = vrot.slane %v4098_v17, 1  ;;  %v3096_v2 = vld [vmem:[%s4409_s10 + $0x28] sm:$0xff]  ;;  %v2248_v0 = vrot.slane %v4156_v25, 3 }
 0x2d7   :  { %2008 = vst [vmem:[#allocation1 + $0x21] ss:$4 sm:$0xff] %v1877_v58  ;;  %2101 = vrot.lane.b32.xlu2 %v2057_v44, %s3150_s4  ;;  %v2158_v18 = vsel %vm1112_vm9, %v2155_v10, %v2157_v56  ;;  %v2156_v13 = vsel %vm1112_vm9, %v2154_v60, %v2155_v10  ;;  %v2252_v16 = vsel %vm1159_vm8, %v2249_v15, %v2251_v23  ;;  %v2343_v33 = vrot.slane %v4035_v48, 4 }
 0x2d8   :  { %2009 = vst [vmem:[#allocation1 + $0x22] ss:$4 sm:$0xff] %v1878_v45  ;;  %v2066_v58 = vsel %vm1065_vm10, %v2063_v5, %v2065_v54  ;;  %v2159_v45 = vrot.slane %v4098_v17, 2  ;;  %v2250_v52 = vsel %vm1159_vm8, %v2248_v0, %v2249_v15  ;;  %v2345_v44 = vrot.slane %v4059_v43, 4 }
 0x2d9   :  { %2010 = vst [vmem:[#allocation1 + $0x23] ss:$4 sm:$0xff] %v1879_v24  ;;  %v4115_v50 = vld.sshfl [vmem:[#allocation1] sm:$0xff pattern:$0x73625140]  ;;  %2591 = vmatpush.bf16.msrb.mxu2 %v3097_v40  ;;  %3100 = vmatpush.bf16.msrb.mxu3 %v3097_v40  ;;  %v3094_v24 = vld [vmem:[%s4409_s10 + $0x18] sm:$0xff] }
 0x2da   :  { %2013 = vst [vmem:[#allocation1] ss:$4 sm:$0xff] %v1880_v4  ;;  %v2160_v4 = vsel %vm1112_vm9, %v2157_v56, %v2159_v45  ;;  %v2346_v36 = vsel %vm151_vm5, %v2343_v33, %v2345_v44  ;;  %v2347_v12 = vrot.slane %v4098_v17, 4  ;;  %v2349_v39 = vrot.slane %v4115_v50, 4 }
 0x2db   :  { %2014 = vst [vmem:[#allocation1 + $0x1] ss:$4 sm:$0xff] %v1881_v63  ;;  %v3093_v63 = vld [vmem:[%s4409_s10 + $0x10] sm:$0xff] }
 0x2dc   :  { %2293 = vrot.lane.b32.xlu1 %v2246_v26, %s3148_s2  ;;  %2015 = vst [vmem:[#allocation1 + $0x2] ss:$4 sm:$0xff] %v1882_v20  ;;  %2287 = vrot.lane.b32.xlu0 %v2243_v19, %s3148_s2  ;;  %v2342_v26 = vrot.slane %v4156_v25, 4  ;;  %v2253_v20 = vrot.slane %v4098_v17, 3  ;;  %v2067_v19 = vrot.slane %v4115_v50, 1 }
 0x2dd   :  { %2016 = vst [vmem:[#allocation1 + $0x3] ss:$4 sm:$0xff] %v1883_v8  ;;  %2592 = vmatpush.bf16.msrb.mxu2 %v3096_v2  ;;  %3101 = vmatpush.bf16.msrb.mxu3 %v3096_v2  ;;  %v3092_v8 = vld [vmem:[%s4409_s10 + $0x8] sm:$0xff] }
 0x2de   :  { %v2344_v57 = vsel %vm151_vm5, %v2342_v26, %v2343_v33  ;;  %v2254_v14 = vsel %vm1159_vm8, %v2251_v23, %v2253_v20 }
 0x2df   :  { %2193 = vrot.lane.b32.xlu2 %v2149_v62, %s3149_s14 }
 0x2e0   :  { %v4134_v51 = vld.sshfl [vmem:[#allocation1 + $0x20] sm:$0xff pattern:$0x73625140] }
 0x2e1   :  { %2017 = vst [vmem:[#allocation1 + $0x20] ss:$4 sm:$0xff] %v1884_v47  ;;  %2593 = vmatpush.bf16.msrb.mxu2 %v3095_v32  ;;  %3102 = vmatpush.bf16.msrb.mxu3 %v3095_v32  ;;  %v2068_v47 = vsel %vm1065_vm10, %v2065_v54, %v2067_v19  ;;  %v2163_v10 = vrot.slane %v4134_v51, 2 }
 0x2e2   :  { %2018 = vst [vmem:[#allocation1 + $0x21] ss:$4 sm:$0xff] %v1885_v31 }
 0x2e4   :  { %2387 = vrot.lane.b32.xlu1 %v2340_v1, %s3146_s30  ;;  %2105 = vrot.lane.b32.xlu0 %v2058_v55, %s3150_s4  ;;  %v2348_v1 = vsel %vm151_vm5, %v2345_v44, %v2347_v12  ;;  %v3091_v55 = vld [vmem:[%s4409_s10] sm:$0xff]  ;;  %v2351_v44 = vrot.slane %v4134_v51, 4 }
 0x2e5   :  { %2594 = vmatpush.bf16.msrb.mxu2 %v3094_v24  ;;  %3103 = vmatpush.bf16.msrb.mxu3 %v3094_v24  ;;  %v4250_v60 = vld.sshfl [vmem:[#allocation1] sm:$0xff pattern:$0x73625140] }
 0x2e6   :  { %v2259_v32 = vrot.slane %v4250_v60, 3 }
 0x2e7   :  { %2383 = vrot.lane.b32.xlu2 %v2339_v49, %s3146_s30  ;;  %v2161_v49 = vrot.slane %v4115_v50, 2 }
 0x2e9   :  { %2595 = vmatpush.bf16.msrb.mxu2 %v3093_v63  ;;  %3104 = vmatpush.bf16.msrb.mxu3 %v3093_v63  ;;  %v2162_v22 = vsel %vm1112_vm9, %v2159_v45, %v2161_v49  ;;  %v2020_v0 = vld.sshfl [vmem:[#allocation1 + $0x20] sm:$0xff pattern:$0x73625140] }
 0x2ec   :  { %2103 = vrot.lane.b32.xlu1 %v2059_v34, %s3150_s4  ;;  %2291 = vrot.lane.b32.xlu0 %v2247_v21, %s3148_s2  ;;  %v2350_v21 = vsel %vm151_vm5, %v2347_v12, %v2349_v39 }
 0x2ed   :  { %2596 = vmatpush.bf16.msrb.mxu2 %v3092_v8  ;;  %3105 = vmatpush.bf16.msrb.mxu3 %v3092_v8 }
 0x2ef   :  { %2199 = vrot.lane.b32.xlu2 %v2152_v42, %s3149_s14 }
 0x2f1   :  { %2597 = vmatpush.bf16.msrb.mxu2 %v3091_v55  ;;  %3106 = vmatpush.bf16.msrb.mxu3 %v3091_v55 }
 0x2f4   :  { %2197 = vrot.lane.b32.xlu1 %v2153_v37, %s3149_s14  ;;  %2107 = vrot.lane.b32.xlu0 %v2062_v27, %s3150_s4  ;;  %v2255_v37 = vrot.slane %v4115_v50, 3 }
 0x2f6   :  { %v2256_v6 = vsel %vm1159_vm8, %v2253_v20, %v2255_v37  ;;  %v2352_v20 = vsel %vm151_vm5, %v2349_v39, %v2351_v44 }
 0x2f7   :  { %2385 = vrot.lane.b32.xlu2 %v2341_v9, %s3146_s30 }
 0x2fc   :  { %2109 = vrot.lane.b32.xlu1 %v2064_v53, %s3150_s4  ;;  %2203 = vrot.lane.b32.xlu0 %v2158_v18, %s3149_s14  ;;  %v2164_v18 = vsel %vm1112_vm9, %v2161_v49, %v2163_v10 }
 0x2ff   :  { %2201 = vrot.lane.b32.xlu2 %v2156_v13, %s3149_s14  ;;  %v2092_v28 = vpop.permute.xlu2 %2091 }
 0x300   :  { %v2123_v42 = vadd.f32 %v2092_v28, %v3863_v35  ;;  %v2257_v35 = vrot.slane %v4134_v51, 3 }
 0x302   :  { %v2258_v15 = vsel %vm1159_vm8, %v2255_v37, %v2257_v35  ;;  %v2260_v24 = vsel %vm1159_vm8, %v2257_v35, %v2259_v32  ;;  %v2353_v37 = vrot.slane %v4250_v60, 4 }
 0x304   :  { %2111 = vrot.lane.b32.xlu1 %v2066_v58, %s3150_s4  ;;  %2297 = vrot.lane.b32.xlu0 %v2252_v16, %s3148_s2 }
 0x307   :  { %2295 = vrot.lane.b32.xlu2 %v2250_v52, %s3148_s2  ;;  %v2188_v30 = vpop.permute.xlu2 %2187  ;;  %v2071_v52 = vrot.slane %v4250_v60, 1 }
 0x30c   :  { %2205 = vrot.lane.b32.xlu1 %v2160_v4, %s3149_s14  ;;  %2391 = vrot.lane.b32.xlu0 %v2346_v36, %s3146_s30  ;;  %v4265_v4 = vsel %vm151_vm5, %v2020_v0, 0.0 }
 0x30d   :  { %v2073_v26 = vrot.slane %v4265_v4, 1  ;;  %v2167_v8 = vrot.slane %v4265_v4, 2 }
 0x30f   :  { %2389 = vrot.lane.b32.xlu2 %v2344_v57, %s3146_s30  ;;  %v2374_v38 = vpop.permute.xlu2 %2373  ;;  %v2074_v12 = vsel %vm1065_vm10, %v2071_v52, %v2073_v26 }
 0x314   :  { %2299 = vrot.lane.b32.xlu1 %v2254_v14, %s3148_s2  ;;  %2113 = vrot.lane.b32.xlu0 %v2068_v47, %s3150_s4 }
 0x316   :  { %v2186_v62 = vpop.permute.xlu1 %2185  ;;  %v2094_v31 = vpop.permute.xlu0 %2093 }
 0x317   :  { %2393 = vrot.lane.b32.xlu2 %v2348_v1, %s3146_s30  ;;  %v4234_v34 = vpop.permute.xlu2 %2191  ;;  %v2217_v3 = vadd.f32 %v2186_v62, %v2123_v42  ;;  %v2124_v5 = vadd.f32 %v2094_v31, %v3877_v61  ;;  %v2069_v61 = vrot.slane %v4134_v51, 1 }
 0x319   :  { %v2218_v54 = vadd.f32 %v2188_v30, %v2124_v5  ;;  %v2070_v58 = vsel %vm1065_vm10, %v2067_v19, %v2069_v61  ;;  %v2072_v30 = vsel %vm1065_vm10, %v2069_v61, %v2071_v52 }
 0x31c   :  { %2395 = vrot.lane.b32.xlu1 %v2350_v21, %s3146_s30  ;;  %2207 = vrot.lane.b32.xlu0 %v2162_v22, %s3149_s14  ;;  %v2355_v21 = vrot.slane %v4265_v4, 4 }
 0x31e   :  { %v2282_v27 = vpop.permute.xlu1 %2281  ;;  %v2280_v9 = vpop.permute.xlu0 %2279 }
 0x31f   :  { %v2311_v56 = vadd.f32 %v2280_v9, %v2217_v3  ;;  %2301 = vrot.lane.b32.xlu2 %v2256_v6, %s3148_s2  ;;  %v2284_v40 = vpop.permute.xlu2 %2283  ;;  %v2312_v2 = vadd.f32 %v2282_v27, %v2218_v54  ;;  %v2356_v9 = vsel %vm151_vm5, %v2353_v37, %v2355_v21  ;;  %v2261_v6 = vrot.slane %v4265_v4, 3 }
 0x321   :  { %v2405_v53 = vadd.f32 %v2374_v38, %v2311_v56  ;;  %v2165_v38 = vrot.slane %v4250_v60, 2 }
 0x323   :  { %v2437_v13 = vrot.slane %v2405_v53, 4  ;;  %2451 = vst [vmem:[#allocation1] ss:$2 sm:$0xff] %v2405_v53  ;;  %v2168_v1 = vsel %vm1112_vm9, %v2165_v38, %v2167_v8  ;;  %v2166_v3 = vsel %vm1112_vm9, %v2163_v10, %v2165_v38  ;;  %v2262_v53 = vsel %vm1159_vm8, %v2259_v32, %v2261_v6 }
 0x324   :  { %2209 = vrot.lane.b32.xlu1 %v2164_v18, %s3149_s14  ;;  %2303 = vrot.lane.b32.xlu0 %v2258_v15, %s3148_s2 }
 0x325   :  { %2453 = vst [vmem:[#allocation1 + $0x1] ss:$2 sm:$0xff] %v2437_v13 }
 0x326   :  { %v2098_v23 = vpop.permute.xlu1 %2097  ;;  %v2376_v28 = vpop.permute.xlu0 %2375 }
 0x327   :  { %v2406_v16 = vadd.f32 %v2376_v28, %v2312_v2  ;;  %2115 = vrot.lane.b32.xlu2 %v2070_v58, %s3150_s4  ;;  %v2126_v42 = vadd.f32 %v2098_v23, %v3936_v41  ;;  %v2354_v41 = vsel %vm151_vm5, %v2351_v44, %v2353_v37 }
 0x329   :  { %v2438_v45 = vrot.slane %v2406_v16, 4  ;;  %2455 = vst [vmem:[#allocation1 + $0x10] ss:$2 sm:$0xff] %v2406_v16  ;;  %v2378_v33 = vpop.permute.xlu2 %2377  ;;  %v2220_v5 = vadd.f32 %v4234_v34, %v2126_v42 }
 0x32b   :  { %2457 = vst [vmem:[#allocation1 + $0x11] ss:$2 sm:$0xff] %v2438_v45 }
 0x32c   :  { %2305 = vrot.lane.b32.xlu1 %v2260_v24, %s3148_s2  ;;  %2117 = vrot.lane.b32.xlu0 %v2072_v30, %s3150_s4  ;;  %v2466_v47 = vld.sshfl [vmem:[#allocation1] sm:$0xff pattern:$0x75316420] }
 0x32e   :  { %v2190_v36 = vpop.permute.xlu1 %2189  ;;  %v2096_v63 = vpop.permute.xlu0 %2095 }
 0x32f   :  { %v2125_v57 = vadd.f32 %v2096_v63, %v3857_v29  ;;  %2397 = vrot.lane.b32.xlu2 %v2352_v20, %s3146_s30 }
 0x331   :  { %v2219_v19 = vadd.f32 %v2190_v36, %v2125_v57  ;;  %v2102_v14 = vpop.permute.xlu2 %2101 }
 0x332   :  { %v2467_v62 = vld.sshfl [vmem:[#allocation1 + $0x10] sm:$0xff pattern:$0x75316420]  ;;  %v2128_v34 = vadd.f32 %v2102_v14, %v3974_v59 }
 0x333   :  { %v2313_v31 = vadd.f32 %v2284_v40, %v2219_v19  ;;  %v2518_v55 = vpack.c.bf16 %v2467_v62, %v2466_v47 }
 0x334   :  { %2119 = vrot.lane.b32.xlu1 %v2074_v12, %s3150_s4  ;;  %2213 = vrot.lane.b32.xlu0 %v2168_v1, %s3149_s14 }
 0x335   :  { %v2407_v29 = vadd.f32 %v2378_v33, %v2313_v31  ;;  %2598 = vmatmul.bf16.vlgmr.msrb.gmra.mxu2 %v2518_v55 }
 0x336   :  { %v2100_v39 = vpop.permute.xlu1 %2099  ;;  %v2286_v49 = vpop.permute.xlu0 %2285 }
 0x337   :  { %v2439_v22 = vrot.slane %v2407_v29, 4  ;;  %2459 = vst [vmem:[#allocation1 + $0x20] ss:$2 sm:$0xff] %v2407_v29  ;;  %2211 = vrot.lane.b32.xlu2 %v2166_v3, %s3149_s14  ;;  %v2314_v10 = vadd.f32 %v2286_v49, %v2220_v5  ;;  %v2127_v2 = vadd.f32 %v2100_v39, %v3950_v7 }
 0x339   :  { %2461 = vst [vmem:[#allocation1 + $0x21] ss:$2 sm:$0xff] %v2439_v22  ;;  %v2194_v27 = vpop.permute.xlu2 %2193 }
 0x33a   :  { %v2221_v52 = vadd.f32 %v2194_v27, %v2127_v2 }
 0x33c   :  { %2401 = vrot.lane.b32.xlu1 %v2356_v9, %s3146_s30  ;;  %2399 = vrot.lane.b32.xlu0 %v2354_v41, %s3146_s30 }
 0x33e   :  { %v2290_v56 = vpop.permute.xlu1 %2289  ;;  %v2380_v35 = vpop.permute.xlu0 %2379 }
 0x33f   :  { %v2408_v40 = vadd.f32 %v2380_v35, %v2314_v10  ;;  %2307 = vrot.lane.b32.xlu2 %v2262_v53, %s3148_s2 }
 0x340   :  { %v2468_v58 = vld.sshfl [vmem:[#allocation1 + $0x20] sm:$0xff pattern:$0x75316420] }
 0x341   :  { %v2440_v18 = vrot.slane %v2408_v40, 4  ;;  %2463 = vst [vmem:[#allocation1 + $0x30] ss:$2 sm:$0xff] %v2408_v40  ;;  %v2384_v54 = vpop.permute.xlu2 %2383 }
 0x343   :  { %2465 = vst [vmem:[#allocation1 + $0x31] ss:$2 sm:$0xff] %v2440_v18 }
 0x344   :  { %2309 = vrot.lane.b32.xlu1 %v2261_v6, %s3148_s2  ;;  %2215 = vrot.lane.b32.xlu0 %v2167_v8, %s3149_s14 }
 0x346   :  { %v2382_v13 = vpop.permute.xlu1 %2381  ;;  %v2196_v15 = vpop.permute.xlu0 %2195 }
 0x347   :  { %v2222_v61 = vadd.f32 %v2196_v15, %v2128_v34  ;;  %2121 = vrot.lane.b32.xlu2 %v2073_v26, %s3150_s4 }
 0x349   :  { %v2316_v23 = vadd.f32 %v2290_v56, %v2222_v61  ;;  %v2200_v28 = vpop.permute.xlu2 %2199 }
 0x34a   :  { %v2469_v16 = vld.sshfl [vmem:[#allocation1 + $0x30] sm:$0xff pattern:$0x75316420] }
 0x34b   :  { %v2410_v32 = vadd.f32 %v2384_v54, %v2316_v23  ;;  %v2519_v0 = vpack.c.bf16 %v2469_v16, %v2468_v58 }
 0x34d   :  { %v2442_v45 = vrot.slane %v2410_v32, 4  ;;  %2472 = vst [vmem:[#allocation1 + $0x10] ss:$2 sm:$0xff] %v2410_v32  ;;  %2603 = vmatmul.bf16.gmra.mxu2 %v2519_v0 }
 0x34e   :  { %v2294_v33 = vpop.permute.xlu1 %2293  ;;  %v2288_v24 = vpop.permute.xlu0 %2287 }
 0x34f   :  { %2473 = vst [vmem:[#allocation1 + $0x11] ss:$2 sm:$0xff] %v2442_v45  ;;  %v2315_v59 = vadd.f32 %v2288_v24, %v2221_v52  ;;  %2403 = vrot.lane.b32.xlu2 %v2355_v21, %s3146_s30 }
 0x351   :  { %v2409_v44 = vadd.f32 %v2382_v13, %v2315_v59  ;;  %v2386_v30 = vpop.permute.xlu2 %2385 }
 0x353   :  { %v2441_v36 = vrot.slane %v2409_v44, 4  ;;  %2470 = vst [vmem:[#allocation1] ss:$2 sm:$0xff] %v2409_v44 }
 0x355   :  { %2471 = vst [vmem:[#allocation1 + $0x1] ss:$2 sm:$0xff] %v2441_v36 }
 0x356   :  { %v2388_v7 = vpop.permute.xlu1 %2387  ;;  %v2106_v63 = vpop.permute.xlu0 %2105  ;;  %v2479_v38 = vld.sshfl [vmem:[#allocation1 + $0x10] sm:$0xff pattern:$0x75316420] }
 0x357   :  { %v2130_v26 = vadd.f32 %v2106_v63, %v4107_v11 }
 0x359   :  { %v2224_v20 = vadd.f32 %v2200_v28, %v2130_v26  ;;  %v2202_v57 = vpop.permute.xlu2 %2201 }
 0x35b   :  { %v2318_v8 = vadd.f32 %v2294_v33, %v2224_v20 }
 0x35c   :  { %v2478_v19 = vld.sshfl [vmem:[#allocation1] sm:$0xff pattern:$0x75316420] }
 0x35d   :  { %v2412_v14 = vadd.f32 %v2388_v7, %v2318_v8  ;;  %v2520_v47 = vpack.c.bf16 %v2479_v38, %v2478_v19 }
 0x35e   :  { %v2104_v12 = vpop.permute.xlu1 %2103  ;;  %v2292_v62 = vpop.permute.xlu0 %2291 }
 0x35f   :  { %2476 = vst [vmem:[#allocation1 + $0x30] ss:$2 sm:$0xff] %v2412_v14  ;;  %2608 = vmatmul.bf16.gmra.mxu2 %v2520_v47  ;;  %v2129_v1 = vadd.f32 %v2104_v12, %v3980_v46 }
 0x361   :  { %v2296_v31 = vpop.permute.xlu2 %2295 }
 0x366   :  { %v2198_v55 = vpop.permute.xlu1 %2197  ;;  %v2108_v39 = vpop.permute.xlu0 %2107 }
 0x367   :  { %v2223_v29 = vadd.f32 %v2198_v55, %v2129_v1  ;;  %v2131_v49 = vadd.f32 %v2108_v39, %v4156_v25 }
 0x369   :  { %v2317_v11 = vadd.f32 %v2292_v62, %v2223_v29  ;;  %v2225_v21 = vadd.f32 %v2202_v57, %v2131_v49  ;;  %v2390_v22 = vpop.permute.xlu2 %2389 }
 0x36b   :  { %v2411_v42 = vadd.f32 %v2386_v30, %v2317_v11  ;;  %v2319_v3 = vadd.f32 %v2296_v31, %v2225_v21 }
 0x36d   :  { %v2443_v37 = vrot.slane %v2411_v42, 4  ;;  %2474 = vst [vmem:[#allocation1 + $0x20] ss:$2 sm:$0xff] %v2411_v42  ;;  %v2413_v27 = vadd.f32 %v2390_v22, %v2319_v3 }
 0x36e   :  { %v2110_v9 = vpop.permute.xlu1 %2109  ;;  %v2204_v5 = vpop.permute.xlu0 %2203 }
 0x36f   :  { %2475 = vst [vmem:[#allocation1 + $0x21] ss:$2 sm:$0xff] %v2443_v37  ;;  %v2444_v6 = vrot.slane %v2413_v27, 4  ;;  %v2132_v25 = vadd.f32 %v2110_v9, %v4035_v48 }
 0x370   :  { %2477 = vst [vmem:[#allocation1 + $0x31] ss:$2 sm:$0xff] %v2413_v27 }
 0x371   :  { %2482 = vst [vmem:[#allocation1] ss:$2 sm:$0xff] %v2444_v6  ;;  %v2394_v46 = vpop.permute.xlu2 %2393  ;;  %v2226_v40 = vadd.f32 %v2204_v5, %v2132_v25 }
 0x376   :  { %v2112_v41 = vpop.permute.xlu1 %2111  ;;  %v2480_v10 = vld.sshfl [vmem:[#allocation1 + $0x20] sm:$0xff pattern:$0x75316420]  ;;  %v2298_v56 = vpop.permute.xlu0 %2297 }
 0x377   :  { %v2481_v35 = vld.sshfl [vmem:[#allocation1 + $0x30] sm:$0xff pattern:$0x75316420]  ;;  %v2320_v18 = vadd.f32 %v2298_v56, %v2226_v40  ;;  %v2133_v2 = vadd.f32 %v2112_v41, %v4059_v43  ;;  %v4317_v56 = vld [vmem:[%s4411_s12] ss:$0 sm:$0xff] }
 0x378   :  { %v2521_v53 = vpack.c.bf16 %v2481_v35, %v2480_v10 }
 0x379   :  { %v2302_v34 = vpop.permute.xlu2 %2301 }
 0x37a   :  { %2613 = vmatmul.bf16.gmra.mxu2 %v2521_v53 }
 0x37e   :  { %v2206_v54 = vpop.permute.xlu1 %2205  ;;  %v2392_v13 = vpop.permute.xlu0 %2391 }
 0x37f   :  { %v2414_v15 = vadd.f32 %v2392_v13, %v2320_v18  ;;  %v2227_v23 = vadd.f32 %v2206_v54, %v2133_v2 }
 0x381   :  { %v2445_v61 = vrot.slane %v2414_v15, 4  ;;  %2483 = vst [vmem:[#allocation1 + $0x1] ss:$2 sm:$0xff] %v2414_v15  ;;  %v2116_v32 = vpop.permute.xlu2 %2115 }
 0x382   :  { %v2135_v63 = vadd.f32 %v2116_v32, %v4115_v50 }
 0x383   :  { %2484 = vst [vmem:[#allocation1 + $0x10] ss:$2 sm:$0xff] %v2445_v61 }
 0x386   :  { %v2300_v28 = vpop.permute.xlu1 %2299  ;;  %v2114_v58 = vpop.permute.xlu0 %2113 }
 0x387   :  { %v2321_v16 = vadd.f32 %v2300_v28, %v2227_v23  ;;  %v2134_v45 = vadd.f32 %v2114_v58, %v4098_v17 }
 0x388   :  { %v2490_v44 = vld.sshfl [vmem:[#allocation1] sm:$0xff pattern:$0x75316420] }
 0x389   :  { %v2415_v0 = vadd.f32 %v2394_v46, %v2321_v16  ;;  %v2398_v36 = vpop.permute.xlu2 %2397 }
 0x38b   :  { %v2446_v48 = vrot.slane %v2415_v0, 4  ;;  %2485 = vst [vmem:[#allocation1 + $0x11] ss:$2 sm:$0xff] %v2415_v0 }
 0x38d   :  { %2486 = vst [vmem:[#allocation1 + $0x20] ss:$2 sm:$0xff] %v2446_v48 }
 0x38e   :  { %v2396_v52 = vpop.permute.xlu1 %2395  ;;  %v2208_v33 = vpop.permute.xlu0 %2207 }
 0x38f   :  { %v2228_v24 = vadd.f32 %v2208_v33, %v2134_v45 }
 0x391   :  { %v2322_v59 = vadd.f32 %v2302_v34, %v2228_v24  ;;  %v2212_v38 = vpop.permute.xlu2 %2211 }
 0x392   :  { %v2491_v30 = vld.sshfl [vmem:[#allocation1 + $0x10] sm:$0xff pattern:$0x75316420] }
 0x393   :  { %v2522_v43 = vpack.c.bf16 %v2491_v30, %v2490_v44  ;;  %v2416_v7 = vadd.f32 %v2396_v52, %v2322_v59 }
 0x395   :  { %2618 = vmatmul.bf16.vlgmr.msrb.gmra.mxu3 %v2522_v43  ;;  %v2447_v26 = vrot.slane %v2416_v7, 4  ;;  %2487 = vst [vmem:[#allocation1 + $0x21] ss:$2 sm:$0xff] %v2416_v7 }
 0x396   :  { %v2210_v20 = vpop.permute.xlu1 %2209  ;;  %v2304_v57 = vpop.permute.xlu0 %2303 }
 0x397   :  { %v2229_v8 = vadd.f32 %v2210_v20, %v2135_v63  ;;  %2488 = vst [vmem:[#allocation1 + $0x30] ss:$2 sm:$0xff] %v2447_v26 }
 0x399   :  { %v2323_v19 = vadd.f32 %v2304_v57, %v2229_v8  ;;  %v2308_v29 = vpop.permute.xlu2 %2307 }
 0x39b   :  { %v2417_v17 = vadd.f32 %v2398_v36, %v2323_v19 }
 0x39c   :  { %v2492_v62 = vld.sshfl [vmem:[#allocation1 + $0x20] sm:$0xff pattern:$0x75316420] }
 0x39d   :  { %v2448_v14 = vrot.slane %v2417_v17, 4  ;;  %2489 = vst [vmem:[#allocation1 + $0x31] ss:$2 sm:$0xff] %v2417_v17 }
 0x39e   :  { %v2306_v12 = vpop.permute.xlu1 %2305  ;;  %v2118_v47 = vpop.permute.xlu0 %2117 }
 0x39f   :  { %2494 = vst [vmem:[#allocation1] ss:$2 sm:$0xff] %v2448_v14  ;;  %v2136_v50 = vadd.f32 %v2118_v47, %v4134_v51 }
 0x3a1   :  { %v2230_v21 = vadd.f32 %v2212_v38, %v2136_v50  ;;  %v2122_v5 = vpop.permute.xlu2 %2121 }
 0x3a2   :  { %v2138_v51 = vadd.f32 %v2122_v5, %v4265_v4 }
 0x3a3   :  { %v2324_v3 = vadd.f32 %v2306_v12, %v2230_v21 }
 0x3a4   :  { %v2493_v31 = vld.sshfl [vmem:[#allocation1 + $0x30] sm:$0xff pattern:$0x75316420] }
 0x3a5   :  { %v2523_v1 = vpack.c.bf16 %v2493_v31, %v2492_v62 }
 0x3a6   :  { %v2120_v55 = vpop.permute.xlu1 %2119  ;;  %v2214_v49 = vpop.permute.xlu0 %2213 }
 0x3a7   :  { %v2137_v39 = vadd.f32 %v2120_v55, %v4250_v60  ;;  %2623 = vmatmul.bf16.gmra.mxu3 %v2523_v1  ;;  %v4312_v60 = vld [vmem:[%s4410_s11] ss:$0 sm:$0xff] }
 0x3a9   :  { %v2231_v11 = vadd.f32 %v2214_v49, %v2137_v39  ;;  %v2404_v18 = vpop.permute.xlu2 %2403 }
 0x3ab   :  { %v2325_v42 = vadd.f32 %v2308_v29, %v2231_v11 }
 0x3ae   :  { %v2402_v22 = vpop.permute.xlu1 %2401  ;;  %v2400_v27 = vpop.permute.xlu0 %2399 }
 0x3af   :  { %v2419_v37 = vadd.f32 %v2402_v22, %v2325_v42  ;;  %v2418_v9 = vadd.f32 %v2400_v27, %v2324_v3 }
 0x3b1   :  { %v2450_v6 = vrot.slane %v2419_v37, 4  ;;  %2497 = vst [vmem:[#allocation1 + $0x11] ss:$2 sm:$0xff] %v2419_v37  ;;  %v2449_v46 = vrot.slane %v2418_v9, 4 }
 0x3b2   :  { %2495 = vst [vmem:[#allocation1 + $0x1] ss:$2 sm:$0xff] %v2418_v9 }
 0x3b3   :  { %2498 = vst [vmem:[#allocation1 + $0x20] ss:$2 sm:$0xff] %v2450_v6 }
 0x3b4   :  { %2496 = vst [vmem:[#allocation1 + $0x10] ss:$2 sm:$0xff] %v2449_v46 }
 0x3b6   :  { %v2216_v41 = vpop.permute.xlu0 %2215  ;;  %v2310_v35 = vpop.permute.xlu1 %2309 }
 0x3b7   :  { %v2232_v10 = vadd.f32 %v2216_v41, %v2138_v51 }
 0x3b8   :  { %v2599_v25 = vpop.f32.mrf.mxu2 }
 0x3b9   :  { %v2326_v53 = vadd.f32 %v2310_v35, %v2232_v10  ;;  %v2642_v40 = vmul.f32 %v4312_v60, %v2599_v25  ;;  %v2500_v54 = vld.sshfl [vmem:[#allocation1] sm:$0xff pattern:$0x75316420] }
 0x3bb   :  { %v2501_v4 = vld.sshfl [vmem:[#allocation1 + $0x10] sm:$0xff pattern:$0x75316420]  ;;  %v2420_v34 = vadd.f32 %v2404_v18, %v2326_v53  ;;  %v2661_v13 = vadd.f32 %v4317_v56, %v2642_v40 }
 0x3bc   :  { %v2524_v15 = vpack.c.bf16 %v2501_v4, %v2500_v54 }
 0x3bd   :  { %2499 = vst [vmem:[#allocation1 + $0x21] ss:$2 sm:$0xff] %v2420_v34  ;;  %v2676_v61 = vmax.f32 %v2661_v13, 0.0 }
 0x3be   :  { %2628 = vmatmul.bf16.gmra.mxu3 %v2524_v15 }
 0x3bf   :  { %v2706_v2 = vrot.slane %v2676_v61, 4  ;;  %2721 = vst [vmem:[#allocation1] ss:$2 sm:$0xff] %v2676_v61 }
 0x3c0   :  { %v2601_v23 = vpop.f32.mrf.mxu2 }
 0x3c1   :  { %2723 = vst [vmem:[#allocation1 + $0x1] ss:$2 sm:$0xff] %v2706_v2  ;;  %v2643_v28 = vmul.f32 %v4312_v60, %v2601_v23 }
 0x3c3   :  { %v2662_v58 = vadd.f32 %v4317_v56, %v2643_v28 }
 0x3c4   :  { %v2502_v48 = vld.sshfl [vmem:[#allocation1 + $0x20] sm:$0xff pattern:$0x75316420] }
 0x3c5   :  { %v2677_v16 = vmax.f32 %v2662_v58, 0.0  ;;  %v2525_v45 = vpack.c.bf16 %v2502_v48, %v2502_v48 }
 0x3c7   :  { %v2707_v32 = vrot.slane %v2677_v16, 4  ;;  %2725 = vst [vmem:[#allocation1 + $0x10] ss:$2 sm:$0xff] %v2677_v16 }
 0x3c8   :  { %v2736_v0 = vld.sshfl [vmem:[#allocation1] sm:$0xff pattern:$0x75316420] }
 0x3c9   :  { %2792 = vst [vmem:[%s4412_s13] sm:$0xff] %v2736_v0 }
 0x3ca   :  { %2727 = vst [vmem:[#allocation1 + $0x11] ss:$2 sm:$0xff] %v2707_v32 }
 0x3ce   :  { %2633 = vmatmul.bf16.gmra.mxu3 %v2525_v45 }
 0x3d0   :  { %v2604_v52 = vpop.f32.mrf.mxu2 }
 0x3d1   :  { %v2737_v33 = vld.sshfl [vmem:[#allocation1 + $0x10] sm:$0xff pattern:$0x75316420]  ;;  %v2644_v24 = vmul.f32 %v4312_v60, %v2604_v52 }
 0x3d2   :  { %2793 = vst [vmem:[%s4412_s13 + $0x8] sm:$0xff] %v2737_v33 }
 0x3d3   :  { %v2663_v59 = vadd.f32 %v4317_v56, %v2644_v24 }
 0x3d5   :  { %v2678_v44 = vmax.f32 %v2663_v59, 0.0 }
 0x3d7   :  { %v2708_v30 = vrot.slane %v2678_v44, 4  ;;  %2729 = vst [vmem:[#allocation1 + $0x20] ss:$2 sm:$0xff] %v2678_v44 }
 0x3d8   :  { %v2606_v36 = vpop.f32.mrf.mxu2 }
 0x3d9   :  { %2731 = vst [vmem:[#allocation1 + $0x21] ss:$2 sm:$0xff] %v2708_v30  ;;  %v2645_v43 = vmul.f32 %v4312_v60, %v2606_v36 }
 0x3db   :  { %v2664_v7 = vadd.f32 %v4317_v56, %v2645_v43 }
 0x3dd   :  { %v2679_v63 = vmax.f32 %v2664_v7, 0.0 }
 0x3df   :  { %v2709_v26 = vrot.slane %v2679_v63, 4  ;;  %2733 = vst [vmem:[#allocation1 + $0x30] ss:$2 sm:$0xff] %v2679_v63 }
 0x3e0   :  { %v2738_v20 = vld.sshfl [vmem:[#allocation1 + $0x20] sm:$0xff pattern:$0x75316420] }
 0x3e1   :  { %2794 = vst [vmem:[%s4412_s13 + $0x10] sm:$0xff] %v2738_v20 }
 0x3e2   :  { %2735 = vst [vmem:[#allocation1 + $0x31] ss:$2 sm:$0xff] %v2709_v26  ;;  %v2609_v57 = vpop.f32.mrf.mxu2 }
 0x3e3   :  { %v2646_v8 = vmul.f32 %v4312_v60, %v2609_v57 }
 0x3e5   :  { %v2665_v19 = vadd.f32 %v4317_v56, %v2646_v8 }
 0x3e7   :  { %v2680_v17 = vmax.f32 %v2665_v19, 0.0 }
 0x3e9   :  { %v2739_v38 = vld.sshfl [vmem:[#allocation1 + $0x30] sm:$0xff pattern:$0x75316420]  ;;  %v2710_v14 = vrot.slane %v2680_v17, 4  ;;  %2740 = vst [vmem:[#allocation1] ss:$2 sm:$0xff] %v2680_v17 }
 0x3ea   :  { %2795 = vst [vmem:[%s4412_s13 + $0x18] sm:$0xff] %v2739_v38  ;;  %v2611_v12 = vpop.f32.mrf.mxu2 }
 0x3eb   :  { %2741 = vst [vmem:[#allocation1 + $0x1] ss:$2 sm:$0xff] %v2710_v14  ;;  %v2647_v47 = vmul.f32 %v4312_v60, %v2611_v12 }
 0x3ed   :  { %v2666_v62 = vadd.f32 %v4317_v56, %v2647_v47 }
 0x3ef   :  { %v2681_v31 = vmax.f32 %v2666_v62, 0.0 }
 0x3f1   :  { %v2711_v1 = vrot.slane %v2681_v31, 4  ;;  %2742 = vst [vmem:[#allocation1 + $0x10] ss:$2 sm:$0xff] %v2681_v31 }
 0x3f2   :  { %v2747_v50 = vld.sshfl [vmem:[#allocation1] sm:$0xff pattern:$0x75316420] }
 0x3f3   :  { %2796 = vst [vmem:[%s4412_s13 + $0x20] sm:$0xff] %v2747_v50 }
 0x3f4   :  { %2743 = vst [vmem:[#allocation1 + $0x11] ss:$2 sm:$0xff] %v2711_v1 }
 0x3fb   :  { %v2748_v55 = vld.sshfl [vmem:[#allocation1 + $0x10] sm:$0xff pattern:$0x75316420] }
 0x3fc   :  { %2797 = vst [vmem:[%s4412_s13 + $0x28] sm:$0xff] %v2748_v55 }
 0x3fd   :  { %v2614_v29 = vpop.f32.mrf.mxu2 }
 0x3fe   :  { %v2648_v39 = vmul.f32 %v4312_v60, %v2614_v29 }
 0x400   :  { %v2667_v49 = vadd.f32 %v4317_v56, %v2648_v39 }
 0x402   :  { %v2682_v11 = vmax.f32 %v2667_v49, 0.0 }
 0x404   :  { %v2712_v21 = vrot.slane %v2682_v11, 4  ;;  %2744 = vst [vmem:[#allocation1 + $0x20] ss:$2 sm:$0xff] %v2682_v11 }
 0x405   :  { %v2616_v42 = vpop.f32.mrf.mxu2 }
 0x406   :  { %2745 = vst [vmem:[#allocation1 + $0x21] ss:$2 sm:$0xff] %v2712_v21  ;;  %v2649_v22 = vmul.f32 %v4312_v60, %v2616_v42 }
 0x408   :  { %v2668_v3 = vadd.f32 %v4317_v56, %v2649_v22 }
 0x40a   :  { %v2683_v37 = vmax.f32 %v2668_v3, 0.0 }
 0x40c   :  { %v2713_v27 = vrot.slane %v2683_v37, 4  ;;  %2746 = vst [vmem:[#allocation1 + $0x30] ss:$2 sm:$0xff] %v2683_v37 }
 0x40d   :  { %v2749_v9 = vld.sshfl [vmem:[#allocation1 + $0x20] sm:$0xff pattern:$0x75316420] }
 0x40e   :  { %2798 = vst [vmem:[%s4412_s13 + $0x30] sm:$0xff] %v2749_v9 }
 0x40f   :  { %2751 = vst [vmem:[#allocation1] ss:$2 sm:$0xff] %v2713_v27 }
 0x413   :  { %v2750_v5 = vld.sshfl [vmem:[#allocation1 + $0x30] sm:$0xff pattern:$0x75316420] }
 0x414   :  { %v2790_v6 = vsel %vm151_vm5, %v2750_v5, 0.0 }
 0x415   :  { %2799 = vst [vmem:[%s4412_s13 + $0x38] sm:$0xff] %v2790_v6 }
 0x418   :  { %v2619_v46 = vpop.f32.mrf.mxu3 }
 0x419   :  { %v2650_v51 = vmul.f32 %v4312_v60, %v2619_v46 }
 0x41b   :  { %v2669_v41 = vadd.f32 %v4317_v56, %v2650_v51 }
 0x41d   :  { %v2684_v10 = vmax.f32 %v2669_v41, 0.0 }
 0x41f   :  { %v2714_v35 = vrot.slane %v2684_v10, 4  ;;  %2752 = vst [vmem:[#allocation1 + $0x1] ss:$2 sm:$0xff] %v2684_v10 }
 0x420   :  { %v2621_v25 = vpop.f32.mrf.mxu3 }
 0x421   :  { %2753 = vst [vmem:[#allocation1 + $0x10] ss:$2 sm:$0xff] %v2714_v35  ;;  %v2651_v53 = vmul.f32 %v4312_v60, %v2621_v25 }
 0x423   :  { %v2670_v40 = vadd.f32 %v4317_v56, %v2651_v53 }
 0x425   :  { %v2685_v18 = vmax.f32 %v2670_v40, 0.0 }
 0x426   :  { %v2759_v54 = vld.sshfl [vmem:[#allocation1] sm:$0xff pattern:$0x75316420] }
 0x427   :  { %2800 = vst [vmem:[%s4412_s13 + $0x40] sm:$0xff] %v2759_v54  ;;  %v2715_v4 = vrot.slane %v2685_v18, 4 }
 0x428   :  { %2754 = vst [vmem:[#allocation1 + $0x11] ss:$2 sm:$0xff] %v2685_v18 }
 0x429   :  { %2755 = vst [vmem:[#allocation1 + $0x20] ss:$2 sm:$0xff] %v2715_v4 }
 0x42a   :  { %v2624_v34 = vpop.f32.mrf.mxu3 }
 0x42b   :  { %v2652_v13 = vmul.f32 %v4312_v60, %v2624_v34 }
 0x42d   :  { %v2671_v15 = vadd.f32 %v4317_v56, %v2652_v13 }
 0x42f   :  { %v2760_v61 = vld.sshfl [vmem:[#allocation1 + $0x10] sm:$0xff pattern:$0x75316420]  ;;  %v2686_v2 = vmax.f32 %v2671_v15, 0.0 }
 0x430   :  { %2801 = vst [vmem:[%s4412_s13 + $0x48] sm:$0xff] %v2760_v61 }
 0x431   :  { %v2716_v23 = vrot.slane %v2686_v2, 4  ;;  %2756 = vst [vmem:[#allocation1 + $0x21] ss:$2 sm:$0xff] %v2686_v2 }
 0x432   :  { %v2626_v28 = vpop.f32.mrf.mxu3 }
 0x433   :  { %2757 = vst [vmem:[#allocation1 + $0x30] ss:$2 sm:$0xff] %v2716_v23  ;;  %v2653_v58 = vmul.f32 %v4312_v60, %v2626_v28 }
 0x435   :  { %v2672_v16 = vadd.f32 %v4317_v56, %v2653_v58 }
 0x437   :  { %v2687_v32 = vmax.f32 %v2672_v16, 0.0 }
 0x438   :  { %v2761_v0 = vld.sshfl [vmem:[#allocation1 + $0x20] sm:$0xff pattern:$0x75316420] }
 0x439   :  { %2802 = vst [vmem:[%s4412_s13 + $0x50] sm:$0xff] %v2761_v0  ;;  %v2717_v48 = vrot.slane %v2687_v32, 4 }
 0x43a   :  { %2758 = vst [vmem:[#allocation1 + $0x31] ss:$2 sm:$0xff] %v2687_v32 }
 0x43b   :  { %2763 = vst [vmem:[#allocation1] ss:$2 sm:$0xff] %v2717_v48 }
 0x441   :  { %v2762_v45 = vld.sshfl [vmem:[#allocation1 + $0x30] sm:$0xff pattern:$0x75316420]  ;;  %v2629_v52 = vpop.f32.mrf.mxu3 }
 0x442   :  { %2803 = vst [vmem:[%s4412_s13 + $0x58] sm:$0xff] %v2762_v45  ;;  %v2654_v33 = vmul.f32 %v4312_v60, %v2629_v52 }
 0x444   :  { %v2673_v24 = vadd.f32 %v4317_v56, %v2654_v33 }
 0x446   :  { %v2688_v59 = vmax.f32 %v2673_v24, 0.0 }
 0x448   :  { %v2718_v44 = vrot.slane %v2688_v59, 4  ;;  %2764 = vst [vmem:[#allocation1 + $0x1] ss:$2 sm:$0xff] %v2688_v59 }
 0x449   :  { %v2631_v30 = vpop.f32.mrf.mxu3 }
 0x44a   :  { %2765 = vst [vmem:[#allocation1 + $0x10] ss:$2 sm:$0xff] %v2718_v44  ;;  %v2655_v36 = vmul.f32 %v4312_v60, %v2631_v30 }
 0x44c   :  { %v2674_v43 = vadd.f32 %v4317_v56, %v2655_v36 }
 0x44e   :  { %v2689_v7 = vmax.f32 %v2674_v43, 0.0 }
 0x44f   :  { %v2770_v63 = vld.sshfl [vmem:[#allocation1] sm:$0xff pattern:$0x75316420] }
 0x450   :  { %2804 = vst [vmem:[%s4412_s13 + $0x60] sm:$0xff] %v2770_v63  ;;  %v2719_v26 = vrot.slane %v2689_v7, 4 }
 0x451   :  { %2766 = vst [vmem:[#allocation1 + $0x11] ss:$2 sm:$0xff] %v2689_v7  ;;  %v2634_v20 = vpop.f32.mrf.mxu3 }
 0x452   :  { %2767 = vst [vmem:[#allocation1 + $0x20] ss:$2 sm:$0xff] %v2719_v26  ;;  %v2656_v57 = vmul.f32 %v4312_v60, %v2634_v20 }
 0x454   :  { %v2675_v8 = vadd.f32 %v4317_v56, %v2656_v57 }
 0x456   :  { %v2690_v19 = vmax.f32 %v2675_v8, 0.0 }
 0x458   :  { %v2771_v17 = vld.sshfl [vmem:[#allocation1 + $0x10] sm:$0xff pattern:$0x75316420]  ;;  %v2720_v38 = vrot.slane %v2690_v19, 4  ;;  %2768 = vst [vmem:[#allocation1 + $0x21] ss:$2 sm:$0xff] %v2690_v19 }
 0x459   :  { %2805 = vst [vmem:[%s4412_s13 + $0x68] sm:$0xff] %v2771_v17  ;;  %v2636_v14 = vpop.f32.mrf.mxu3 }
 0x45a   :  { %2769 = vst [vmem:[#allocation1 + $0x30] ss:$2 sm:$0xff] %v2720_v38 }
 0x45f   :  { %v2772_v12 = vld.sshfl [vmem:[#allocation1 + $0x20] sm:$0xff pattern:$0x75316420] }
 0x460   :  { %2806 = vst [vmem:[%s4412_s13 + $0x70] sm:$0xff] %v2772_v12 }
 0x461   :  { %v2773_v47 = vld.sshfl [vmem:[#allocation1 + $0x30] sm:$0xff pattern:$0x75316420] }
 0x462   :  { %v2791_v60 = vsel %vm151_vm5, %v2773_v47, 0.0 }
 0x463   :  { %2807 = vst [vmem:[%s4412_s13 + $0x78] sm:$0xff] %v2791_v60 }
 0x464   :  { %2812 = vsyncpa [#allocation3], 1 }

</bundles_post_ra>
